<compile_context>
chip_gen: v7x
topology: tpu7x:2x2x1
jax: 0.10.0
libtpu: 0.0.40
codegen_flags: <defaults>
</compile_context>

<pallas_src>
import functools

import jax
import jax.numpy as jnp
import numpy as np
from jax.experimental import pallas as pl
from jax.experimental.pallas import tpu as pltpu


def fire_kernel(x_ref, wsq_ref, bsq_ref, wf_ref, bf_ref, out_ref, spad_ref,
                *, TH, CB, tail_pad):
    # x_ref:    (1, H_pad+2, W, Cin) bf16 -- padded image of the current batch
    #           element (1 extra row top/bottom so the halo read is in-bounds).
    # spad_ref: (TH+2, CB+W+1, Csq) bf16  -- zero-bordered squeeze tile.
    # out_ref:  (1, TH, W, 2*Ce) bf16     -- [expand1x1 | expand3x3] fused.
    _, _, W, Cin = x_ref.shape
    Csq = wsq_ref.shape[1]
    Co = wf_ref.shape[1]                              # 2*Ce

    ht = pl.program_id(1)
    r0 = pl.multiple_of(ht * TH, TH)

    # ---- squeeze 1x1 + bias + ReLU over core rows AND both halo rows in a
    # ---- single matmul (M = (TH+2)*W); no tiny per-halo-row matmuls. --------
    xs = x_ref[0, pl.ds(r0, TH + 2), :, :]            # (TH+2, W, Cin) bf16
    s = jnp.dot(xs.reshape((TH + 2) * W, Cin), wsq_ref[...],
                preferred_element_type=jnp.float32)
    s = jnp.maximum(s + bsq_ref[...], 0.0)            # f32 bias + ReLU
    sb = s.astype(jnp.bfloat16).reshape(TH + 2, W, Csq)

    # ---- spad: zero only the left/right conv-pad columns (cheap); the core
    # ---- region is fully overwritten every step (no full-scratch memset). ---
    zcol = jnp.zeros((TH + 2, 1, Csq), spad_ref.dtype)
    spad_ref[:, CB - 1:CB, :] = zcol                  # left zero-pad column
    spad_ref[:, CB + W:CB + W + 1, :] = zcol          # right zero-pad column
    spad_ref[:, CB:CB + W, :] = sb                    # core + halo rows

    # Top image border: the halo row above image row 0 must be zero.
    @pl.when(ht == 0)
    def _():
        spad_ref[0:1, CB:CB + W, :] = jnp.zeros((1, W, Csq), spad_ref.dtype)

    # Bottom image border (plus any rows added by padding H up to H_pad).
    @pl.when(ht == pl.num_programs(1) - 1)
    def _():
        spad_ref[TH + 1 - tail_pad:TH + 2, CB:CB + W, :] = jnp.zeros(
            (1 + tail_pad, W, Csq), spad_ref.dtype)

    # ---- fused expand: im2col patch (K = 9*Csq) @ fused weight -> [e1 | e3].
    # expand1x1 weights occupy the center-tap K rows of wf (built in wrapper),
    # so a single matmul / bias / ReLU / lane-dense store covers both branches.
    c0 = CB - 1
    cols = [spad_ref[dy:dy + TH, c0 + dx:c0 + dx + W, :].reshape(TH * W, Csq)
            for dy in range(3) for dx in range(3)]
    patch = jnp.concatenate(cols, axis=-1)            # (TH*W, 9*Csq) bf16
    e = jnp.dot(patch, wf_ref[...], preferred_element_type=jnp.float32)
    e = jnp.maximum(e + bf_ref[...], 0.0)
    out_ref[...] = e.reshape(1, TH, W, Co).astype(out_ref.dtype)


def fire_module(x_nchw, params, *, row_tile=None, out_dtype=jnp.bfloat16):
    """FireModule forward. x_nchw: (N, Cin, H, W) f32. Returns (N, 2*Ce, H, W)
    in `out_dtype` (bf16 by default -- the next layer consumes bf16 anyway)."""
    wsq, bsq, we1, be1, we3, be3 = params
    # TODO(synk): keep the whole network NHWC to eliminate these transposes.
    x = jnp.transpose(x_nchw, (0, 2, 3, 1))           # NCHW -> NHWC
    N, H, W, Cin = x.shape
    Csq = wsq.shape[1]
    Ce = we1.shape[1]

    # Row tile: target M = TH*W >= 256 (fills the 256-wide MXU), sublane mult.
    if row_tile is None:
        TH = max(8, ((-(-256 // W)) + 7) // 8 * 8)
    else:
        TH = row_tile
    H_pad = -(-H // TH) * TH                          # H rounded up to TH
    HT = H_pad // TH
    tail_pad = H_pad - H
    CB = 8                                            # aligned scratch column base

    # Pad 1 halo row top + (1 + tail_pad) rows bottom so slab reads are in
    # bounds; conv zero-padding itself is handled in-kernel on the spad rows.
    xpad = jnp.pad(x, ((0, 0), (1, 1 + tail_pad), (0, 0), (0, 0))
                   ).astype(jnp.bfloat16)             # (N, H_pad+2, W, Cin)

    wsq_b = wsq.astype(jnp.bfloat16)
    # Fused expand weight: [:, :Ce] = expand1x1 at the center-tap K rows,
    # [:, Ce:] = expand3x3 in im2col (dy, dx, c) row order.
    w_fused = jnp.zeros((9 * Csq, 2 * Ce), jnp.float32)
    w_fused = w_fused.at[4 * Csq:5 * Csq, :Ce].set(we1)
    w_fused = w_fused.at[:, Ce:].set(we3.reshape(9 * Csq, Ce))
    w_fused_b = w_fused.astype(jnp.bfloat16)
    b_fused = jnp.concatenate([be1, be3], axis=-1)    # (1, 2*Ce) f32

    kernel = functools.partial(fire_kernel, TH=TH, CB=CB, tail_pad=tail_pad)

    out = pl.pallas_call(
        kernel,
        out_shape=jax.ShapeDtypeStruct((N, H_pad, W, 2 * Ce), out_dtype),
        grid_spec=pltpu.PrefetchScalarGridSpec(
            num_scalar_prefetch=0,
            grid=(N, HT),
            in_specs=[
                pl.BlockSpec((1, H_pad + 2, W, Cin), lambda n, h: (n, 0, 0, 0)),
                pl.BlockSpec(wsq_b.shape, lambda n, h: (0, 0)),
                pl.BlockSpec(bsq.shape, lambda n, h: (0, 0)),
                pl.BlockSpec(w_fused_b.shape, lambda n, h: (0, 0)),
                pl.BlockSpec(b_fused.shape, lambda n, h: (0, 0)),
            ],
            out_specs=pl.BlockSpec((1, TH, W, 2 * Ce),
                                   lambda n, h: (n, h, 0, 0)),
            scratch_shapes=[
                pltpu.VMEM((TH + 2, CB + W + 1, Csq), jnp.bfloat16)],
        ),
        compiler_params=pltpu.CompilerParams(
            dimension_semantics=("parallel", "parallel"),
            vmem_limit_bytes=64 * 1024 * 1024),
    )(xpad, wsq_b, bsq, w_fused_b, b_fused)

    out = out[:, :H]                                  # drop padded tail rows
    return jnp.transpose(out, (0, 3, 1, 2))           # NHWC -> NCHW


def init_params(key, in_channels, squeeze_channels, expand_channels):
    """Deterministic synthetic weights in kernel-friendly layouts:
       1x1 weights as (Cin, Cout); 3x3 weights as (kh, kw, Cin, Cout);
       biases as (1, Cout)."""
    k = jax.random.split(key, 6)
    scale = 0.1
    wsq = scale * jax.random.normal(k[0], (in_channels, squeeze_channels), jnp.float32)
    bsq = scale * jax.random.normal(k[1], (1, squeeze_channels), jnp.float32)
    we1 = scale * jax.random.normal(k[2], (squeeze_channels, expand_channels), jnp.float32)
    be1 = scale * jax.random.normal(k[3], (1, expand_channels), jnp.float32)
    we3 = scale * jax.random.normal(k[4], (3, 3, squeeze_channels, expand_channels), jnp.float32)
    be3 = scale * jax.random.normal(k[5], (1, expand_channels), jnp.float32)
    return (wsq, bsq, we1, be1, we3, be3)


def fire_reference(x_nchw, params):
    """Plain-JAX f32 reference (same math as the PyTorch module)."""
    wsq, bsq, we1, be1, we3, be3 = params
    x = jnp.transpose(x_nchw, (0, 2, 3, 1))
    N, H, W, _ = x.shape
    s = jax.nn.relu(jnp.einsum('nhwc,cd->nhwd', x, wsq) + bsq[0])
    e1 = jax.nn.relu(jnp.einsum('nhwc,cd->nhwd', s, we1) + be1[0])
    sp = jnp.pad(s, ((0, 0), (1, 1), (1, 1), (0, 0)))
    e3 = be3[0]
    for dy in range(3):
        for dx in range(3):
            e3 = e3 + jnp.einsum('nhwc,cd->nhwd',
                                 sp[:, dy:dy + H, dx:dx + W, :], we3[dy, dx])
    e3 = jax.nn.relu(e3)
    out = jnp.concatenate([e1, e3], axis=-1)
    return jnp.transpose(out, (0, 3, 1, 2))


if __name__ == "__main__":
    key = jax.random.PRNGKey(0)
    kx, kp = jax.random.split(key)

    N, Cin, H, W = 2, 4, 16, 16
    squeeze_channels, expand_channels = 8, 16

    x = jax.random.normal(kx, (N, Cin, H, W), jnp.float32)   # NCHW like PyTorch
    params = init_params(kp, Cin, squeeze_channels, expand_channels)

    out = fire_module(x, params)
    out = jax.block_until_ready(out)

    ref = fire_reference(x, params)
    assert out.shape == (N, 2 * expand_channels, H, W), out.shape
    # bf16 MXU operands + bf16 output vs f32 reference -> loosened tolerance.
    np.testing.assert_allclose(np.asarray(out, dtype=np.float32), np.asarray(ref),
                               rtol=3e-2, atol=3e-2)
    print("KERNEL_OK")
</pallas_src>

<mosaic_0001>
module attributes {stable_mosaic.version = 11 : i64} {
  func.func @fire_kernel(%arg0: i32, %arg1: i32, %arg2: memref<1x18x16x4xbf16, #tpu.memory_space<vmem>>, %arg3: memref<4x8xbf16, #tpu.memory_space<vmem>>, %arg4: memref<1x8xf32, #tpu.memory_space<vmem>>, %arg5: memref<72x32xbf16, #tpu.memory_space<vmem>>, %arg6: memref<1x32xf32, #tpu.memory_space<vmem>>, %arg7: memref<1x16x16x32xbf16, #tpu.memory_space<vmem>>, %arg8: memref<18x25x8xbf16, #tpu.memory_space<vmem>>) attributes {dimension_semantics = [#tpu.dimension_semantics<parallel>, #tpu.dimension_semantics<parallel>], iteration_bounds = array<i64: 2, 1>, scalar_prefetch = 0 : i64, scratch_operands = 1 : i64, tpu.core_type = #tpu.core_type<tc>, window_params = [{transform_indices = @transform_0, window_bounds = array<i64: 1, 18, 16, 4>}, {pipeline_mode = #tpu.pipeline_mode<synchronous>, transform_indices = @transform_1, window_bounds = array<i64: 4, 8>}, {pipeline_mode = #tpu.pipeline_mode<synchronous>, transform_indices = @transform_2, window_bounds = array<i64: 1, 8>}, {pipeline_mode = #tpu.pipeline_mode<synchronous>, transform_indices = @transform_3, window_bounds = array<i64: 72, 32>}, {pipeline_mode = #tpu.pipeline_mode<synchronous>, transform_indices = @transform_4, window_bounds = array<i64: 1, 32>}, {transform_indices = @transform_5, window_bounds = array<i64: 1, 16, 16, 32>}]} {
    %c16_i32 = arith.constant 16 : i32
    %0 = arith.muli %arg1, %c16_i32 : i32
    %1 = tpu.assume_multiple %0, 16 : i32
    %c0 = arith.constant 0 : index
    %2 = arith.index_cast %1 : i32 to index
    %c0_0 = arith.constant 0 : index
    %c0_1 = arith.constant 0 : index
    %3 = vector.load %arg2[%c0, %2, %c0_0, %c0_1] : memref<1x18x16x4xbf16, #tpu.memory_space<vmem>>, vector<1x18x16x4xbf16>
    %4 = vector.shape_cast %3 : vector<1x18x16x4xbf16> to vector<18x16x4xbf16>
    %5 = vector.shape_cast %4 : vector<18x16x4xbf16> to vector<288x4xbf16>
    %c0_2 = arith.constant 0 : index
    %c0_3 = arith.constant 0 : index
    %6 = vector.load %arg3[%c0_2, %c0_3] : memref<4x8xbf16, #tpu.memory_space<vmem>>, vector<4x8xbf16>
    %cst = arith.constant dense<0.000000e+00> : vector<288x8xf32>
    %7 = tpu.matmul %5, %6, %cst {dimension_numbers = #tpu.dot_dimension_numbers<[1], [0], [0], [1], [0, 0, 1, 1], [], []>} : vector<288x4xbf16>, vector<4x8xbf16>, vector<288x8xf32> -> vector<288x8xf32>
    %c0_4 = arith.constant 0 : index
    %c0_5 = arith.constant 0 : index
    %8 = vector.load %arg4[%c0_4, %c0_5] : memref<1x8xf32, #tpu.memory_space<vmem>>, vector<1x8xf32>
    %9 = vector.broadcast %8 : vector<1x8xf32> to vector<288x8xf32>
    %10 = arith.addf %7, %9 : vector<288x8xf32>
    %cst_6 = arith.constant 0.000000e+00 : f32
    %11 = vector.broadcast %cst_6 : f32 to vector<288x8xf32>
    %12 = arith.maximumf %10, %11 : vector<288x8xf32>
    %13 = arith.truncf %12 : vector<288x8xf32> to vector<288x8xbf16>
    %14 = vector.shape_cast %13 : vector<288x8xbf16> to vector<18x16x8xbf16>
    %cst_7 = arith.constant 0.000000e+00 : bf16
    %15 = vector.broadcast %cst_7 : bf16 to vector<18x1x8xbf16>
    %c0_8 = arith.constant 0 : index
    %c7 = arith.constant 7 : index
    %c0_9 = arith.constant 0 : index
    %16 = vector.load %arg8[%c0_8, %c7, %c0_9] : memref<18x25x8xbf16, #tpu.memory_space<vmem>>, vector<18x1x8xbf16>
    tpu.vector_store %arg8[%c0_8, %c7, %c0_9], %15 {strides = array<i32>} : memref<18x25x8xbf16, #tpu.memory_space<vmem>>, vector<18x1x8xbf16>,
    %c0_10 = arith.constant 0 : index
    %c24 = arith.constant 24 : index
    %c0_11 = arith.constant 0 : index
    %17 = vector.load %arg8[%c0_10, %c24, %c0_11] : memref<18x25x8xbf16, #tpu.memory_space<vmem>>, vector<18x1x8xbf16>
    tpu.vector_store %arg8[%c0_10, %c24, %c0_11], %15 {strides = array<i32>} : memref<18x25x8xbf16, #tpu.memory_space<vmem>>, vector<18x1x8xbf16>,
    %c0_12 = arith.constant 0 : index
    %c8 = arith.constant 8 : index
    %c0_13 = arith.constant 0 : index
    %18 = vector.load %arg8[%c0_12, %c8, %c0_13] : memref<18x25x8xbf16, #tpu.memory_space<vmem>>, vector<18x16x8xbf16>
    tpu.vector_store %arg8[%c0_12, %c8, %c0_13], %14 {strides = array<i32>} : memref<18x25x8xbf16, #tpu.memory_space<vmem>>, vector<18x16x8xbf16>,
    %c0_i32 = arith.constant 0 : i32
    %19 = arith.cmpi eq, %arg1, %c0_i32 : i32
    %20 = arith.extui %19 : i1 to i32
    %c0_i32_14 = arith.constant 0 : i32
    %21 = arith.cmpi ne, %20, %c0_i32_14 : i32
    scf.if %21 {
      %cst_51 = arith.constant 0.000000e+00 : bf16
      %54 = vector.broadcast %cst_51 : bf16 to vector<1x16x8xbf16>
      %c0_52 = arith.constant 0 : index
      %c8_53 = arith.constant 8 : index
      %c0_54 = arith.constant 0 : index
      %55 = vector.load %arg8[%c0_52, %c8_53, %c0_54] : memref<18x25x8xbf16, #tpu.memory_space<vmem>>, vector<1x16x8xbf16>
      tpu.vector_store %arg8[%c0_52, %c8_53, %c0_54], %54 {strides = array<i32>} : memref<18x25x8xbf16, #tpu.memory_space<vmem>>, vector<1x16x8xbf16>,
    } else {
    }
    %c0_i32_15 = arith.constant 0 : i32
    %22 = arith.cmpi eq, %arg1, %c0_i32_15 : i32
    %23 = arith.extui %22 : i1 to i32
    %c0_i32_16 = arith.constant 0 : i32
    %24 = arith.cmpi ne, %23, %c0_i32_16 : i32
    scf.if %24 {
      %cst_51 = arith.constant 0.000000e+00 : bf16
      %54 = vector.broadcast %cst_51 : bf16 to vector<1x16x8xbf16>
      %c17 = arith.constant 17 : index
      %c8_52 = arith.constant 8 : index
      %c0_53 = arith.constant 0 : index
      %55 = vector.load %arg8[%c17, %c8_52, %c0_53] : memref<18x25x8xbf16, #tpu.memory_space<vmem>>, vector<1x16x8xbf16>
      tpu.vector_store %arg8[%c17, %c8_52, %c0_53], %54 {strides = array<i32>} : memref<18x25x8xbf16, #tpu.memory_space<vmem>>, vector<1x16x8xbf16>,
    } else {
    }
    %c0_17 = arith.constant 0 : index
    %c7_18 = arith.constant 7 : index
    %c0_19 = arith.constant 0 : index
    %25 = vector.load %arg8[%c0_17, %c7_18, %c0_19] : memref<18x25x8xbf16, #tpu.memory_space<vmem>>, vector<16x16x8xbf16>
    %26 = vector.shape_cast %25 : vector<16x16x8xbf16> to vector<256x8xbf16>
    %c0_20 = arith.constant 0 : index
    %c8_21 = arith.constant 8 : index
    %c0_22 = arith.constant 0 : index
    %27 = vector.load %arg8[%c0_20, %c8_21, %c0_22] : memref<18x25x8xbf16, #tpu.memory_space<vmem>>, vector<16x16x8xbf16>
    %28 = vector.shape_cast %27 : vector<16x16x8xbf16> to vector<256x8xbf16>
    %c0_23 = arith.constant 0 : index
    %c9 = arith.constant 9 : index
    %c0_24 = arith.constant 0 : index
    %29 = vector.load %arg8[%c0_23, %c9, %c0_24] : memref<18x25x8xbf16, #tpu.memory_space<vmem>>, vector<16x16x8xbf16>
    %30 = vector.shape_cast %29 : vector<16x16x8xbf16> to vector<256x8xbf16>
    %c1 = arith.constant 1 : index
    %c7_25 = arith.constant 7 : index
    %c0_26 = arith.constant 0 : index
    %31 = vector.load %arg8[%c1, %c7_25, %c0_26] : memref<18x25x8xbf16, #tpu.memory_space<vmem>>, vector<16x16x8xbf16>
    %32 = vector.shape_cast %31 : vector<16x16x8xbf16> to vector<256x8xbf16>
    %c1_27 = arith.constant 1 : index
    %c8_28 = arith.constant 8 : index
    %c0_29 = arith.constant 0 : index
    %33 = vector.load %arg8[%c1_27, %c8_28, %c0_29] : memref<18x25x8xbf16, #tpu.memory_space<vmem>>, vector<16x16x8xbf16>
    %34 = vector.shape_cast %33 : vector<16x16x8xbf16> to vector<256x8xbf16>
    %c1_30 = arith.constant 1 : index
    %c9_31 = arith.constant 9 : index
    %c0_32 = arith.constant 0 : index
    %35 = vector.load %arg8[%c1_30, %c9_31, %c0_32] : memref<18x25x8xbf16, #tpu.memory_space<vmem>>, vector<16x16x8xbf16>
    %36 = vector.shape_cast %35 : vector<16x16x8xbf16> to vector<256x8xbf16>
    %c2 = arith.constant 2 : index
    %c7_33 = arith.constant 7 : index
    %c0_34 = arith.constant 0 : index
    %37 = vector.load %arg8[%c2, %c7_33, %c0_34] : memref<18x25x8xbf16, #tpu.memory_space<vmem>>, vector<16x16x8xbf16>
    %38 = vector.shape_cast %37 : vector<16x16x8xbf16> to vector<256x8xbf16>
    %c2_35 = arith.constant 2 : index
    %c8_36 = arith.constant 8 : index
    %c0_37 = arith.constant 0 : index
    %39 = vector.load %arg8[%c2_35, %c8_36, %c0_37] : memref<18x25x8xbf16, #tpu.memory_space<vmem>>, vector<16x16x8xbf16>
    %40 = vector.shape_cast %39 : vector<16x16x8xbf16> to vector<256x8xbf16>
    %c2_38 = arith.constant 2 : index
    %c9_39 = arith.constant 9 : index
    %c0_40 = arith.constant 0 : index
    %41 = vector.load %arg8[%c2_38, %c9_39, %c0_40] : memref<18x25x8xbf16, #tpu.memory_space<vmem>>, vector<16x16x8xbf16>
    %42 = vector.shape_cast %41 : vector<16x16x8xbf16> to vector<256x8xbf16>
    %43 = tpu.concatenate %26, %28, %30, %32, %34, %36, %38, %40, %42 in 1 : vector<256x8xbf16>, vector<256x8xbf16>, vector<256x8xbf16>, vector<256x8xbf16>, vector<256x8xbf16>, vector<256x8xbf16>, vector<256x8xbf16>, vector<256x8xbf16>, vector<256x8xbf16> -> vector<256x72xbf16>
    %c0_41 = arith.constant 0 : index
    %c0_42 = arith.constant 0 : index
    %44 = vector.load %arg5[%c0_41, %c0_42] : memref<72x32xbf16, #tpu.memory_space<vmem>>, vector<72x32xbf16>
    %cst_43 = arith.constant dense<0.000000e+00> : vector<256x32xf32>
    %45 = tpu.matmul %43, %44, %cst_43 {dimension_numbers = #tpu.dot_dimension_numbers<[1], [0], [0], [1], [0, 0, 1, 1], [], []>} : vector<256x72xbf16>, vector<72x32xbf16>, vector<256x32xf32> -> vector<256x32xf32>
    %c0_44 = arith.constant 0 : index
    %c0_45 = arith.constant 0 : index
    %46 = vector.load %arg6[%c0_44, %c0_45] : memref<1x32xf32, #tpu.memory_space<vmem>>, vector<1x32xf32>
    %47 = vector.broadcast %46 : vector<1x32xf32> to vector<256x32xf32>
    %48 = arith.addf %45, %47 : vector<256x32xf32>
    %cst_46 = arith.constant 0.000000e+00 : f32
    %49 = vector.broadcast %cst_46 : f32 to vector<256x32xf32>
    %50 = arith.maximumf %48, %49 : vector<256x32xf32>
    %51 = vector.shape_cast %50 : vector<256x32xf32> to vector<1x16x16x32xf32>
    %52 = arith.truncf %51 : vector<1x16x16x32xf32> to vector<1x16x16x32xbf16>
    %c0_47 = arith.constant 0 : index
    %c0_48 = arith.constant 0 : index
    %c0_49 = arith.constant 0 : index
    %c0_50 = arith.constant 0 : index
    %53 = vector.load %arg7[%c0_47, %c0_48, %c0_49, %c0_50] : memref<1x16x16x32xbf16, #tpu.memory_space<vmem>>, vector<1x16x16x32xbf16>
    tpu.vector_store %arg7[%c0_47, %c0_48, %c0_49, %c0_50], %52 {strides = array<i32>} : memref<1x16x16x32xbf16, #tpu.memory_space<vmem>>, vector<1x16x16x32xbf16>,
    return
  }
  func.func @transform_0(%arg0: i32, %arg1: i32) -> (i32, i32, i32, i32) {
    %c0_i32 = arith.constant 0 : i32
    %c0_i32_0 = arith.constant 0 : i32
    %c0_i32_1 = arith.constant 0 : i32
    %c0_i32_2 = arith.constant 0 : i32
    return %arg0, %c0_i32, %c0_i32_0, %c0_i32_1 : i32, i32, i32, i32
  }
  func.func @transform_1(%arg0: i32, %arg1: i32) -> (i32, i32) {
    %c0_i32 = arith.constant 0 : i32
    %c0_i32_0 = arith.constant 0 : i32
    %c0_i32_1 = arith.constant 0 : i32
    return %c0_i32, %c0_i32_0 : i32, i32
  }
  func.func @transform_2(%arg0: i32, %arg1: i32) -> (i32, i32) {
    %c0_i32 = arith.constant 0 : i32
    %c0_i32_0 = arith.constant 0 : i32
    %c0_i32_1 = arith.constant 0 : i32
    return %c0_i32, %c0_i32_0 : i32, i32
  }
  func.func @transform_3(%arg0: i32, %arg1: i32) -> (i32, i32) {
    %c0_i32 = arith.constant 0 : i32
    %c0_i32_0 = arith.constant 0 : i32
    %c0_i32_1 = arith.constant 0 : i32
    return %c0_i32, %c0_i32_0 : i32, i32
  }
  func.func @transform_4(%arg0: i32, %arg1: i32) -> (i32, i32) {
    %c0_i32 = arith.constant 0 : i32
    %c0_i32_0 = arith.constant 0 : i32
    %c0_i32_1 = arith.constant 0 : i32
    return %c0_i32, %c0_i32_0 : i32, i32
  }
  func.func @transform_5(%arg0: i32, %arg1: i32) -> (i32, i32, i32, i32) {
    %c0_i32 = arith.constant 0 : i32
    %c0_i32_0 = arith.constant 0 : i32
    %c0_i32_1 = arith.constant 0 : i32
    return %arg0, %arg1, %c0_i32, %c0_i32_0 : i32, i32, i32, i32
  }
}

</mosaic_0001>

<bundles_post_ra>
// kernel: tpu_custom_call.1
= control target key start
LH: loop header
LB: loop body
LE: loop exit
PB: predicated region body
PF: predicated region fallthrough
CT: control target
= control target key end

     0   :  { %s9069_s0 = inlined_call_operand.hbm [shape: bf16[2,18,16,4], index: 0, kind: input, shape index: {}]   ;;  %s9070_s1 = inlined_call_operand.hbm [shape: bf16[4,8], index: 1, kind: input, shape index: {}]   ;;  %s9071_s2 = inlined_call_operand.hbm [shape: f32[1,8], index: 2, kind: input, shape index: {}]   ;;  %s9072_s3 = inlined_call_operand.hbm [shape: bf16[72,32], index: 3, kind: input, shape index: {}]   ;;  %s9073_s4 = inlined_call_operand.hbm [shape: f32[1,32], index: 4, kind: input, shape index: {}]   ;;  %s9074_s5 = inlined_call_operand.hbm [shape: bf16[2,16,16,32], index: 5, kind: output, shape index: {}]  }
   0x1   :  { %9159 = sst [smem:[#allocation87_spill]] %s9070_s1 }
   0x2   :  { %10 = vsyncpa [#allocation4], 0 }
   0x3   :  { %12 = vsyncpa [#allocation4 + $0x1], 0 }
   0x4   :  { %13 = vsyncpa [#allocation7], 0 }
   0x5   :  { %14 = vsyncpa [#allocation10], 0 }
   0x6   :  { %15 = vsyncpa [#allocation5], 0 }
   0x7   :  { %17 = vsyncpa [#allocation5 + $0x1], 0  ;;  %s5595_s18 = smov 0   ;;  %s5597_s19 = smov 0  }
   0x8   :  { %s5599_s20 = smov 0   ;;  %s5601_s21 = smov 0  }
   0x9   :  { %s5603_s22 = smov 0   ;;  %s5605_s23 = smov 0  }
   0xa LB: > { %s4591_s24 = sadd.s32 4294967295, %s5545_s23   ;;  %s4592_s25 = sadd.s32 4294967294, %s5545_s23   ;;  %s5545_s23 = sphi %s5605_s23, %s23_s23   ;;  %s5541_s22 = sphi %s5603_s22, %s9681_s22   ;;  %s5537_s21 = sphi %s5601_s21, %s9680_s21   ;;  %s5533_s20 = sphi %s5599_s20, %s9679_s20   ;;  %s5529_s19 = sphi %s5597_s19, %s9678_s19   ;;  %s5525_s18 = sphi %s5595_s18, %s9677_s18  }
   0xb   : > { %p55_p0 = scmp.ne.s32.totalorder %s5529_s19, %s5525_s18  ;;  %p5629_p1 = scmp.eq.s32.totalorder %s4591_s24, 0 }
   0xc   : > { %p5633_p2 = scmp.eq.s32.totalorder %s4591_s24, 1  ;;  %p171_p3 = scmp.eq.s32.totalorder %s4592_s25, 1 }
   0xd   : > { %s9160_s26 = scalar_select %p5629_p1, 1, 0 }
   0xe   : > { %s9161_s27 = scalar_select %p5633_p2, 1, 0 }
   0xf   : > { %p5639_p4 = por %p5629_p1, %p55_p0  ;;  %p4593_p5 = scmp.ge.s32.totalorder %s5545_s23, 1 }
  0x10   : > { %p5644_p6 = por %p171_p3, %p55_p0  ;;  %p178_p7 = scmp.lt.s32.totalorder %s5545_s23, 3 }
  0x11   : > { %s9162_s28 = scalar_select %p5639_p4, 1, 0 }
  0x12   : > { %s9163_s29 = scalar_select %p5644_p6, 1, 0 }
  0x13   : > { %p5649_p8 = pnand %p4593_p5, %p178_p7  ;;  %s5547_s6 = smov [#allocation6]  }
  0x14   : > { %s191_s7 = sshll.u32 %s5547_s6, 4  ;;  %s5548_s8 = smov [#allocation9]   ;;  %s192_s7 = int_to_ptr.vmem [resolvable:$true] %s191_s7 }
  0x15   : > { %s9164_s30 = scalar_select %p5649_p8, 1, 0 }
  0x16   : > { %p5144_p10 = pneg %p5649_p8  ;;  %s212_s9 = sshll.u32 %s5548_s8, 4  ;;  %s5662_s9 = int_to_ptr.vmem [resolvable:$true] %s212_s9 }
  0x17   : > { %s5549_s11 = smov [#allocation8]   ;;  %s9166_s1 = sld [smem:[#allocation87_spill]] }
  0x18   : > { %p5658_p11 = pnand %p5144_p10, %p5629_p1  ;;  %s5664_s12 = sshll.u32 %s5549_s11, 4  ;;  %s203_s12 = int_to_ptr.vmem [resolvable:$true] %s5664_s12 }
  0x1a   : > { %p5674_p13 = pneg %p5658_p11 }
  0x1d   : > { %s5313_s15 = scalar_lea.hbm %s9166_s1, 32 }
  0x1e   : > { %p5314_p12 = scmp.ne.s32.totalorder %s9166_s1, %s5313_s15  ;;  %p5320_p5 = scmp.lt.u32.totalorder %s5313_s15, %s9166_s1 }
  0x20   : > { %p5316_p0 = pnand %p5674_p13, %p5314_p12 }
  0x22   : > { %p5317_p3 = pneg %p5316_p0 }
  0x24   : > { %p5322_p7 = pnand %p5320_p5, %p5317_p3 }
  0x26   : > { %5325 = shalt.err (!%p5322_p7)
}
  0x27   : > { %s5326_s8 = scalar_lea.vmem %s192_s7, 32  ;;  %p5334_p1 = scmp.lt.s32.totalorder %s192_s7, %s192_s7 }
  0x28   : > { %p5327_p10 = scmp.ne.s32.totalorder %s192_s7, %s5326_s8  ;;  %p5335_p4 = scmp.lt.s32.totalorder %s5326_s8, %s5326_s8 }
  0x2a   : > { %p5329_p9 = pnand %p5327_p10, %p5674_p13  ;;  %p5336_p8 = por %p5335_p4, %p5334_p1 }
  0x2c   : > { %p5330_p6 = pneg %p5329_p9 }
  0x2e   : > { %p5337_p2 = pnand %p5336_p8, %p5330_p6 }
  0x30   : > { %5340 = shalt.err (!%p5337_p2)
}
  0x31   : > { %5147 = dma.hbm_to_vmem [thread:$0]  (!%p5658_p11), %s9166_s1, 32, %s192_s7, [#allocation7]  }
  0x32   : > { %s5341_s16 = scalar_lea.hbm %s9072_s3, 576 }
  0x33   : > { %p5342_p9 = scmp.ne.s32.totalorder %s9072_s3, %s5341_s16  ;;  %p5348_p2 = scmp.lt.u32.totalorder %s5341_s16, %s9072_s3 }
  0x35   : > { %p5344_p12 = pnand %p5342_p9, %p5674_p13 }
  0x37   : > { %p5345_p1 = pneg %p5344_p12 }
  0x39   : > { %p5350_p4 = pnand %p5348_p2, %p5345_p1 }
  0x3b   : > { %5353 = shalt.err (!%p5350_p4)
}
  0x3c   : > { %s5354_s7 = scalar_lea.vmem %s5662_s9, 576  ;;  %p5362_p3 = scmp.lt.s32.totalorder %s5662_s9, %s5662_s9 }
  0x3d   : > { %p5355_p6 = scmp.ne.s32.totalorder %s5662_s9, %s5354_s7  ;;  %p5363_p5 = scmp.lt.s32.totalorder %s5354_s7, %s5354_s7 }
  0x3f   : > { %p5357_p8 = pnand %p5355_p6, %p5674_p13  ;;  %p5364_p7 = por %p5363_p5, %p5362_p3 }
  0x41   : > { %p5358_p0 = pneg %p5357_p8 }
  0x43   : > { %p5365_p10 = pnand %p5364_p7, %p5358_p0 }
  0x45   : > { %5368 = shalt.err (!%p5365_p10)
}
  0x46   : > { %s9079_s11 = smov 64   ;;  %s5551_s13 = smov 4  }
  0x47   : > { %5153 = dma.hbm_to_vmem [thread:$0]  (!%p5658_p11), %s9072_s3, 576, %s5662_s9, [#allocation10], %s9079_s11, %s9079_s11, %s5551_s13  }
  0x48   : > { %s5369_s25 = scalar_lea.hbm %s9071_s2, 16 }
  0x49   : > { %p5370_p9 = scmp.ne.s32.totalorder %s9071_s2, %s5369_s25  ;;  %p5376_p2 = scmp.lt.u32.totalorder %s5369_s25, %s9071_s2 }
  0x4b   : > { %p5372_p12 = pnand %p5370_p9, %p5674_p13 }
  0x4d   : > { %p5373_p1 = pneg %p5372_p12 }
  0x4f   : > { %p5378_p4 = pnand %p5376_p2, %p5373_p1 }
  0x51   : > { %5381 = shalt.err (!%p5378_p4)
}
  0x52   : > { %s5382_s14 = scalar_lea.vmem %s203_s12, 16  ;;  %s5389_s9 = scalar_lea.vmem %s203_s12, 32 }
  0x53   : > { %p5383_p6 = scmp.ne.s32.totalorder %s203_s12, %s5382_s14  ;;  %p5390_p3 = scmp.lt.s32.totalorder %s203_s12, %s203_s12 }
  0x54   : > { %p5391_p5 = scmp.lt.s32.totalorder %s5389_s9, %s5382_s14 }
  0x55   : > { %p5385_p8 = pnand %p5383_p6, %p5674_p13 }
  0x56   : > { %p5392_p7 = por %p5391_p5, %p5390_p3 }
  0x57   : > { %p5386_p0 = pneg %p5385_p8 }
  0x59   : > { %p5393_p10 = pnand %p5392_p7, %p5386_p0 }
  0x5b   : > { %5396 = shalt.err (!%p5393_p10)
}
  0x5c   : > { %5150 = dma.hbm_to_vmem [thread:$0]  (!%p5658_p11), %s9071_s2, 16, %s203_s12, [#allocation7]  }
  0x5d   : > { %s5552_s1 = smov [#allocation11]   ;;  %s5397_s8 = scalar_lea.hbm %s9073_s4, 16 }
  0x5e   : > { %s226_s17 = sshll.u32 %s5552_s1, 4  ;;  %p5398_p9 = scmp.ne.s32.totalorder %s9073_s4, %s5397_s8  ;;  %s227_s17 = int_to_ptr.vmem [resolvable:$true] %s226_s17 }
  0x5f   : > { %p5404_p2 = scmp.lt.u32.totalorder %s5397_s8, %s9073_s4 }
  0x60   : > { %p5400_p12 = pnand %p5398_p9, %p5674_p13 }
  0x62   : > { %p5401_p1 = pneg %p5400_p12 }
  0x64   : > { %p5406_p4 = pnand %p5404_p2, %p5401_p1 }
  0x66   : > { %5409 = shalt.err (!%p5406_p4)
}
  0x67   : > { %s5410_s12 = scalar_lea.vmem %s227_s17, 16  ;;  %s5417_s15 = scalar_lea.vmem %s227_s17, 32 }
  0x68   : > { %p5411_p6 = scmp.ne.s32.totalorder %s227_s17, %s5410_s12  ;;  %p5418_p3 = scmp.lt.s32.totalorder %s227_s17, %s227_s17 }
  0x69   : > { %p5419_p5 = scmp.lt.s32.totalorder %s5417_s15, %s5410_s12 }
  0x6a   : > { %p5413_p8 = pnand %p5411_p6, %p5674_p13 }
  0x6b   : > { %p5420_p7 = por %p5419_p5, %p5418_p3 }
  0x6c   : > { %p5414_p0 = pneg %p5413_p8 }
  0x6e   : > { %p5421_p10 = pnand %p5420_p7, %p5414_p0 }
  0x70   : > { %5424 = shalt.err (!%p5421_p10)
}
  0x71   : > { %5156 = dma.hbm_to_vmem [thread:$0]  (!%p5658_p11), %s9073_s4, 16, %s227_s17, [#allocation10]  }
  0x72   : > { %s35_s24 = sadd.s32 1, %s5541_s22  ;;  %s42_s1 = sadd.s32 1, %s5533_s20 }
  0x73   : > { %p37_p13 = scmp.ge.s32.totalorder %s35_s24, 2  ;;  %p49_p9 = scmp.ne.s32.totalorder %s5533_s20, %s5529_s19 }
  0x74   : > { %p50_p12 = scmp.eq.s32.totalorder %s5545_s23, 0  ;;  %p5169_p1 = scmp.lt.s32.totalorder %s5545_s23, 2 }
  0x75   : > { %s9683_s24 = smov (%p37_p13, %s35_s24), 0  ;;  %p9168_p4 = scmp.ne.s32.totalorder %s9161_s27, 0 }
  0x76   : > { %p51_p2 = por %p50_p12, %p49_p9  ;;  %s39_s25 = ssub.s32 %s5541_s22, %s9683_s24 }
  0x77   : > { %p5763_p6 = por %p9168_p4, %p49_p9  ;;  %s237_s6 = sand.u32 1, %s5533_s20  }
  0x78   : > { %p40_p8 = scmp.eq.s32.totalorder %s39_s25, 0  ;;  %s5121_s17 = smul.u32 144, %s237_s6 }
  0x79   : > { %p5770_p11 = pnand %p5169_p1, %p51_p2  ;;  %s5122_s14 = smul.u32 2304, %s5541_s22 }
  0x7a   : > { %s5775_s7 = scalar_select %p40_p8, %s5533_s20, %s42_s1  }
  0x7b   : > { %s241_s9 = scalar_lea.vmem [#allocation3], %s5121_s17  ;;  %s5781_s11 = scalar_lea.hbm %s9069_s0, %s5122_s14 }
  0x7c   : > { %s248_s12 = sshll.u32 %s241_s9, 4  ;;  %s5785_s16 = scalar_lea.sflag [#allocation4], %s237_s6  ;;  %s5783_s12 = int_to_ptr.vmem [resolvable:$true] %s248_s12 }
  0x7d   : > { %s5425_s25 = scalar_lea.hbm %s5781_s11, 2304  ;;  %p5427_p3 = pneg %p5770_p11 }
  0x7e   : > { %p5426_p0 = scmp.ne.s32.totalorder %s5781_s11, %s5425_s25  ;;  %s5430_s14 = scalar_lea.hbm %s9069_s0, 4608 }
  0x7f   : > { %p5431_p10 = scmp.lt.u32.totalorder %s5781_s11, %s9069_s0  ;;  %p5432_p13 = scmp.lt.u32.totalorder %s5430_s14, %s5425_s25 }
  0x80   : > { %p5428_p5 = pnand %p5427_p3, %p5426_p0  ;;  %p5434_p12 = scmp.lt.u32.totalorder %s5425_s25, %s5781_s11 }
  0x81   : > { %p5433_p9 = por %p5432_p13, %p5431_p10 }
  0x82   : > { %p5429_p7 = pneg %p5428_p5 }
  0x83   : > { %p5435_p1 = por %p5434_p12, %p5433_p9 }
  0x85   : > { %p5436_p2 = pnand %p5435_p1, %p5429_p7 }
  0x87   : > { %5439 = shalt.err (!%p5436_p2)
}
  0x88   : > { %s5440_s6 = scalar_lea.vmem %s5783_s12, 2304  ;;  %s5553_s15 = smov [#allocation3]  }
  0x89   : > { %p5441_p4 = scmp.ne.s32.totalorder %s5783_s12, %s5440_s6  ;;  %s5445_s1 = sshll.u32 %s5553_s15, 4  ;;  %s5446_s1 = int_to_ptr.vmem [resolvable:$false] %s5445_s1 }
  0x8a   : > { %s5447_s17 = scalar_lea.vmem %s5446_s1, 4608  ;;  %p5448_p5 = scmp.lt.s32.totalorder %s5783_s12, %s5446_s1 }
  0x8b   : > { %p5443_p8 = pnand %p5441_p4, %p5427_p3  ;;  %p5449_p10 = scmp.lt.s32.totalorder %s5447_s17, %s5440_s6 }
  0x8d   : > { %p5444_p0 = pneg %p5443_p8  ;;  %p5450_p13 = por %p5449_p10, %p5448_p5 }
  0x8f   : > { %p5451_p9 = pnand %p5450_p13, %p5444_p0 }
  0x91   : > { %5454 = shalt.err (!%p5451_p9)
}
  0x92   : > { %s9171_s25 = smov 64   ;;  %p9172_p3 = scmp.ne.s32.totalorder %s9164_s30, 0 }
  0x93   : > { %5160 = dma.hbm_to_vmem [thread:$0]  (!%p5770_p11), %s5781_s11, 2304, %s5783_s12, %s5785_s16, %s9171_s25, %s9171_s25, %s5551_s13  }
  0x94   : > { %260 = sbr.rel (%p9172_p3) target bundleno = 1141 (0x475), region = 40 }
  0x9b   : > { %s5819_s14 = sand.u32 1, %s5529_s19   ;;  %p9173_p7 = scmp.ne.s32.totalorder %s9162_s28, 0 }
  0x9c   : > { %s5123_s9 = smul.u32 144, %s5819_s14  ;;  %s263_s27 = scalar_lea.sflag [#allocation4], %s5819_s14 }
  0x9e   : > { %s5823_s6 = scalar_lea.vmem [#allocation3], %s5123_s9 }
  0x9f   : > { %5508 = dma.done.wait (%p9173_p7), %s263_s27, 2304  }
  0xa0   : > { %5510 = vsyncadd (%p9173_p7), %s263_s27, 4294964992  ;;  %p9174_p11 = scmp.ne.s32.totalorder %s9160_s26, 0 }
  0xa2   : > { %5512 = dma.done.wait (%p9174_p11), [#allocation7], 48  }
  0xa3   : > { %5514 = vsyncadd (%p9174_p11), [#allocation7], 4294967248 }
  0xa4   : > { %5516 = dma.done.wait (%p9174_p11), [#allocation10], 592  }
  0xa5   : > { %5518 = vsyncadd (%p9174_p11), [#allocation10], 4294966704  ;;  %vm504_vm0 = vcmask 1041408   ;;  %vm449_vm1 = vcmask 31744   ;;  %v351_v0 = vld [vmem:[#allocation6] sm:$0x3] }
  0xa6   : > { %5119 = vmatprep.subr.msk.bf16.mxu0 %vm504_vm0, %v351_v0  ;;  %v506_v1 = vsel %vm504_vm0, %v351_v0, 0  ;;  %v5239_v2 = vld [vmem:[%s5823_s6] sm:$0xff]   ;;  %v5240_v3 = vld [vmem:[%s5823_s6 + $0x8] sm:$0xff]   ;;  %v5241_v4 = vld [vmem:[%s5823_s6 + $0x10] sm:$0xff]   ;;  %vm739_vm2 = vcmask 60419   ;;  %v9175_v18 = vmov 0 }
  0xa7   : > { %5040 = vmatpush3.bf16.msra.mxu0 %v506_v1  ;;  %5041 = vmatprep.mubr.msk.bf16.mxu0 %vm449_vm1, %v5239_v2  ;;  %v5242_v5 = vld [vmem:[%s5823_s6 + $0x18] sm:$0xff]   ;;  %v5243_v6 = vld [vmem:[%s5823_s6 + $0x20] sm:$0xff]   ;;  %v5244_v7 = vld [vmem:[%s5823_s6 + $0x28] sm:$0xff]   ;;  %vm740_vm3 = vsmask.f32 7950  ;;  %vm796_vm6 = vcmask 57344  }
  0xa8   : > { %v5245_v8 = vld [vmem:[%s5823_s6 + $0x30] sm:$0xff]   ;;  %v5246_v9 = vld [vmem:[%s5823_s6 + $0x38] sm:$0xff]   ;;  %v5247_v10 = vld [vmem:[%s5823_s6 + $0x40] sm:$0xff]   ;;  %vm797_vm5 = vsmask.f32 256  ;;  %v9178_v23 = vmov 0 }
  0xa9   : > { %v5248_v11 = vld [vmem:[%s5823_s6 + $0x48] sm:$0xff]   ;;  %v5249_v12 = vld [vmem:[%s5823_s6 + $0x50] sm:$0xff]   ;;  %v5250_v13 = vld [vmem:[%s5823_s6 + $0x58] sm:$0xff]   ;;  %vm979_vm8 = vcmask 60416   ;;  %vm1073_vm9 = vsmask.f32 4368 }
  0xaa   : > { %5042 = vmatmul.mubr.msk.bf16.vlgmr.msra.gmra.mrb[0].mxu0 %vm449_vm1, %v5240_v3  ;;  %v5251_v14 = vld [vmem:[%s5823_s6 + $0x60] sm:$0xff]   ;;  %v5252_v15 = vld [vmem:[%s5823_s6 + $0x68] sm:$0xff]   ;;  %v5253_v16 = vld [vmem:[%s5823_s6 + $0x70] sm:$0xff]   ;;  %s5555_s26 = smov 8   ;;  %vm1443_vm10 = vsmask.f32 3328 }
  0xab   : > { %5045 = vmatprep.mubr.msk.bf16.mxu0 %vm449_vm1, %v5241_v4  ;;  %v5254_v17 = vld [vmem:[%s5823_s6 + $0x78] sm:$0xff]   ;;  %vm5869_vm4 = vmand %vm739_vm2, %vm740_vm3  ;;  %v745_v19 = vld [vmem:[#allocation2 + $0x10] sm:$0x8]  ;;  %vm1444_vm11 = vsmask.f32 7440  ;;  %s5556_s28 = smov 32  }
  0xac   : > { %v9176_v18 = vsel %vm5869_vm4, 4294967295, %v9175_v18  ;;  %v746_v20 = vsel %vm5869_vm4, 0, %v745_v19  ;;  %v5255_v21 = vld [vmem:[%s5823_s6 + $0x80] sm:$0xff]   ;;  %v5256_v22 = vld [vmem:[%s5823_s6 + $0x88] sm:$0xff]   ;;  %vm5880_vm7 = vmand %vm796_vm6, %vm797_vm5  ;;  %s5557_s30 = smov 56   ;;  %s5558_s13 = smov 24  }
  0xad   : > { %9177 = vst [vmem:[#allocation17_spill] sm:$0xff] %v9176_v18  ;;  %747 = vst [vmem:[#allocation2 + $0x10] sm:$0x8] %v746_v20  ;;  %v9179_v23 = vsel %vm5880_vm7, 4294967295, %v9178_v23  ;;  %v802_v24 = vld [vmem:[#allocation2 + $0x1c] sm:$0x1] }
  0xae   : > { %9180 = vst [vmem:[#allocation18_spill] sm:$0xff] %v9179_v23  ;;  %v803_v25 = vsel %vm5880_vm7, 0, %v802_v24  ;;  %v751_v26 = vld [vmem:[#allocation2 + $0x30] sm:$0x8]  ;;  %v748_v28 = vld [vmem:[#allocation2 + $0x20] sm:$0x8]  ;;  %vm6086_vm12 = vmor %vm797_vm5, %vm1073_vm9 }
  0xaf   : > { %804 = vst [vmem:[#allocation2 + $0x1c] sm:$0x1] %v803_v25  ;;  %v752_v27 = vsel %vm5869_vm4, 0, %v751_v26  ;;  %v749_v29 = vsel %vm5869_vm4, 0, %v748_v28  ;;  %v808_v30 = vld [vmem:[#allocation2 + $0x3c] sm:$0x1]  ;;  %vm6126_vm13 = vmor %vm1443_vm10, %vm1444_vm11 }
  0xb0   : > { %753 = vst [vmem:[#allocation2 + $0x30] sm:$0x8] %v752_v27  ;;  %750 = vst [vmem:[#allocation2 + $0x20] sm:$0x8] %v749_v29  ;;  %v809_v31 = vsel %vm5880_vm7, 0, %v808_v30  ;;  %s5559_s8 = smov 16  }
  0xb1   : > { %810 = vst [vmem:[#allocation2 + $0x3c] sm:$0x1] %v809_v31  ;;  %v799_v32 = vld [vmem:[#allocation2 + $0xc] sm:$0x1]  ;;  %v757_v36 = vld [vmem:[#allocation2 + $0x50] sm:$0x8] }
  0xb2   : > { %5046 = vmatmul.mubr.msk.bf16.gmra.mrb[4].mxu0 %vm449_vm1, %v5242_v5  ;;  %v800_v33 = vsel %vm5880_vm7, 0, %v799_v32  ;;  %v805_v34 = vld [vmem:[#allocation2 + $0x2c] sm:$0x1]  ;;  %v758_v37 = vsel %vm5869_vm4, 0, %v757_v36  ;;  %v754_v38 = vld [vmem:[#allocation2 + $0x40] sm:$0x8] }
  0xb3   : > { %5049 = vmatprep.mubr.msk.bf16.mxu0 %vm449_vm1, %v5243_v6  ;;  %801 = vst [vmem:[#allocation2 + $0xc] sm:$0x1] %v800_v33  ;;  %v806_v35 = vsel %vm5880_vm7, 0, %v805_v34  ;;  %759 = vst [vmem:[#allocation2 + $0x50] sm:$0x8] %v758_v37  ;;  %v755_v39 = vsel %vm5869_vm4, 0, %v754_v38 }
  0xb4   : > { %807 = vst [vmem:[#allocation2 + $0x2c] sm:$0x1] %v806_v35  ;;  %756 = vst [vmem:[#allocation2 + $0x40] sm:$0x8] %v755_v39  ;;  %v814_v40 = vld [vmem:[#allocation2 + $0x5c] sm:$0x1] }
  0xb5   : > { %v811_v41 = vld [vmem:[#allocation2 + $0x4c] sm:$0x1]  ;;  %v815_v42 = vsel %vm5880_vm7, 0, %v814_v40  ;;  %v1671_v44 = vld [vmem:[#allocation2 + $0x10] sm:$0x8]  ;;  %s5560_s12 = smov 40  }
  0xb6   : > { %v812_v43 = vsel %vm5880_vm7, 0, %v811_v41  ;;  %816 = vst [vmem:[#allocation2 + $0x5c] sm:$0x1] %v815_v42  ;;  %v1428_v45 = vld [vmem:[#allocation2 + $0x1c] sm:$0x1]  ;;  %v1720_v53 = vshrl.u32 %v1671_v44, 16 }
  0xb7   : > { %813 = vst [vmem:[#allocation2 + $0x4c] sm:$0x1] %v812_v43  ;;  %v2071_v46 = vld [vmem:[#allocation2 + $0x1c] sm:$0x1]  ;;  %v1677_v47 = vld [vmem:[#allocation2 + $0x30] sm:$0x8] }
  0xb8   : > { %v2312_v48 = vld [vmem:[#allocation2 + $0x20] sm:$0x8]  ;;  %v2315_v49 = vld [vmem:[#allocation2 + $0x30] sm:$0x8]  ;;  %v2713_v52 = vld [vmem:[#allocation2 + $0x3c] sm:$0x1] }
  0xb9   : > { %v1674_v51 = vld [vmem:[#allocation2 + $0x20] sm:$0x8]  ;;  %v1470_v54 = vshll.u32 %v1428_v45, 16  ;;  %v2073_v55 = vld [vmem:[#allocation2 + $0x3c] sm:$0x1]  ;;  %v2097_v56 = vshll.u32 %v2071_v46, 16 }
  0xba   : > { %5050 = vmatmul.mubr.msk.bf16.gmra.mrb[8].mxu0 %vm449_vm1, %v5244_v7  ;;  %v1427_v50 = vld [vmem:[#allocation2 + $0xc] sm:$0x1]  ;;  %v1764_v57 = vshrl.u32 %v1677_v47, 16  ;;  %v2383_v58 = vshrl.u32 %v2315_v49, 16  ;;  %v2361_v60 = vshrl.u32 %v2312_v48, 16  ;;  %v1742_v61 = vshrl.u32 %v1674_v51, 16 }
  0xbb   : > { %5053 = vmatprep.mubr.msk.bf16.mxu0 %vm449_vm1, %v5245_v8  ;;  %v1456_v59 = vshll.u32 %v1427_v50, 16  ;;  %v2752_v62 = vshll.u32 %v2713_v52, 16  ;;  %v1430_v63 = vld [vmem:[#allocation2 + $0x3c] sm:$0x1]  ;;  %v2125_v0 = vshll.u32 %v2073_v55, 16  ;;  %v5904_v1 = vrot.slane %v1720_v53, 11 }
  0xbc   : > { %v5906_v2 = vrot.slane %v1470_v54, 5  ;;  %v2712_v3 = vld [vmem:[#allocation2 + $0x2c] sm:$0x1]  ;;  %v5908_v4 = vrot.slane %v2097_v56, 5  ;;  %v5910_v5 = vrot.slane %v1764_v57, 11  ;;  %v5912_v6 = vrot.slane %v2383_v58, 11 }
  0xbd   : > { %v1498_v7 = vshll.u32 %v1430_v63, 16  ;;  %v5914_v8 = vld [vmem:[#allocation8] ss:$0 sm:$0xff]  ;;  %v2072_v19 = vld [vmem:[#allocation2 + $0x2c] sm:$0x1]  ;;  %s5561_s11 = smov 48  }
  0xbe   : > { %v2321_v20 = vld [vmem:[#allocation2 + $0x50] sm:$0x8]  ;;  %v2318_v24 = vld [vmem:[#allocation2 + $0x40] sm:$0x8]  ;;  %v2111_v36 = vshll.u32 %v2072_v19, 16  ;;  %s5562_s16 = smov 64  }
  0xbf   : > { %v763_v25 = vld [vmem:[#allocation2 + $0x70] sm:$0x8]  ;;  %v1680_v29 = vld [vmem:[#allocation2 + $0x40] sm:$0x8]  ;;  %v2405_v40 = vshrl.u32 %v2318_v24, 16  ;;  %v2427_v41 = vshrl.u32 %v2321_v20, 16 }
  0xc0   : > { %v764_v30 = vsel %vm5869_vm4, 0, %v763_v25  ;;  %v1786_v44 = vshrl.u32 %v1680_v29, 16  ;;  %v2715_v45 = vld [vmem:[#allocation2 + $0x5c] sm:$0x1]  ;;  %v760_v50 = vld [vmem:[#allocation2 + $0x60] sm:$0x8] }
  0xc1   : > { %765 = vst [vmem:[#allocation2 + $0x70] sm:$0x8] %v764_v30  ;;  %v2075_v46 = vld [vmem:[#allocation2 + $0x5c] sm:$0x1]  ;;  %v5940_v54 = vrot.slane %v2111_v36, 5  ;;  %v761_v56 = vsel %vm5869_vm4, 0, %v760_v50 }
  0xc2   : > { %5054 = vmatmul.mubr.msk.bf16.gmra.mrb[12].mxu0 %vm449_vm1, %v5246_v9  ;;  %v5916_v9 = vrot.slane %v1456_v59, 5  ;;  %v1432_v55 = vld [vmem:[#allocation2 + $0x5c] sm:$0x1]  ;;  %v2780_v59 = vshll.u32 %v2715_v45, 16  ;;  %762 = vst [vmem:[#allocation2 + $0x60] sm:$0x8] %v761_v56 }
  0xc3   : > { %5057 = vmatprep.mubr.msk.bf16.mxu0 %vm449_vm1, %v5247_v10  ;;  %v5918_v10 = vrot.slane %v2361_v60, 11  ;;  %9185 = vst [vmem:[#allocation23_spill] sm:$0xff] %v5940_v54  ;;  %v2153_v60 = vshll.u32 %v2075_v46, 16  ;;  %v1431_v19 = vld [vmem:[#allocation2 + $0x4c] sm:$0x1]  ;;  %vm3736_vm14 = vcmask 64512  }
  0xc4   : > { %v2074_v20 = vld [vmem:[#allocation2 + $0x4c] sm:$0x1]  ;;  %v1512_v36 = vshll.u32 %v1431_v19, 16  ;;  %vm3785_vm15 = vcmask 130048   ;;  %vm3818_vm0 = vcmask 195584   ;;  %vm3884_vm2 = vcmask 326656  }
  0xc5   : > { %vm3917_vm3 = vcmask 392192   ;;  %vm3950_vm5 = vcmask 457728   ;;  %vm3983_vm6 = vcmask 523264   ;;  %vm4059_vm9 = vcmask 588800   ;;  %s4605_s15 = sshll.u32 %s5819_s14, 7  ;;  %s4998_s17 = sshll.u32 %s5537_s21, 11 }
  0xc6   : > { %vm4092_vm10 = vcmask 1043456   ;;  %s8888_s1 = scalar_lea.vmem [#allocation12], %s4605_s15  ;;  %s9010_s6 = scalar_lea.hbm %s9074_s5, %s4998_s17 }
  0xc7   : > { %s4467_s25 = sshll.u32 %s8888_s1, 4  ;;  %s4451_s21 = scalar_lea.sflag [#allocation5], %s5819_s14  ;;  %s9014_s25 = int_to_ptr.vmem [resolvable:$true] %s4467_s25 }
  0xca   : > { %5058 = vmatmul.mubr.msk.bf16.gmra.mrb[16].mxu0 %vm449_vm1, %v5248_v11  ;;  %v5920_v11 = vrot.slane %v1742_v61, 11  ;;  %v2714_v61 = vld [vmem:[#allocation2 + $0x4c] sm:$0x1] }
  0xcb   : > { %5061 = vmatprep.mubr.msk.bf16.mxu0 %vm449_vm1, %v5249_v12  ;;  %v5922_v12 = vrot.slane %v2752_v62, 5  ;;  %v2766_v25 = vshll.u32 %v2714_v61, 16  ;;  %v5981_v61 = vrot.slane %v1512_v36, 5 }
  0xcd   : > { %9194 = vst [vmem:[#allocation32_spill] sm:$0xff] %v5981_v61 }
  0xd2   : > { %5062 = vmatmul.mubr.msk.bf16.gmra.mrb[20].mxu0 %vm449_vm1, %v5250_v13  ;;  %v5924_v13 = vrot.slane %v2125_v0, 5  ;;  %v5948_v0 = vrot.slane %v2405_v40, 11 }
  0xd3   : > { %5065 = vmatprep.mubr.msk.bf16.mxu0 %vm449_vm1, %v5251_v14  ;;  %v2738_v14 = vshll.u32 %v2712_v3, 16  ;;  %v5950_v3 = vrot.slane %v2427_v41, 11 }
  0xd4   : > { %9187 = vst [vmem:[#allocation25_spill] sm:$0xff] %v5948_v0 }
  0xd5   : > { %v5932_v34 = vrot.slane %v2738_v14, 5  ;;  %9188 = vst [vmem:[#allocation26_spill] sm:$0xff] %v5950_v3  ;;  %v9080_v14 = vmov 0  }
  0xd7   : > { %9182 = vst [vmem:[#allocation20_spill] sm:$0xff] %v5932_v34 }
  0xda   : > { %5066 = vmatmul.mubr.msk.bf16.gmra.mrb[24].mxu0 %vm449_vm1, %v5252_v15  ;;  %v1429_v15 = vld [vmem:[#allocation2 + $0x2c] sm:$0x1] }
  0xdb   : > { %5069 = vmatprep.mubr.msk.bf16.mxu0 %vm449_vm1, %v5253_v16  ;;  %v1028_v16 = vld [vmem:[#allocation2 + $0x10] sm:$0x8]  ;;  %v1484_v28 = vshll.u32 %v1429_v15, 16 }
  0xdc   : > { %v1098_v31 = vshrl.u32 %v1028_v16, 16 }
  0xdd   : > { %v5936_v49 = vrot.slane %v1484_v28, 5 }
  0xde   : > { %v5938_v51 = vrot.slane %v1098_v31, 11  ;;  %v5963_v31 = vrot.slane %v2780_v59, 5 }
  0xdf   : > { %9183 = vst [vmem:[#allocation21_spill] sm:$0xff] %v5936_v49 }
  0xe0   : > { %9184 = vst [vmem:[#allocation22_spill] sm:$0xff] %v5938_v51  ;;  %9190 = vst [vmem:[#allocation28_spill] sm:$0xff] %v5963_v31 }
  0xe2   : > { %5070 = vmatmul.mubr.msk.bf16.gmra.mrb[28].mxu0 %vm449_vm1, %v5254_v17  ;;  %v1683_v17 = vld [vmem:[#allocation2 + $0x50] sm:$0x8] }
  0xe3   : > { %5073 = vmatprep.mubr.msk.bf16.mxu0 %vm449_vm1, %v5255_v21  ;;  %v1808_v35 = vshrl.u32 %v1683_v17, 16  ;;  %v1526_v17 = vshll.u32 %v1432_v55, 16 }
  0xe5   : > { %v5945_v58 = vrot.slane %v1808_v35, 11  ;;  %v5977_v59 = vrot.slane %v1526_v17, 5 }
  0xe7   : > { %9186 = vst [vmem:[#allocation24_spill] sm:$0xff] %v5945_v58  ;;  %9192 = vst [vmem:[#allocation30_spill] sm:$0xff] %v5977_v59 }
  0xea   : > { %5074 = vmatmul.mubr.msk.bf16.gmra.mrb[32].mxu0 %vm449_vm1, %v5256_v22  ;;  %v5926_v22 = vrot.slane %v1498_v7, 5  ;;  %v5952_v7 = vrot.slane %v1786_v44, 11  ;;  %vm3851_vm1 = vcmask 261120  }
  0xec   : > { %9181 = vst [vmem:[#allocation19_spill] sm:$0xff] %v5926_v22  ;;  %9189 = vst [vmem:[#allocation27_spill] sm:$0xff] %v5952_v7 }
 0x17d   : > { %v5043_v21 = vpop.f32.mrb[0].mxu0 }
 0x17e   : > { %v551_v26 = vadd.f32 %v5043_v21, %v5914_v8  ;;  %v542_v27 = vpop.f32.mrb[1].mxu0 }
 0x17f   : > { %v543_v32 = vadd.f32 %v5914_v8, %v542_v27  ;;  %v5044_v33 = vpop.f32.mrb[2].mxu0  ;;  %v2327_v27 = vld [vmem:[#allocation2 + $0x70] sm:$0x8] }
 0x180   : > { %v687_v37 = vmax.f32 %v551_v26, 0.0  ;;  %v554_v38 = vadd.f32 %v5044_v33, %v5914_v8  ;;  %v545_v39 = vpop.f32.mrb[3].mxu0  ;;  %v1689_v26 = vld [vmem:[#allocation2 + $0x70] sm:$0x8]  ;;  %v2471_v41 = vshrl.u32 %v2327_v27, 16 }
 0x181   : > { %v685_v42 = vmax.f32 %v543_v32, 0.0  ;;  %v546_v43 = vadd.f32 %v5914_v8, %v545_v39  ;;  %v5965_v32 = vrot.slane %v2153_v60, 5  ;;  %v1852_v40 = vshrl.u32 %v1689_v26, 16 }
 0x182   : > { %v4932_v47 = vpack.c.bf16 %v687_v37, %v687_v37  ;;  %v688_v48 = vmax.f32 %v554_v38, 0.0  ;;  %v2139_v37 = vshll.u32 %v2074_v20, 16  ;;  %v5979_v60 = vrot.slane %v2766_v25, 5 }
 0x183   : > { %v4930_v52 = vpack.c.bf16 %v685_v42, %v685_v42  ;;  %v686_v53 = vmax.f32 %v546_v43, 0.0  ;;  %9191 = vst [vmem:[#allocation29_spill] sm:$0xff] %v5965_v32  ;;  %v820_v42 = vld [vmem:[#allocation2 + $0x7c] sm:$0x1]  ;;  %v5990_v19 = vrot.slane %v1852_v40, 11  ;;  %v5996_v25 = vrot.slane %v2471_v41, 11 }
 0x184   : > { %982 = vst.msk [vmem:[#allocation2 + $0x14] sm:$0xf] %vm979_vm8, %v4932_v47  ;;  %v4933_v57 = vpack.c.bf16 %v688_v48, %v688_v48  ;;  %v821_v47 = vsel %vm5880_vm7, 0, %v820_v42  ;;  %9193 = vst [vmem:[#allocation31_spill] sm:$0xff] %v5979_v60  ;;  %v5992_v20 = vrot.slane %v2139_v37, 5 }
 0x185   : > { %980 = vst.msk [vmem:[#allocation2 + $0x4] sm:$0xf] %vm979_vm8, %v4930_v52  ;;  %v4931_v62 = vpack.c.bf16 %v686_v53, %v686_v53  ;;  %v5047_v63 = vpop.f32.mrb[4].mxu0  ;;  %822 = vst [vmem:[#allocation2 + $0x7c] sm:$0x1] %v821_v47 }
 0x186   : > { %1020 = vst.msk [vmem:[#allocation2 + $0x4] sm:$0xf] %vm979_vm8, %v9080_v14  ;;  %983 = vst.msk [vmem:[#allocation2 + $0x18] sm:$0xf] %vm979_vm8, %v4933_v57  ;;  %v567_v15 = vadd.f32 %v5047_v63, %v5914_v8  ;;  %v558_v16 = vpop.f32.mrb[5].mxu0 }
 0x187   : > { %981 = vst.msk [vmem:[#allocation2 + $0x8] sm:$0xf] %vm979_vm8, %v4931_v62  ;;  %v559_v21 = vadd.f32 %v5914_v8, %v558_v16  ;;  %v5048_v24 = vpop.f32.mrb[6].mxu0  ;;  %9196 = vst [vmem:[#allocation34_spill] sm:$0xff] %v5990_v19 }
 0x188   : > { %1021 = vst.msk [vmem:[#allocation2 + $0x8] sm:$0xf] %vm979_vm8, %v9080_v14  ;;  %v691_v28 = vmax.f32 %v567_v15, 0.0  ;;  %v570_v29 = vadd.f32 %v5048_v24, %v5914_v8  ;;  %v561_v30 = vpop.f32.mrb[7].mxu0  ;;  %9197 = vst [vmem:[#allocation35_spill] sm:$0xff] %v5992_v20 }
 0x189   : > { %v689_v33 = vmax.f32 %v559_v21, 0.0  ;;  %v562_v35 = vadd.f32 %v5914_v8, %v561_v30  ;;  %9198 = vst [vmem:[#allocation36_spill] sm:$0xff] %v5996_v25 }
 0x18a   : > { %v4936_v38 = vpack.c.bf16 %v691_v28, %v691_v28  ;;  %v692_v39 = vmax.f32 %v570_v29, 0.0 }
 0x18b   : > { %v4934_v43 = vpack.c.bf16 %v689_v33, %v689_v33  ;;  %v690_v44 = vmax.f32 %v562_v35, 0.0  ;;  %v1029_v45 = vld [vmem:[#allocation2 + $0x14] sm:$0xf] }
 0x18c   : > { %v5968_v46 = vld [vmem:[#allocation2 + $0x14] sm:$0xf]  ;;  %986 = vst.msk [vmem:[#allocation2 + $0x34] sm:$0xf] %vm979_vm8, %v4936_v38  ;;  %v4937_v48 = vpack.c.bf16 %v692_v39, %v692_v39  ;;  %v1103_v50 = vshrl.u32 %v1029_v45, 16  ;;  %v1106_v52 = vshll.u32 %v1029_v45, 16 }
 0x18d   : > { %v1725_v53 = vshrl.u32 %v5968_v46, 16  ;;  %984 = vst.msk [vmem:[#allocation2 + $0x24] sm:$0xf] %vm979_vm8, %v4934_v43  ;;  %v4935_v55 = vpack.c.bf16 %v690_v44, %v690_v44  ;;  %v1030_v56 = vld [vmem:[#allocation2 + $0x18] sm:$0xf]  ;;  %v5975_v57 = vpop.f32.mrb[8].mxu0 }
 0x18e   : > { %987 = vst.msk [vmem:[#allocation2 + $0x38] sm:$0xf] %vm979_vm8, %v4937_v48  ;;  %v5984_v62 = vrot.slane %v1103_v50, 7  ;;  %v4744_v63 = vcombine.low %v1029_v45, %v1030_v56  ;;  %v5986_v15 = vld [vmem:[#allocation2 + $0x18] sm:$0xf]  ;;  %v5988_v16 = vpop.f32.mrb[9].mxu0 }
 0x18f   : > { %985 = vst.msk [vmem:[#allocation2 + $0x28] sm:$0xf] %vm979_vm8, %v4935_v55  ;;  %v1112_v17 = vshrl.u32 %v1030_v56, 16  ;;  %v1115_v21 = vshll.u32 %v1030_v56, 16  ;;  %v6001_v27 = vrot.slane %v1103_v50, 4  ;;  %v6003_v28 = vrot.slane %v1106_v52, 5 }
 0x190   : > { %9195 = vst [vmem:[#allocation33_spill] sm:$0xff] %v5984_v62  ;;  %v5999_v26 = vor.u32 %v1106_v52, %v5984_v62  ;;  %3082 = vrot.lane.b32.xlu0 %v4744_v63, %s5555_s26  ;;  %v6006_v29 = vrot.slane %v1725_v53, 7  ;;  %v1026_v30 = vld [vmem:[#allocation2 + $0x4] sm:$0xf]  ;;  %v6008_v33 = vpop.f32.mrb[10].mxu0  ;;  %v1734_v37 = vshrl.u32 %v5986_v15, 16  ;;  %v4791_v42 = vcombine.low %v5968_v46, %v5986_v15 }
 0x191   : > { %v1114_v36 = vrot.slane %v1112_v17, 7  ;;  %v6012_v38 = vld [vmem:[#allocation2 + $0x8] sm:$0xf]  ;;  %v6014_v39 = vpop.f32.mrb[11].mxu0  ;;  %v6017_v41 = vrot.slane %v1725_v53, 4  ;;  %v6024_v45 = vrot.slane %v1115_v21, 5 }
 0x192   : > { %9199 = vst [vmem:[#allocation37_spill] sm:$0xff] %v5999_v26  ;;  %v1090_v43 = vshrl.u32 %v6012_v38, 16  ;;  %v1081_v48 = vshrl.u32 %v1026_v30, 16  ;;  %v4743_v56 = vcombine.low %v1026_v30, %v6012_v38  ;;  %v1084_v14 = vshll.u32 %v1026_v30, 16 }
 0x193   : > { %v6022_v44 = vor.u32 %v1115_v21, %v1114_v36  ;;  %v2316_v47 = vld [vmem:[#allocation2 + $0x34] sm:$0xf]  ;;  %v1466_v40 = vrot.slane %v1112_v17, 4  ;;  %v1736_v24 = vrot.slane %v1734_v37, 7  ;;  %v9202_v55 = vshll.u32 %v5968_v46, 16 }
 0x194   : > { %v6026_v50 = vld [vmem:[#allocation2 + $0x34] sm:$0xf]  ;;  %3352 = vrot.lane.b32.xlu0 %v4791_v42, %s5556_s28  ;;  %v2388_v52 = vshrl.u32 %v2316_v47, 16  ;;  %v1092_v53 = vrot.slane %v1090_v43, 7  ;;  %v2391_v36 = vshll.u32 %v2316_v47, 16  ;;  %v6033_v21 = vrot.slane %v1081_v48, 7 }
 0x195   : > { %9200 = vst [vmem:[#allocation38_spill] sm:$0xff] %v6022_v44  ;;  %v6031_v63 = vld [vmem:[#allocation2 + $0x38] sm:$0xf]  ;;  %v6039_v23 = vpop.f32.mrb[12].mxu0  ;;  %v6043_v62 = vrot.slane %v9202_v55, 5  ;;  %v9203_v51 = vshll.u32 %v6012_v38, 16 }
 0x196   : > { %9201 = vst [vmem:[#allocation39_spill] sm:$0xff] %v6033_v21  ;;  %v6036_v18 = vrot.slane %v2388_v52, 7  ;;  %v4840_v42 = vcombine.low %v2316_v47, %v6031_v63  ;;  %v2397_v44 = vshrl.u32 %v6031_v63, 16  ;;  %v6051_v30 = vor.u32 %v1084_v14, %v6033_v21  ;;  %v6053_v17 = vld [vmem:[#allocation2 + $0x38] sm:$0xf] }
 0x197   : > { %v6048_v26 = vor.u32 %v9203_v51, %v1092_v53  ;;  %v6055_v35 = vrot.slane %v1734_v37, 4  ;;  %v6058_v47 = vrot.slane %v1090_v43, 4  ;;  %v9206_v55 = vshrl.u32 %v6026_v50, 16  ;;  %v6066_v53 = vpop.f32.mrb[13].mxu0 }
 0x198   : > { %9205 = vst [vmem:[#allocation41_spill] sm:$0xff] %v6051_v30  ;;  %3626 = vrot.lane.b32.xlu1 %v4840_v42, %s5557_s30  ;;  %3080 = vrot.lane.b32.xlu0 %v4743_v56, %s5555_s26  ;;  %v1150_v51 = vshll.u32 %v6026_v50, 16  ;;  %v6068_v30 = vrot.slane %v2388_v52, 4  ;;  %v2400_v37 = vshll.u32 %v6031_v63, 16  ;;  %v6073_v21 = vrot.slane %v1081_v48, 4  ;;  %v6096_v25 = vpop.f32.mrb[14].mxu0 }
 0x199   : > { %9204 = vst [vmem:[#allocation40_spill] sm:$0xff] %v6048_v26  ;;  %v6063_v20 = vrot.slane %v9206_v55, 7  ;;  %v6070_v26 = vrot.slane %v2391_v36, 5  ;;  %v6076_v43 = vor.u32 %v2391_v36, %v6036_v18  ;;  %v4746_v42 = vcombine.low %v6026_v50, %v6053_v17  ;;  %v6104_v32 = vpop.f32.mrb[15].mxu0  ;;  %v6114_v36 = vld [vmem:[#allocation2 + $0x34] sm:$0xf] }
 0x19a   : > { %v1156_v55 = vshrl.u32 %v6053_v17, 16  ;;  %v2399_v63 = vrot.slane %v2397_v44, 7  ;;  %v6090_v48 = vrot.slane %v1084_v14, 5  ;;  %v1732_v61 = vrot.slane %v6006_v29, 4 }
 0x19b   : > { %9207 = vst [vmem:[#allocation42_spill] sm:$0xff] %v6063_v20  ;;  %v6079_v56 = vor.u32 %v1150_v51, %v6063_v20  ;;  %v9211_v20 = vshll.u32 %v5968_v46, 16  ;;  %v9212_v60 = vshll.u32 %v5986_v15, 16  ;;  %v583_v14 = vadd.f32 %v5975_v57, %v5914_v8 }
 0x19c   : > { %3086 = vrot.lane.b32.xlu1 %v4746_v42, %s5555_s26  ;;  %v1158_v19 = vrot.slane %v1156_v55, 7  ;;  %v1462_v42 = vor.u32 %v6003_v28, %v6001_v27  ;;  %v9214_v57 = vshll.u32 %v6053_v17, 16  ;;  %v586_v27 = vadd.f32 %v6008_v33, %v5914_v8  ;;  %v6132_v28 = vld [vmem:[#allocation2 + $0x38] sm:$0xf] }
 0x19d   : > { %9208 = vst [vmem:[#allocation43_spill] sm:$0xff] %v6079_v56  ;;  %v1730_v56 = vor.u32 %v9211_v20, %v6006_v29  ;;  %v1739_v59 = vor.u32 %v9212_v60, %v1736_v24  ;;  %v575_v20 = vadd.f32 %v5914_v8, %v5988_v16  ;;  %v1467_v29 = vor.u32 %v1466_v40, %v6024_v45  ;;  %v6116_v60 = vpop.f32.mrb[16].mxu0 }
 0x19e   : > { %9213 = vst [vmem:[#allocation44_spill] sm:$0xff] %v6116_v60  ;;  %v6120_v24 = vor.u32 %v9214_v57, %v1158_v19  ;;  %v6134_v40 = vpop.f32.mrb[17].mxu0  ;;  %v1463_v57 = vrot.slane %v1462_v42, 4  ;;  %v1769_v7 = vshrl.u32 %v6114_v36, 16  ;;  %v6151_v42 = vrot.slane %v2397_v44, 4 }
 0x19f   : > { %v1731_v46 = vsel %vm6086_vm12, %v5904_v1, %v1730_v56  ;;  %v1740_v31 = vsel %vm6086_vm12, %v1732_v61, %v1739_v59  ;;  %v695_v1 = vmax.f32 %v583_v14, 0.0  ;;  %9218 = vst [vmem:[#allocation46_spill] sm:$0xff] %v6134_v40  ;;  %v693_v19 = vmax.f32 %v575_v20, 0.0  ;;  %v6136_v60 = vpop.f32.mrb[18].mxu0 }
 0x1a0   : > { %9215 = vst [vmem:[#allocation45_spill] sm:$0xff] %v6120_v24  ;;  %v4775_v56 = vcombine.low %v1731_v46, %v1740_v31  ;;  %v1468_v24 = vrot.slane %v1467_v29, 4  ;;  %9219 = vst [vmem:[#allocation47_spill] sm:$0xff] %v6136_v60  ;;  %v6138_v59 = vrot.slane %v2400_v37, 5  ;;  %v696_v14 = vmax.f32 %v586_v27, 0.0  ;;  %v6141_v54 = vpop.f32.mrb[19].mxu0 }
 0x1a1   : > { %v4940_v61 = vpack.c.bf16 %v695_v1, %v695_v1  ;;  %9220 = vst [vmem:[#allocation48_spill] sm:$0xff] %v6141_v54  ;;  %v4938_v33 = vpack.c.bf16 %v693_v19, %v693_v19  ;;  %v1465_v31 = vsel %vm6126_vm13, %v1463_v57, %v6024_v45  ;;  %v1778_v20 = vshrl.u32 %v6132_v28, 16 }
 0x1a2   : > { %3240 = vrot.lane.b32.xlu0 %v4775_v56, %s5558_s13  ;;  %v1473_v46 = vsel %vm6126_vm13, %v1468_v24, %v5906_v2  ;;  %v4941_v1 = vpack.c.bf16 %v696_v14, %v696_v14  ;;  %v9089_v27 = vshll.u32 %v6114_v36, 16  ;;  %v6155_v56 = vld [vmem:[#allocation2 + $0x28] sm:$0xf]  ;;  %v6157_v19 = vor.u32 %v2400_v37, %v2399_v63  ;;  %v6177_v63 = vld [vmem:[#allocation2 + $0x24] sm:$0xf] }
 0x1a3   : > { %990 = vst.msk [vmem:[#allocation2 + $0x54] sm:$0xf] %vm979_vm8, %v4940_v61  ;;  %v4760_v29 = vcombine.low %v1465_v31, %v1473_v46  ;;  %v9221_v45 = vshrl.u32 %v6026_v50, 16  ;;  %v6163_v54 = vrot.slane %v1150_v51, 5  ;;  %v6165_v2 = vrot.slane %v1156_v55, 4 }
 0x1a4   : > { %988 = vst.msk [vmem:[#allocation2 + $0x44] sm:$0xf] %vm979_vm8, %v4938_v33  ;;  %991 = vst.msk [vmem:[#allocation2 + $0x58] sm:$0xf] %vm979_vm8, %v4941_v1  ;;  %v6170_v44 = vrot.slane %v1769_v7, 7  ;;  %v4793_v50 = vcombine.low %v6114_v36, %v6132_v28  ;;  %v578_v51 = vadd.f32 %v5914_v8, %v6014_v39  ;;  %v1780_v24 = vrot.slane %v1778_v20, 7 }
 0x1a5   : > { %v6161_v57 = vrot.slane %v9221_v45, 4  ;;  %3162 = vrot.lane.b32.xlu1 %v4760_v29, %s5559_s8  ;;  %v6179_v55 = vld [vmem:[#allocation2 + $0x24] sm:$0xf]  ;;  %v6181_v61 = vrot.slane %v1769_v7, 4  ;;  %v1756_v14 = vshrl.u32 %v6155_v56, 16  ;;  %v2089_v33 = vor.u32 %v6043_v62, %v6017_v41  ;;  %v6188_v46 = vpop.f32.mrb[20].mxu0 }
 0x1a6   : > { %v6186_v31 = vld [vmem:[#allocation2 + $0x28] sm:$0xf]  ;;  %9222 = vst [vmem:[#allocation49_spill] sm:$0xff] %v6188_v46  ;;  %v6192_v29 = vrot.slane %v9089_v27, 5  ;;  %3356 = vrot.lane.b32.xlu0 %v4793_v50, %s5556_s28  ;;  %v694_v39 = vmax.f32 %v578_v51, 0.0  ;;  %v4792_v7 = vcombine.low %v6177_v63, %v6155_v56  ;;  %v9223_v1 = vshll.u32 %v5986_v15, 16 }
 0x1a7   : > { %v2313_v37 = vld [vmem:[#allocation2 + $0x24] sm:$0xf]  ;;  %v6199_v60 = vpop.f32.mrb[21].mxu0  ;;  %v6201_v62 = vrot.slane %v1778_v20, 4  ;;  %v1747_v46 = vshrl.u32 %v6177_v63, 16  ;;  %v2090_v27 = vrot.slane %v2089_v33, 4 }
 0x1a8   : > { %v2091_v45 = vrot.slane %v9223_v1, 5  ;;  %9224 = vst [vmem:[#allocation50_spill] sm:$0xff] %v6199_v60  ;;  %v6205_v40 = vpop.f32.mrb[22].mxu0  ;;  %v4939_v50 = vpack.c.bf16 %v694_v39, %v694_v39  ;;  %v1134_v1 = vshrl.u32 %v6186_v31, 16  ;;  %v6213_v20 = vrot.slane %v1756_v14, 7 }
 0x1a9   : > { %9225 = vst [vmem:[#allocation51_spill] sm:$0xff] %v6205_v40  ;;  %3354 = vrot.lane.b32.xlu1 %v4792_v7, %s5556_s28  ;;  %v6211_v3 = vpop.f32.mrb[23].mxu0  ;;  %v6215_v60 = vrot.slane %v1756_v14, 4  ;;  %v1125_v33 = vshrl.u32 %v6179_v55, 16  ;;  %v6219_v40 = vld [vmem:[#allocation2 + $0x28] sm:$0xf] }
 0x1aa   : > { %v2094_v15 = vor.u32 %v6055_v35, %v2091_v45  ;;  %9226 = vst [vmem:[#allocation52_spill] sm:$0xff] %v6211_v3  ;;  %989 = vst.msk [vmem:[#allocation2 + $0x48] sm:$0xf] %vm979_vm8, %v4939_v50  ;;  %v1136_v7 = vrot.slane %v1134_v1, 7  ;;  %v4745_v35 = vcombine.low %v6179_v55, %v6186_v31  ;;  %v2366_v51 = vshrl.u32 %v2313_v37, 16 }
 0x1ab   : > { %9227 = vst [vmem:[#allocation53_spill] sm:$0xff] %v6215_v60  ;;  %v6224_v0 = vrot.slane %v1747_v46, 7  ;;  %v2092_v14 = vsel %vm6126_vm13, %v2090_v27, %v2091_v45  ;;  %v6228_v3 = vrot.slane %v1125_v33, 7  ;;  %v1128_v41 = vshll.u32 %v6179_v55, 16 }
 0x1ac   : > { %v2095_v39 = vrot.slane %v2094_v15, 4  ;;  %v9229_v50 = vshll.u32 %v6186_v31, 16  ;;  %v2368_v58 = vrot.slane %v2366_v51, 7  ;;  %v2375_v49 = vshrl.u32 %v6219_v40, 16 }
 0x1ad   : > { %9228 = vst [vmem:[#allocation54_spill] sm:$0xff] %v6228_v3  ;;  %3084 = vrot.lane.b32.xlu1 %v4745_v35, %s5555_s26  ;;  %v6240_v34 = vrot.slane %v1747_v46, 4  ;;  %v9232_v27 = vshll.u32 %v6177_v63, 16  ;;  %v6247_v22 = vor.u32 %v1128_v41, %v6228_v3  ;;  %v9235_v46 = vshll.u32 %v6114_v36, 16 }
 0x1ae   : > { %v2100_v60 = vsel %vm6126_vm13, %v2095_v39, %v5908_v4  ;;  %v6236_v15 = vor.u32 %v9229_v50, %v1136_v7  ;;  %v6249_v4 = vrot.slane %v1134_v1, 4  ;;  %v2369_v39 = vshll.u32 %v2313_v37, 16 }
 0x1af   : > { %9231 = vst [vmem:[#allocation56_spill] sm:$0xff] %v6240_v34  ;;  %v6244_v45 = vrot.slane %v9232_v27, 5  ;;  %v4807_v55 = vcombine.low %v2092_v14, %v2100_v60  ;;  %9234 = vst [vmem:[#allocation58_spill] sm:$0xff] %v6247_v22  ;;  %v2377_v7 = vrot.slane %v2375_v49, 7  ;;  %v1774_v35 = vor.u32 %v9235_v46, %v6170_v44  ;;  %v6265_v34 = vld [vmem:[#allocation2 + $0x54] sm:$0xf] }
 0x1b0   : > { %9230 = vst [vmem:[#allocation55_spill] sm:$0xff] %v6236_v15  ;;  %v1776_v27 = vrot.slane %v6170_v44, 4  ;;  %v9236_v60 = vshll.u32 %v6132_v28, 16  ;;  %v1448_v1 = vor.u32 %v6090_v48, %v6073_v21  ;;  %v9237_v22 = vshll.u32 %v6012_v38, 16 }
 0x1b1   : > { %9233 = vst [vmem:[#allocation57_spill] sm:$0xff] %v6244_v45  ;;  %3432 = vrot.lane.b32.xlu0 %v4807_v55, %s5560_s12  ;;  %v2371_v3 = vor.u32 %v2369_v39, %v2368_v58  ;;  %v2373_v50 = vrot.slane %v2368_v58, 4  ;;  %v9238_v45 = vshll.u32 %v6219_v40, 16  ;;  %v6267_v36 = vrot.slane %v1125_v33, 4 }
 0x1b2   : > { %v1783_v14 = vor.u32 %v9236_v60, %v1780_v24  ;;  %v1450_v15 = vrot.slane %v9237_v22, 5  ;;  %v6269_v46 = vrot.slane %v1128_v41, 5  ;;  %v4839_v44 = vcombine.low %v2313_v37, %v6219_v40  ;;  %v6287_v41 = vld [vmem:[#allocation2 + $0x58] sm:$0xf] }
 0x1b3   : > { %v2380_v55 = vor.u32 %v9238_v45, %v2377_v7  ;;  %v1449_v24 = vrot.slane %v1448_v1, 4  ;;  %v6272_v60 = vrot.slane %v2366_v51, 4  ;;  %v6279_v21 = vrot.slane %v2369_v39, 5  ;;  %v6319_v1 = vld [vmem:[#allocation2 + $0x58] sm:$0xf] }
 0x1b4   : > { %v1784_v38 = vsel %vm6086_vm12, %v1776_v27, %v1783_v14  ;;  %v1453_v22 = vor.u32 %v6058_v47, %v1450_v15  ;;  %v6281_v48 = vrot.slane %v2375_v49, 4  ;;  %v1775_v37 = vsel %vm6086_vm12, %v5910_v5, %v1774_v35 }
 0x1b5   : > { %v2381_v58 = vsel %vm6086_vm12, %v2373_v50, %v2380_v55  ;;  %3624 = vrot.lane.b32.xlu0 %v4839_v44, %s5557_s30  ;;  %v1813_v51 = vshrl.u32 %v6265_v34, 16  ;;  %v1451_v47 = vsel %vm6126_vm13, %v1449_v24, %v1450_v15  ;;  %v2372_v45 = vsel %vm6086_vm12, %v5918_v10, %v2371_v3  ;;  %v6309_v3 = vld [vmem:[#allocation2 + $0x54] sm:$0xf] }
 0x1b6   : > { %v1454_v33 = vrot.slane %v1453_v22, 4  ;;  %v2395_v49 = vrot.slane %v6036_v18, 4  ;;  %v4777_v39 = vcombine.low %v1775_v37, %v1784_v38  ;;  %v4823_v7 = vcombine.low %v2372_v45, %v2381_v58 }
 0x1b7   : > { %v2394_v5 = vsel %vm6086_vm12, %v5912_v6, %v6076_v43  ;;  %v1816_v50 = vshll.u32 %v6265_v34, 16  ;;  %v1822_v10 = vshrl.u32 %v6287_v41, 16  ;;  %v1825_v18 = vshll.u32 %v6287_v41, 16 }
 0x1b8   : > { %v1459_v15 = vsel %vm6126_vm13, %v1454_v33, %v5916_v9  ;;  %v2403_v35 = vsel %vm6086_vm12, %v2395_v49, %v6157_v19  ;;  %v6312_v6 = vrot.slane %v1813_v51, 7  ;;  %v6314_v43 = vrot.slane %v1813_v51, 4  ;;  %v6351_v49 = vld [vmem:[#allocation2 + $0x58] sm:$0xf] }
 0x1b9   : > { %3244 = vrot.lane.b32.xlu0 %v4777_v39, %s5558_s13  ;;  %v4759_v27 = vcombine.low %v1451_v47, %v1459_v15  ;;  %v9239_v9 = vshll.u32 %v6177_v63, 16  ;;  %v1754_v19 = vrot.slane %v6224_v0, 4  ;;  %v9240_v55 = vshll.u32 %v6155_v56, 16 }
 0x1ba   : > { %v2744_v24 = vor.u32 %v6070_v26, %v6068_v30  ;;  %v2749_v38 = vor.u32 %v6151_v42, %v6138_v59  ;;  %v4824_v22 = vcombine.low %v2394_v5, %v2403_v35  ;;  %v4795_v63 = vcombine.low %v6265_v34, %v6287_v41  ;;  %v6337_v30 = vld [vmem:[#allocation2 + $0x54] sm:$0xf] }
 0x1bb   : > { %v1752_v14 = vor.u32 %v9239_v9, %v6224_v0  ;;  %v1761_v44 = vor.u32 %v9240_v55, %v6213_v20  ;;  %3160 = vrot.lane.b32.xlu1 %v4759_v27, %s5559_s8  ;;  %v2432_v58 = vshrl.u32 %v6309_v3, 16  ;;  %v9092_v0 = vshll.u32 %v6309_v3, 16 }
 0x1bc   : > { %v2745_v20 = vrot.slane %v2744_v24, 4  ;;  %v2750_v51 = vrot.slane %v2749_v38, 4  ;;  %v2441_v26 = vshrl.u32 %v6319_v1, 16  ;;  %v6340_v42 = vrot.slane %v1822_v10, 7 }
 0x1bd   : > { %v1762_v37 = vsel %vm6086_vm12, %v1754_v19, %v1761_v44  ;;  %3512 = vrot.lane.b32.xlu0 %v4823_v7, %s5561_s11  ;;  %v6344_v47 = vrot.slane %v1816_v50, 5  ;;  %v6346_v33 = vrot.slane %v1822_v10, 4  ;;  %v1753_v45 = vsel %vm6086_vm12, %v5920_v11, %v1752_v14  ;;  %v6477_v7 = vld [vmem:[#allocation2 + $0x48] sm:$0xf] }
 0x1be   : > { %v4776_v39 = vcombine.low %v1753_v45, %v1762_v37  ;;  %v6353_v5 = vrot.slane %v2432_v58, 7  ;;  %v6355_v15 = vrot.slane %v2441_v26, 7  ;;  %v6359_v35 = vrot.slane %v2432_v58, 4 }
 0x1bf   : > { %3514 = vrot.lane.b32.xlu1 %v4824_v22, %s5561_s11  ;;  %v2117_v10 = vor.u32 %v6192_v29, %v6181_v61  ;;  %v9241_v27 = vshll.u32 %v6132_v28, 16  ;;  %v1191_v11 = vshrl.u32 %v6337_v30, 16  ;;  %v2747_v14 = vsel %vm6126_vm13, %v2745_v20, %v6138_v59  ;;  %v6393_v20 = vld [vmem:[#allocation2 + $0x44] sm:$0xf] }
 0x1c0   : > { %v2755_v19 = vsel %vm6126_vm13, %v2750_v51, %v5922_v12  ;;  %v6374_v55 = vrot.slane %v9092_v0, 5  ;;  %v1200_v44 = vshrl.u32 %v6351_v49, 16  ;;  %v6378_v28 = vrot.slane %v2441_v26, 4  ;;  %v9247_v0 = vld [vmem:[#allocation19_spill] sm:$0xff] }
 0x1c1   : > { %v2119_v9 = vrot.slane %v9241_v27, 5  ;;  %3360 = vrot.lane.b32.xlu0 %v4795_v63, %s5556_s28  ;;  %v6381_v29 = vrot.slane %v1191_v11, 7  ;;  %v1194_v59 = vshll.u32 %v6337_v30, 16  ;;  %v2118_v24 = vrot.slane %v2117_v10, 4 }
 0x1c2   : > { %v1202_v38 = vrot.slane %v1200_v44, 7  ;;  %v9091_v12 = vshll.u32 %v6351_v49, 16  ;;  %v599_v22 = vadd.f32 %v6039_v23, %v5914_v8  ;;  %v4856_v58 = vcombine.low %v2747_v14, %v2755_v19  ;;  %v6411_v14 = vld [vmem:[#allocation2 + $0x48] sm:$0xf] }
 0x1c3   : > { %v2122_v61 = vor.u32 %v6201_v62, %v2119_v9  ;;  %9242 = vst [vmem:[#allocation59_spill] sm:$0xff] %v6381_v29  ;;  %3242 = vrot.lane.b32.xlu1 %v4776_v39, %s5558_s13  ;;  %v6389_v63 = vor.u32 %v1194_v59, %v6381_v29  ;;  %v591_v62 = vadd.f32 %v5914_v8, %v6066_v53  ;;  %v6407_v39 = vrot.slane %v1191_v11, 4 }
 0x1c4   : > { %v4842_v51 = vcombine.low %v6309_v3, %v6319_v1  ;;  %v6399_v26 = vor.u32 %v9091_v12, %v1202_v38  ;;  %v699_v23 = vmax.f32 %v599_v22, 0.0  ;;  %v602_v45 = vadd.f32 %v6096_v25, %v5914_v8  ;;  %v6468_v12 = vld [vmem:[#allocation2 + $0x44] sm:$0xf] }
 0x1c5   : > { %v2123_v37 = vrot.slane %v2122_v61, 4  ;;  %9243 = vst [vmem:[#allocation60_spill] sm:$0xff] %v6389_v63  ;;  %3706 = vrot.lane.b32.xlu0 %v4856_v58, %s5562_s16  ;;  %v4748_v10 = vcombine.low %v6337_v30, %v6351_v49  ;;  %v697_v27 = vmax.f32 %v591_v62, 0.0  ;;  %v2120_v19 = vsel %vm6126_vm13, %v2118_v24, %v2119_v9  ;;  %v6426_v24 = vpop.f32.mrb[24].mxu0 }
 0x1c6   : > { %9244 = vst [vmem:[#allocation61_spill] sm:$0xff] %v6399_v26  ;;  %v4944_v61 = vpack.c.bf16 %v699_v23, %v699_v23  ;;  %v700_v25 = vmax.f32 %v602_v45, 0.0  ;;  %v2410_v38 = vshrl.u32 %v6393_v20, 16  ;;  %v6417_v58 = vrot.slane %v1194_v59, 5 }
 0x1c7   : > { %v2128_v53 = vsel %vm6126_vm13, %v2123_v37, %v5924_v13  ;;  %3630 = vrot.lane.b32.xlu1 %v4842_v51, %s5557_s30  ;;  %v6419_v13 = vrot.slane %v1200_v44, 4  ;;  %v4942_v11 = vpack.c.bf16 %v697_v27, %v697_v27  ;;  %v9094_v62 = vshll.u32 %v6393_v20, 16  ;;  %v6440_v27 = vld [vmem:[#allocation2 + $0x48] sm:$0xf] }
 0x1c8   : > { %v4809_v22 = vcombine.low %v2120_v19, %v2128_v53  ;;  %994 = vst.msk [vmem:[#allocation2 + $0x74] sm:$0xf] %vm979_vm8, %v4944_v61  ;;  %v4945_v30 = vpack.c.bf16 %v700_v25, %v700_v25  ;;  %v6422_v37 = vrot.slane %v2410_v38, 7  ;;  %v2419_v9 = vshrl.u32 %v6411_v14, 16  ;;  %v6438_v53 = vld [vmem:[#allocation2 + $0x44] sm:$0xf] }
 0x1c9   : > { %992 = vst.msk [vmem:[#allocation2 + $0x64] sm:$0xf] %vm979_vm8, %v4942_v11  ;;  %v1490_v44 = vor.u32 %v6163_v54, %v6161_v57  ;;  %v9245_v59 = vshll.u32 %v6053_v17, 16  ;;  %v594_v23 = vadd.f32 %v5914_v8, %v6104_v32  ;;  %v2730_v45 = vor.u32 %v6279_v21, %v6272_v60  ;;  %v6442_v19 = vpop.f32.mrb[25].mxu0 }
 0x1ca   : > { %3436 = vrot.lane.b32.xlu0 %v4809_v22, %s5560_s12  ;;  %995 = vst.msk [vmem:[#allocation2 + $0x78] sm:$0xf] %vm979_vm8, %v4945_v30  ;;  %v6445_v61 = vrot.slane %v2419_v9, 7  ;;  %v6448_v17 = vrot.slane %v2410_v38, 4  ;;  %v9246_v57 = vshll.u32 %v6219_v40, 16  ;;  %v6452_v32 = vpop.f32.mrb[26].mxu0  ;;  %v4841_v60 = vcombine.low %v6393_v20, %v6411_v14 }
 0x1cb   : > { %v1492_v51 = vrot.slane %v9245_v59, 5  ;;  %3090 = vrot.lane.b32.xlu1 %v4748_v10, %s5555_s26  ;;  %v1491_v21 = vrot.slane %v1490_v44, 4  ;;  %v698_v22 = vmax.f32 %v594_v23, 0.0  ;;  %v2731_v11 = vrot.slane %v2730_v45, 4 }
 0x1cc   : > { %v2732_v8 = vrot.slane %v9246_v57, 5  ;;  %v1791_v38 = vshrl.u32 %v6438_v53, 16  ;;  %v9093_v59 = vshrl.u32 %v6440_v27, 16  ;;  %v6463_v40 = vrot.slane %v9094_v62, 5  ;;  %v9249_v62 = vld [vmem:[#allocation20_spill] sm:$0xff] }
 0x1cd   : > { %v1495_v25 = vor.u32 %v6165_v2, %v1492_v51  ;;  %v6465_v57 = vrot.slane %v2419_v9, 4  ;;  %v4943_v44 = vpack.c.bf16 %v698_v22, %v698_v22  ;;  %v1493_v9 = vsel %vm6126_vm13, %v1491_v21, %v1492_v51 }
 0x1ce   : > { %v2735_v30 = vor.u32 %v6281_v48, %v2732_v8  ;;  %3628 = vrot.lane.b32.xlu0 %v4841_v60, %s5557_s30  ;;  %v6470_v23 = vrot.slane %v1791_v38, 7  ;;  %v6475_v45 = vrot.slane %v9093_v59, 7  ;;  %v9248_v22 = vshll.u32 %v6186_v31, 16  ;;  %v9260_v31 = vld [vmem:[#allocation24_spill] sm:$0xff] }
 0x1cf   : > { %v1496_v10 = vrot.slane %v1495_v25, 4  ;;  %993 = vst.msk [vmem:[#allocation2 + $0x68] sm:$0xf] %vm979_vm8, %v4943_v44  ;;  %v1476_v25 = vor.u32 %v6269_v46, %v6267_v36  ;;  %v2733_v59 = vsel %vm6126_vm13, %v2731_v11, %v2732_v8  ;;  %v1169_v21 = vshrl.u32 %v6468_v12, 16 }
 0x1d0   : > { %v2736_v2 = vrot.slane %v2735_v30, 4  ;;  %v1478_v30 = vrot.slane %v9248_v22, 5  ;;  %v1178_v44 = vshrl.u32 %v6477_v7, 16  ;;  %v6499_v36 = vrot.slane %v1791_v38, 4 }
 0x1d1   : > { %v1501_v60 = vsel %vm6126_vm13, %v1496_v10, %v9247_v0  ;;  %v1477_v0 = vrot.slane %v1476_v25, 4  ;;  %v6501_v46 = vrot.slane %v1169_v21, 7  ;;  %v1172_v8 = vshll.u32 %v6468_v12, 16 }
 0x1d2   : > { %v4762_v54 = vcombine.low %v1493_v9, %v1501_v60  ;;  %v2741_v51 = vsel %vm6126_vm13, %v2736_v2, %v9249_v62  ;;  %v1481_v10 = vor.u32 %v6249_v4, %v1478_v30  ;;  %v4794_v62 = vcombine.low %v6438_v53, %v6440_v27  ;;  %v6508_v2 = vpop.f32.mrb[27].mxu0  ;;  %v9253_v60 = vld [vmem:[#allocation21_spill] sm:$0xff] }
 0x1d3   : > { %v4855_v48 = vcombine.low %v2733_v59, %v2741_v51  ;;  %9250 = vst [vmem:[#allocation19_spill] sm:$0xff] %v6501_v46  ;;  %v1180_v59 = vrot.slane %v1178_v44, 7  ;;  %v9095_v4 = vshll.u32 %v6477_v7, 16  ;;  %9251 = vst [vmem:[#allocation20_spill] sm:$0xff] %v6508_v2  ;;  %v6513_v38 = vor.u32 %v1172_v8, %v6501_v46  ;;  %v9255_v51 = vld [vmem:[#allocation56_spill] sm:$0xff]  ;;  %v5291_v46 = vld [vmem:[#allocation9 + $0x8] sm:$0xff]  }
 0x1d4   : > { %3166 = vrot.lane.b32.xlu1 %v4762_v54, %s5559_s8  ;;  %v1482_v11 = vrot.slane %v1481_v10, 4  ;;  %v1479_v54 = vsel %vm6126_vm13, %v1477_v0, %v1478_v30  ;;  %v1818_v9 = vor.u32 %v1816_v50, %v6312_v6  ;;  %v1827_v30 = vor.u32 %v1825_v18, %v6340_v42  ;;  %v9256_v0 = vld [vmem:[#allocation57_spill] sm:$0xff] }
 0x1d5   : > { %3704 = vrot.lane.b32.xlu0 %v4855_v48, %s5562_s16  ;;  %9252 = vst [vmem:[#allocation62_spill] sm:$0xff] %v6513_v38  ;;  %v1820_v48 = vrot.slane %v6312_v6, 4  ;;  %v6524_v22 = vor.u32 %v9095_v4, %v1180_v59  ;;  %v2103_v10 = vor.u32 %v9256_v0, %v9255_v51  ;;  %v9257_v34 = vshll.u32 %v6438_v53, 16 }
 0x1d6   : > { %v1487_v25 = vsel %vm6126_vm13, %v1482_v11, %v9253_v60  ;;  %v9258_v11 = vshll.u32 %v6155_v56, 16  ;;  %v9259_v59 = vshll.u32 %v6393_v20, 16  ;;  %v1819_v42 = vsel %vm6086_vm12, %v9260_v31, %v1818_v9 }
 0x1d7   : > { %9254 = vst [vmem:[#allocation21_spill] sm:$0xff] %v6524_v22  ;;  %v6533_v50 = vrot.slane %v9257_v34, 5  ;;  %v4761_v6 = vcombine.low %v1479_v54, %v1487_v25  ;;  %v1828_v51 = vsel %vm6086_vm12, %v1820_v48, %v1827_v30  ;;  %v2417_v0 = vrot.slane %v6422_v37, 4  ;;  %v9262_v25 = vld [vmem:[#allocation53_spill] sm:$0xff] }
 0x1d8   : > { %3358 = vrot.lane.b32.xlu1 %v4794_v62, %s5556_s28  ;;  %v2105_v60 = vrot.slane %v9258_v11, 5  ;;  %v2415_v4 = vor.u32 %v9259_v59, %v6422_v37  ;;  %v9261_v62 = vshll.u32 %v6411_v14, 16  ;;  %v4747_v56 = vcombine.low %v6468_v12, %v6477_v7  ;;  %v6557_v11 = vld [vmem:[#allocation2 + $0x74] sm:$0xf]  ;;  %v9264_v48 = vld [vmem:[#allocation25_spill] sm:$0xff] }
 0x1d9   : > { %3164 = vrot.lane.b32.xlu0 %v4761_v6, %s5559_s8  ;;  %v2104_v20 = vrot.slane %v2103_v10, 4  ;;  %v9263_v31 = vshll.u32 %v6309_v3, 16  ;;  %v2439_v30 = vrot.slane %v6353_v5, 4  ;;  %v9265_v12 = vshll.u32 %v6319_v1, 16 }
 0x1da   : > { %v2424_v54 = vor.u32 %v9261_v62, %v6445_v61  ;;  %v2108_v34 = vor.u32 %v9262_v25, %v2105_v60  ;;  %v2416_v37 = vsel %vm6086_vm12, %v9264_v48, %v2415_v4  ;;  %v9266_v6 = vshrl.u32 %v6440_v27, 16  ;;  %v6575_v4 = vld [vmem:[#allocation2 + $0x78] sm:$0xf] }
 0x1db   : > { %v2437_v9 = vor.u32 %v9263_v31, %v6353_v5  ;;  %v2446_v10 = vor.u32 %v9265_v12, %v6355_v15  ;;  %v6572_v3 = vrot.slane %v1169_v21, 4  ;;  %v4779_v62 = vcombine.low %v1819_v42, %v1828_v51  ;;  %v9268_v42 = vld [vmem:[#allocation23_spill] sm:$0xff] }
 0x1dc   : > { %v2425_v61 = vsel %vm6086_vm12, %v2417_v0, %v2424_v54  ;;  %v6570_v59 = vrot.slane %v9266_v6, 4  ;;  %3088 = vrot.lane.b32.xlu1 %v4747_v56, %s5555_s26  ;;  %v2109_v25 = vrot.slane %v2108_v34, 4  ;;  %v6577_v31 = vrot.slane %v1172_v8, 5  ;;  %v9267_v0 = vld [vmem:[#allocation26_spill] sm:$0xff] }
 0x1dd   : > { %v2438_v5 = vsel %vm6086_vm12, %v9267_v0, %v2437_v9  ;;  %v2447_v15 = vsel %vm6086_vm12, %v2439_v30, %v2446_v10  ;;  %v1857_v54 = vshrl.u32 %v6557_v11, 16  ;;  %v6585_v48 = vrot.slane %v1178_v44, 4  ;;  %3248 = vrot.lane.b32.xlu0 %v4779_v62, %s5558_s13  ;;  %v6603_v62 = vld [vmem:[#allocation2 + $0x74] sm:$0xf] }
 0x1de   : > { %v2106_v21 = vsel %vm6126_vm13, %v2104_v20, %v2105_v60  ;;  %v2114_v8 = vsel %vm6126_vm13, %v2109_v25, %v9268_v42  ;;  %v4825_v51 = vcombine.low %v2416_v37, %v2425_v61  ;;  %v9097_v34 = vshll.u32 %v6557_v11, 16 }
 0x1df   : > { %v4808_v56 = vcombine.low %v2106_v21, %v2114_v8  ;;  %v1866_v9 = vshrl.u32 %v6575_v4, 16  ;;  %v4826_v12 = vcombine.low %v2438_v5, %v2447_v15  ;;  %v9269_v44 = vshll.u32 %v6438_v53, 16  ;;  %v6614_v5 = vld [vmem:[#allocation2 + $0x78] sm:$0xf] }
 0x1e0   : > { %v1798_v6 = vrot.slane %v6470_v23, 4  ;;  %v9270_v60 = vshll.u32 %v6440_v27, 16  ;;  %v6606_v37 = vrot.slane %v1857_v54, 7  ;;  %v6608_v61 = vrot.slane %v1857_v54, 4  ;;  %v9272_v15 = vld [vmem:[#allocation27_spill] sm:$0xff] }
 0x1e1   : > { %v1796_v10 = vor.u32 %v9269_v44, %v6470_v23  ;;  %3434 = vrot.lane.b32.xlu1 %v4808_v56, %s5560_s12  ;;  %v2772_v25 = vor.u32 %v6374_v55, %v6359_v35  ;;  %v9271_v53 = vshll.u32 %v6319_v1, 16  ;;  %3516 = vrot.lane.b32.xlu0 %v4825_v51, %s5561_s11  ;;  %v6617_v23 = vrot.slane %v1866_v9, 7  ;;  %v6626_v35 = vld [vmem:[#allocation2 + $0x74] sm:$0xf]  ;;  %v6635_v51 = vld [vmem:[#allocation2 + $0x78] sm:$0xf] }
 0x1e2   : > { %v1805_v20 = vor.u32 %v9270_v60, %v6475_v45  ;;  %v4797_v45 = vcombine.low %v6557_v11, %v6575_v4  ;;  %v6630_v1 = vrot.slane %v9097_v34, 5  ;;  %v6632_v55 = vrot.slane %v1866_v9, 4 }
 0x1e3   : > { %v2774_v0 = vrot.slane %v9271_v53, 5  ;;  %v1797_v54 = vsel %vm6086_vm12, %v9272_v15, %v1796_v10  ;;  %v2773_v42 = vrot.slane %v2772_v25, 4  ;;  %v2476_v56 = vshrl.u32 %v6603_v62, 16 }
 0x1e4   : > { %v1806_v21 = vsel %vm6086_vm12, %v1798_v6, %v1805_v20  ;;  %v9096_v44 = vshll.u32 %v6603_v62, 16  ;;  %v2485_v10 = vshrl.u32 %v6614_v5, 16  ;;  %v2147_v53 = vrot.slane %v1825_v18, 5 }
 0x1e5   : > { %v2777_v8 = vor.u32 %v6378_v28, %v2774_v0  ;;  %3518 = vrot.lane.b32.xlu1 %v4826_v12, %s5561_s11  ;;  %v4778_v60 = vcombine.low %v1797_v54, %v1806_v21  ;;  %v2775_v9 = vsel %vm6126_vm13, %v2773_v42, %v2774_v0  ;;  %v2145_v28 = vor.u32 %v6344_v47, %v6314_v43  ;;  %v9273_v12 = vld [vmem:[#allocation28_spill] sm:$0xff] }
 0x1e6   : > { %3364 = vrot.lane.b32.xlu0 %v4797_v45, %s5556_s28  ;;  %v6647_v25 = vrot.slane %v2476_v56, 7  ;;  %v1235_v15 = vshrl.u32 %v6626_v35, 16  ;;  %v1244_v6 = vshrl.u32 %v6635_v51, 16  ;;  %v1238_v21 = vshll.u32 %v6626_v35, 16 }
 0x1e7   : > { %v2778_v20 = vrot.slane %v2777_v8, 4  ;;  %v2146_v0 = vrot.slane %v2145_v28, 4  ;;  %v9098_v43 = vshll.u32 %v6635_v51, 16  ;;  %v2150_v45 = vor.u32 %v6346_v33, %v2147_v53 }
 0x1e8   : > { %v6659_v42 = vrot.slane %v1235_v15, 7  ;;  %v1246_v41 = vrot.slane %v1244_v6, 7  ;;  %v6662_v18 = vrot.slane %v2485_v10, 7  ;;  %v6664_v8 = vrot.slane %v2476_v56, 4  ;;  %v6680_v56 = vld [vmem:[#allocation8] ss:$0 sm:$0xff] }
 0x1e9   : > { %v2783_v54 = vsel %vm6126_vm13, %v2778_v20, %v9273_v12  ;;  %3246 = vrot.lane.b32.xlu1 %v4778_v60, %s5558_s13  ;;  %v6668_v20 = vrot.slane %v9096_v44, 5  ;;  %v2148_v28 = vsel %vm6126_vm13, %v2146_v0, %v2147_v53  ;;  %v5290_v12 = vld [vmem:[#allocation9] sm:$0xff]   ;;  %v2151_v33 = vrot.slane %v2150_v45, 4  ;;  %v9278_v0 = vld [vmem:[#allocation46_spill] sm:$0xff]  ;;  %v9279_v45 = vld [vmem:[#allocation47_spill] sm:$0xff] }
 0x1ea   : > { %v4858_v47 = vcombine.low %v2775_v9, %v2783_v54  ;;  %9274 = vst [vmem:[#allocation56_spill] sm:$0xff] %v6659_v42  ;;  %v6674_v9 = vor.u32 %v1238_v21, %v6659_v42  ;;  %v6678_v60 = vor.u32 %v9098_v43, %v1246_v41  ;;  %v9277_v54 = vld [vmem:[#allocation44_spill] sm:$0xff]  ;;  %v6684_v30 = vrot.slane %v2485_v10, 4  ;;  %5077 = vmatprep.subr.bf16.mxu1 %v5290_v12  ;;  %v9280_v41 = vld [vmem:[#allocation29_spill] sm:$0xff] }
 0x1eb   : > { %v615_v44 = vadd.f32 %v6680_v56, %v9277_v54  ;;  %v4844_v53 = vcombine.low %v6603_v62, %v6614_v5  ;;  %v618_v34 = vadd.f32 %v6680_v56, %v9279_v45  ;;  %v2156_v43 = vsel %vm6126_vm13, %v2151_v33, %v9280_v41  ;;  %v6701_v42 = vld [vmem:[#allocation2 + $0x68] sm:$0xf]  ;;  %5078 = vmatpush3.bf16.msra.mxu1 %v5290_v12 }
 0x1ec   : > { %3710 = vrot.lane.b32.xlu0 %v4858_v47, %s5562_s16  ;;  %9275 = vst [vmem:[#allocation57_spill] sm:$0xff] %v6674_v9  ;;  %9276 = vst [vmem:[#allocation24_spill] sm:$0xff] %v6678_v60  ;;  %v607_v47 = vadd.f32 %v6680_v56, %v9278_v0  ;;  %v6692_v9 = vld [vmem:[#allocation2 + $0x64] sm:$0xf]  ;;  %v6697_v60 = vrot.slane %v1235_v15, 4  ;;  %v4750_v10 = vcombine.low %v6626_v35, %v6635_v51  ;;  %v6704_v45 = vrot.slane %v1238_v21, 5 }
 0x1ed   : > { %v703_v54 = vmax.f32 %v615_v44, 0.0  ;;  %3634 = vrot.lane.b32.xlu1 %v4844_v53, %s5557_s30  ;;  %v4811_v0 = vcombine.low %v2148_v28, %v2156_v43  ;;  %v704_v22 = vmax.f32 %v618_v34, 0.0  ;;  %v6706_v63 = vrot.slane %v1244_v6, 4  ;;  %5079 = vmatprep.subr.bf16.mxu1 %v5291_v46  ;;  %v9282_v28 = vld [vmem:[#allocation48_spill] sm:$0xff]  ;;  %v9284_v43 = vld [vmem:[#allocation30_spill] sm:$0xff] }
 0x1ee   : > { %v701_v38 = vmax.f32 %v607_v47, 0.0  ;;  %v2454_v15 = vshrl.u32 %v6692_v9, 16  ;;  %v9101_v41 = vshll.u32 %v6692_v9, 16  ;;  %v2463_v12 = vshrl.u32 %v6701_v42, 16 }
 0x1ef   : > { %v4948_v33 = vpack.c.bf16 %v703_v54, %v703_v54  ;;  %v4949_v44 = vpack.c.bf16 %v704_v22, %v704_v22  ;;  %v1518_v34 = vor.u32 %v6417_v58, %v6407_v39  ;;  %v9281_v6 = vshll.u32 %v6351_v49, 16  ;;  %5080 = vmatpush3.bf16.msra.mxu1 %v5291_v46  ;;  %v6733_v54 = vld [vmem:[#allocation2 + $0x64] sm:$0xf] }
 0x1f0   : > { %3440 = vrot.lane.b32.xlu0 %v4811_v0, %s5560_s12  ;;  %v4946_v35 = vpack.c.bf16 %v701_v38, %v701_v38  ;;  %v610_v53 = vadd.f32 %v6680_v56, %v9282_v28  ;;  %v2758_v38 = vor.u32 %v6463_v40, %v6448_v17  ;;  %v6725_v22 = vrot.slane %v2454_v15, 7  ;;  %v5293_v17 = vld [vmem:[#allocation9 + $0x10] sm:$0xff]  }
 0x1f1   : > { %998 = vst.msk [vmem:[#allocation2 + $0x94] sm:$0xf] %vm979_vm8, %v4948_v33  ;;  %v1520_v21 = vrot.slane %v9281_v6, 5  ;;  %3094 = vrot.lane.b32.xlu1 %v4750_v10, %s5555_s26  ;;  %999 = vst.msk [vmem:[#allocation2 + $0x98] sm:$0xf] %vm979_vm8, %v4949_v44  ;;  %v6727_v47 = vrot.slane %v2463_v12, 7  ;;  %v4843_v49 = vcombine.low %v6692_v9, %v6701_v42  ;;  %5081 = vmatprep.subr.bf16.mxu1 %v5293_v17 }
 0x1f2   : > { %996 = vst.msk [vmem:[#allocation2 + $0x84] sm:$0xf] %vm979_vm8, %v4946_v35  ;;  %v9283_v39 = vshll.u32 %v6411_v14, 16  ;;  %v1519_v40 = vrot.slane %v1518_v34, 4  ;;  %v702_v10 = vmax.f32 %v610_v53, 0.0  ;;  %v2759_v0 = vrot.slane %v2758_v38, 4 }
 0x1f3   : > { %v1523_v46 = vor.u32 %v6419_v13, %v1520_v21  ;;  %v6736_v33 = vld [vmem:[#allocation2 + $0x68] sm:$0xf]  ;;  %v6738_v35 = vrot.slane %v2454_v15, 4  ;;  %v6742_v44 = vrot.slane %v9101_v41, 5  ;;  %v6744_v6 = vrot.slane %v2463_v12, 4  ;;  %5082 = vmatpush3.bf16.msra.mxu1 %v5293_v17 }
 0x1f4   : > { %v2760_v58 = vrot.slane %v9283_v39, 5  ;;  %3632 = vrot.lane.b32.xlu0 %v4843_v49, %s5557_s30  ;;  %v1521_v13 = vsel %vm6126_vm13, %v1519_v40, %v1520_v21  ;;  %v4947_v28 = vpack.c.bf16 %v702_v10, %v702_v10  ;;  %v1835_v53 = vshrl.u32 %v6733_v54, 16  ;;  %v6751_v15 = vld [vmem:[#allocation2 + $0x64] sm:$0xf] }
 0x1f5   : > { %v1524_v34 = vrot.slane %v1523_v46, 4  ;;  %v9102_v49 = vshrl.u32 %v6736_v33, 16  ;;  %v1504_v17 = vor.u32 %v6577_v31, %v6572_v3 }
 0x1f6   : > { %v2763_v14 = vor.u32 %v6465_v57, %v2760_v58  ;;  %v2761_v38 = vsel %vm6126_vm13, %v2759_v0, %v2760_v58  ;;  %v6757_v57 = vld [vmem:[#allocation2 + $0x68] sm:$0xf]  ;;  %997 = vst.msk [vmem:[#allocation2 + $0x88] sm:$0xf] %vm979_vm8, %v4947_v28  ;;  %v6763_v40 = vrot.slane %v1835_v53, 7  ;;  %v9285_v58 = vshll.u32 %v6477_v7, 16 }
 0x1f7   : > { %v1529_v21 = vsel %vm6126_vm13, %v1524_v34, %v9284_v43  ;;  %v9286_v0 = vld [vmem:[#allocation31_spill] sm:$0xff]  ;;  %v6774_v39 = vrot.slane %v9102_v49, 7  ;;  %v1213_v43 = vshrl.u32 %v6751_v15, 16  ;;  %v1505_v28 = vrot.slane %v1504_v17, 4  ;;  %v9290_v49 = vld [vmem:[#allocation32_spill] sm:$0xff] }
 0x1f8   : > { %v2764_v12 = vrot.slane %v2763_v14, 4  ;;  %v1506_v46 = vrot.slane %v9285_v58, 5  ;;  %v4764_v10 = vcombine.low %v1521_v13, %v1529_v21  ;;  %v1222_v3 = vshrl.u32 %v6757_v57, 16  ;;  %v2324_v58 = vld [vmem:[#allocation2 + $0x60] sm:$0x8] }
 0x1f9   : > { %v6781_v31 = vrot.slane %v1835_v53, 4  ;;  %v6783_v13 = vrot.slane %v1213_v43, 7 }
 0x1fa   : > { %v2769_v14 = vsel %vm6126_vm13, %v2764_v12, %v9286_v0  ;;  %v1509_v41 = vor.u32 %v6585_v48, %v1506_v46  ;;  %3170 = vrot.lane.b32.xlu1 %v4764_v10, %s5559_s8  ;;  %v1216_v12 = vshll.u32 %v6751_v15, 16  ;;  %v1224_v17 = vrot.slane %v1222_v3, 7  ;;  %v5295_v0 = vld [vmem:[#allocation9 + $0x18] sm:$0xff]  }
 0x1fb   : > { %v4857_v34 = vcombine.low %v2761_v38, %v2769_v14  ;;  %9287 = vst [vmem:[#allocation53_spill] sm:$0xff] %v6783_v13  ;;  %v1507_v38 = vsel %vm6126_vm13, %v1505_v28, %v1506_v46  ;;  %v9103_v48 = vshll.u32 %v6757_v57, 16  ;;  %v4796_v10 = vcombine.low %v6733_v54, %v6736_v33  ;;  %5083 = vmatprep.subr.bf16.mxu1 %v5295_v0 }
 0x1fc   : > { %v1510_v21 = vrot.slane %v1509_v41, 4  ;;  %v6793_v53 = vor.u32 %v1216_v12, %v6783_v13  ;;  %v9289_v14 = vshll.u32 %v6557_v11, 16  ;;  %v9292_v28 = vshll.u32 %v6575_v4, 16  ;;  %v6811_v11 = vpop.f32.mrb[28].mxu0  ;;  %5084 = vmatpush3.bf16.msra.mxu1 %v5295_v0 }
 0x1fd   : > { %3708 = vrot.lane.b32.xlu0 %v4857_v34, %s5562_s16  ;;  %v1864_v34 = vrot.slane %v6606_v37, 4  ;;  %v6804_v46 = vor.u32 %v9103_v48, %v1224_v17  ;;  %9293 = vst [vmem:[#allocation23_spill] sm:$0xff] %v6811_v11  ;;  %v2449_v48 = vshrl.u32 %v2324_v58, 16  ;;  %v9297_v58 = vshll.u32 %v6701_v42, 16 }
 0x1fe   : > { %9288 = vst [vmem:[#allocation25_spill] sm:$0xff] %v6793_v53  ;;  %v1862_v7 = vor.u32 %v9289_v14, %v6606_v37  ;;  %v1515_v41 = vsel %vm6126_vm13, %v1510_v21, %v9290_v49  ;;  %v1871_v26 = vor.u32 %v9292_v28, %v6617_v23  ;;  %v2131_v53 = vor.u32 %v6533_v50, %v6499_v36  ;;  %v9294_v14 = vld [vmem:[#allocation34_spill] sm:$0xff] }
 0x1ff   : > { %9291 = vst [vmem:[#allocation26_spill] sm:$0xff] %v6804_v46  ;;  %3362 = vrot.lane.b32.xlu1 %v4796_v10, %s5556_s28  ;;  %v4763_v37 = vcombine.low %v1507_v38, %v1515_v41  ;;  %v9295_v21 = vshll.u32 %v6440_v27, 16  ;;  %v9296_v36 = vshll.u32 %v6692_v9, 16  ;;  %v2461_v10 = vrot.slane %v6725_v22, 4 }
 0x200   : > { %v1863_v49 = vsel %vm6086_vm12, %v9294_v14, %v1862_v7  ;;  %v1872_v23 = vsel %vm6086_vm12, %v1864_v34, %v1871_v26  ;;  %v2132_v28 = vrot.slane %v2131_v53, 4  ;;  %v4749_v7 = vcombine.low %v6751_v15, %v6757_v57  ;;  %v6832_v26 = vpop.f32.mrb[29].mxu0 }
 0x201   : > { %v2133_v17 = vrot.slane %v9295_v21, 5  ;;  %v2459_v50 = vor.u32 %v9296_v36, %v6725_v22  ;;  %3168 = vrot.lane.b32.xlu0 %v4763_v37, %s5559_s8  ;;  %v4715_v38 = vrot.slane %v2449_v48, 11  ;;  %v2468_v0 = vor.u32 %v9297_v58, %v6727_v47  ;;  %9298 = vst [vmem:[#allocation27_spill] sm:$0xff] %v6832_v26  ;;  %v6841_v37 = vld [vmem:[#allocation2 + $0x94] sm:$0xf] }
 0x202   : > { %v4781_v53 = vcombine.low %v1863_v49, %v1872_v23  ;;  %v9299_v9 = vshll.u32 %v6603_v62, 16  ;;  %v2483_v22 = vrot.slane %v6647_v25, 4  ;;  %v9300_v41 = vshll.u32 %v6614_v5, 16  ;;  %v9304_v23 = vld [vmem:[#allocation36_spill] sm:$0xff] }
 0x203   : > { %v2136_v27 = vor.u32 %v6570_v59, %v2133_v17  ;;  %v6843_v59 = vpop.f32.mrb[30].mxu0  ;;  %3092 = vrot.lane.b32.xlu1 %v4749_v7, %s5555_s26  ;;  %v2134_v47 = vsel %vm6126_vm13, %v2132_v28, %v2133_v17  ;;  %v2460_v62 = vsel %vm6086_vm12, %v4715_v38, %v2459_v50  ;;  %v9302_v14 = vshll.u32 %v6733_v54, 16  ;;  %v6865_v28 = vld [vmem:[#allocation2 + $0x98] sm:$0xf]  ;;  %v1686_v50 = vld [vmem:[#allocation2 + $0x60] sm:$0x8] }
 0x204   : > { %v2481_v34 = vor.u32 %v9299_v9, %v6647_v25  ;;  %v2490_v15 = vor.u32 %v9300_v41, %v6662_v18  ;;  %9301 = vst [vmem:[#allocation28_spill] sm:$0xff] %v6843_v59  ;;  %v2469_v25 = vsel %vm6086_vm12, %v2461_v10, %v2468_v0  ;;  %v9303_v18 = vshrl.u32 %v6736_v33, 16  ;;  %v2717_v41 = vld [vmem:[#allocation2 + $0x7c] sm:$0x1] }
 0x205   : > { %v2137_v48 = vrot.slane %v2136_v27, 4  ;;  %v6854_v49 = vrot.slane %v9302_v14, 5  ;;  %v6867_v7 = vrot.slane %v1213_v43, 4  ;;  %v6869_v10 = vrot.slane %v1216_v12, 5  ;;  %3252 = vrot.lane.b32.xlu0 %v4781_v53, %s5558_s13  ;;  %v9305_v27 = vld [vmem:[#allocation35_spill] sm:$0xff] }
 0x206   : > { %v6858_v21 = vrot.slane %v9303_v18, 4  ;;  %v2482_v36 = vsel %vm6086_vm12, %v9304_v23, %v2481_v34  ;;  %v2491_v17 = vsel %vm6086_vm12, %v2483_v22, %v2490_v15  ;;  %v1901_v58 = vshrl.u32 %v6841_v37, 16  ;;  %v6882_v53 = vld [vmem:[#allocation2 + $0x94] sm:$0xf] }
 0x207   : > { %v2142_v38 = vsel %vm6126_vm13, %v2137_v48, %v9305_v27  ;;  %v6876_v0 = vrot.slane %v1222_v3, 4  ;;  %v4827_v34 = vcombine.low %v2460_v62, %v2469_v25  ;;  %v9104_v22 = vshll.u32 %v6841_v37, 16  ;;  %v6899_v27 = vpop.permute.xlu0 %3082 }
 0x208   : > { %v4810_v9 = vcombine.low %v2134_v47, %v2142_v38  ;;  %v4828_v15 = vcombine.low %v2482_v36, %v2491_v17  ;;  %v6879_v43 = vrot.slane %v1901_v58, 7  ;;  %v1910_v12 = vshrl.u32 %v6865_v28, 16 }
 0x209   : > { %v1830_v14 = vshrl.u32 %v1686_v50, 16  ;;  %v9306_v48 = vshll.u32 %v6733_v54, 16  ;;  %v1842_v47 = vrot.slane %v6763_v40, 4  ;;  %v9307_v62 = vshll.u32 %v6736_v33, 16  ;;  %3520 = vrot.lane.b32.xlu0 %v4827_v34, %s5561_s11 }
 0x20a   : > { %3438 = vrot.lane.b32.xlu1 %v4810_v9, %s5560_s12  ;;  %v2800_v18 = vor.u32 %v6668_v20, %v6664_v8  ;;  %v4799_v23 = vcombine.low %v6841_v37, %v6865_v28  ;;  %v9308_v17 = vshll.u32 %v6614_v5, 16  ;;  %v2808_v54 = vshll.u32 %v2717_v41, 16  ;;  %v6904_v9 = vld [vmem:[#allocation2 + $0x98] sm:$0xf] }
 0x20b   : > { %v1840_v3 = vor.u32 %v9306_v48, %v6763_v40  ;;  %v1849_v25 = vor.u32 %v9307_v62, %v6774_v39  ;;  %v4700_v36 = vrot.slane %v1830_v14, 11  ;;  %v6902_v38 = vrot.slane %v1901_v58, 4  ;;  %v2077_v14 = vld [vmem:[#allocation2 + $0x7c] sm:$0x1]  ;;  %v6912_v48 = vld [vmem:[#allocation2 + $0x94] sm:$0xf] }
 0x20c   : > { %v2802_v50 = vrot.slane %v9308_v17, 5  ;;  %v2801_v39 = vrot.slane %v2800_v18, 4  ;;  %v2520_v8 = vshrl.u32 %v6882_v53, 16  ;;  %v2810_v41 = vrot.slane %v2808_v54, 5  ;;  %v6914_v62 = vpop.f32.mrb[31].mxu0 }
 0x20d   : > { %v1841_v20 = vsel %vm6086_vm12, %v4700_v36, %v1840_v3  ;;  %v1850_v34 = vsel %vm6086_vm12, %v1842_v47, %v1849_v25  ;;  %9309 = vst [vmem:[#allocation44_spill] sm:$0xff] %v6914_v62  ;;  %v6917_v58 = vrot.slane %v1910_v12, 7  ;;  %v6921_v18 = vrot.slane %v9104_v22, 5  ;;  %v6926_v25 = vld [vmem:[#allocation2 + $0x98] sm:$0xf]  ;;  %3368 = vrot.lane.b32.xlu0 %v4799_v23, %s5556_s28 }
 0x20e   : > { %v2805_v5 = vor.u32 %v6684_v30, %v2802_v50  ;;  %3522 = vrot.lane.b32.xlu1 %v4828_v15, %s5561_s11  ;;  %v6923_v3 = vrot.slane %v1910_v12, 4  ;;  %9310 = vst [vmem:[#allocation46_spill] sm:$0xff] %v6926_v25  ;;  %v2803_v30 = vsel %vm6126_vm13, %v2801_v39, %v2802_v50  ;;  %v6931_v17 = vrot.slane %v2520_v8, 7 }
 0x20f   : > { %v2529_v15 = vshrl.u32 %v6904_v9, 16  ;;  %v4780_v54 = vcombine.low %v1841_v20, %v1850_v34  ;;  %v2173_v40 = vor.u32 %v6630_v1, %v6608_v61  ;;  %v9311_v12 = vshll.u32 %v6575_v4, 16 }
 0x210   : > { %v2806_v36 = vrot.slane %v2805_v5, 4  ;;  %v2181_v47 = vshll.u32 %v2077_v14, 16  ;;  %v1279_v50 = vshrl.u32 %v6912_v48, 16  ;;  %v1288_v39 = vshrl.u32 %v6926_v25, 16  ;;  %v6944_v5 = vpop.permute.xlu0 %3352 }
 0x211   : > { %v2175_v22 = vrot.slane %v9311_v12, 5  ;;  %v6940_v23 = vrot.slane %v2529_v15, 7  ;;  %9312 = vst [vmem:[#allocation47_spill] sm:$0xff] %v6944_v5  ;;  %v2174_v34 = vrot.slane %v2173_v40, 4  ;;  %v1282_v14 = vshll.u32 %v6912_v48, 16  ;;  %v6969_v12 = vpop.permute.xlu1 %3626 }
 0x212   : > { %v2811_v46 = vsel %vm6126_vm13, %v2806_v36, %v2810_v41  ;;  %3250 = vrot.lane.b32.xlu1 %v4780_v54, %s5558_s13  ;;  %v2183_v4 = vrot.slane %v2181_v47, 5  ;;  %v6948_v1 = vrot.slane %v1279_v50, 7  ;;  %v1290_v41 = vrot.slane %v1288_v39, 7  ;;  %v9316_v54 = vld [vmem:[#allocation49_spill] sm:$0xff]  ;;  %9317 = vst [vmem:[#allocation31_spill] sm:$0xff] %v6969_v12 }
 0x213   : > { %v4860_v20 = vcombine.low %v2803_v30, %v2811_v46  ;;  %v2178_v61 = vor.u32 %v6632_v55, %v2175_v22  ;;  %v9106_v36 = vshll.u32 %v6926_v25, 16  ;;  %v4846_v13 = vcombine.low %v6882_v53, %v6904_v9  ;;  %v7029_v5 = vld [vmem:[#allocation2 + $0x84] sm:$0xf] }
 0x214   : > { %9313 = vst [vmem:[#allocation29_spill] sm:$0xff] %v6948_v1  ;;  %v2176_v46 = vsel %vm6126_vm13, %v2174_v34, %v2175_v22  ;;  %v6958_v55 = vrot.slane %v2520_v8, 4  ;;  %v6961_v47 = vor.u32 %v1282_v14, %v6948_v1  ;;  %v9318_v62 = vshll.u32 %v6882_v53, 16  ;;  %v9319_v8 = vld [vmem:[#allocation50_spill] sm:$0xff]  ;;  %v6988_v1 = vld [vmem:[#allocation2 + $0x88] sm:$0xf] }
 0x215   : > { %3714 = vrot.lane.b32.xlu0 %v4860_v20, %s5562_s16  ;;  %v2179_v40 = vrot.slane %v2178_v61, 4  ;;  %v6965_v30 = vor.u32 %v9106_v36, %v1290_v41  ;;  %v631_v20 = vadd.f32 %v6680_v56, %v9316_v54  ;;  %v623_v34 = vadd.f32 %v6680_v56, %v9319_v8  ;;  %v9320_v61 = vld [vmem:[#allocation51_spill] sm:$0xff]  ;;  %v6982_v36 = vld [vmem:[#allocation2 + $0x84] sm:$0xf] }
 0x216   : > { %9314 = vst [vmem:[#allocation48_spill] sm:$0xff] %v6961_v47  ;;  %v6973_v59 = vrot.slane %v9318_v62, 5  ;;  %3638 = vrot.lane.b32.xlu1 %v4846_v13, %s5557_s30  ;;  %v634_v41 = vadd.f32 %v6680_v56, %v9320_v61  ;;  %v6984_v54 = vrot.slane %v2529_v15, 4  ;;  %v6990_v13 = vpop.permute.xlu0 %3080  ;;  %v6992_v12 = vrot.slane %v1282_v14, 5  ;;  %v1434_v61 = vld [vmem:[#allocation2 + $0x7c] sm:$0x1] }
 0x217   : > { %9315 = vst [vmem:[#allocation30_spill] sm:$0xff] %v6965_v30  ;;  %v2184_v22 = vsel %vm6126_vm13, %v2179_v40, %v2183_v4  ;;  %v6986_v30 = vrot.slane %v1279_v50, 4  ;;  %v707_v62 = vmax.f32 %v631_v20, 0.0  ;;  %v4752_v4 = vcombine.low %v6912_v48, %v6926_v25 }
 0x218   : > { %v4813_v47 = vcombine.low %v2176_v46, %v2184_v22  ;;  %9322 = vst [vmem:[#allocation34_spill] sm:$0xff] %v6992_v12  ;;  %v705_v40 = vmax.f32 %v623_v34, 0.0  ;;  %v708_v8 = vmax.f32 %v634_v41, 0.0  ;;  %v6997_v15 = vrot.slane %v1288_v39, 4  ;;  %v817_v22 = vld [vmem:[#allocation2 + $0x6c] sm:$0x1] }
 0x219   : > { %9321 = vst [vmem:[#allocation32_spill] sm:$0xff] %v6986_v30  ;;  %v4952_v46 = vpack.c.bf16 %v707_v62, %v707_v62  ;;  %v2498_v50 = vshrl.u32 %v6982_v36, 16  ;;  %v2507_v11 = vshrl.u32 %v6988_v1, 16  ;;  %v4845_v48 = vcombine.low %v6982_v36, %v6988_v1  ;;  %v9325_v62 = vld [vmem:[#allocation52_spill] sm:$0xff]  ;;  %v1034_v30 = vld [vmem:[#allocation2 + $0x30] sm:$0x8] }
 0x21a   : > { %3444 = vrot.lane.b32.xlu0 %v4813_v47, %s5560_s12  ;;  %9323 = vst [vmem:[#allocation36_spill] sm:$0xff] %v6997_v15  ;;  %3098 = vrot.lane.b32.xlu1 %v4752_v4, %s5555_s26  ;;  %v4950_v14 = vpack.c.bf16 %v705_v40, %v705_v40  ;;  %v4953_v26 = vpack.c.bf16 %v708_v8, %v708_v8  ;;  %v9324_v47 = vshll.u32 %v6635_v51, 16  ;;  %v1554_v41 = vshll.u32 %v1434_v61, 16  ;;  %v7012_v4 = vpop.permute.xlu1 %3086  ;;  %v9326_v8 = vld [vmem:[#allocation37_spill] sm:$0xff] }
 0x21b   : > { %1002 = vst.msk [vmem:[#allocation2 + $0xb4] sm:$0xf] %vm979_vm8, %v4952_v46  ;;  %v1546_v39 = vor.u32 %v6704_v45, %v6697_v60  ;;  %v626_v20 = vadd.f32 %v6680_v56, %v9325_v62  ;;  %v7016_v40 = vrot.slane %v2498_v50, 7  ;;  %v9327_v46 = vld [vmem:[#allocation22_spill] sm:$0xff]  ;;  %v9329_v51 = vld [vmem:[#allocation33_spill] sm:$0xff]  ;;  %v818_v29 = vsel %vm5880_vm7, 0, %v817_v22 }
 0x21c   : > { %v1548_v34 = vrot.slane %v9324_v47, 5  ;;  %1000 = vst.msk [vmem:[#allocation2 + $0xa4] sm:$0xf] %vm979_vm8, %v4950_v14  ;;  %1003 = vst.msk [vmem:[#allocation2 + $0xb8] sm:$0xf] %vm979_vm8, %v4953_v26  ;;  %v1109_v60 = vsel %vm6086_vm12, %v9327_v46, %v9326_v8  ;;  %v9328_v45 = vld [vmem:[#allocation38_spill] sm:$0xff]  ;;  %v7033_v8 = vpop.permute.xlu0 %3240 }
 0x21d   : > { %v9330_v47 = vrot.slane %v9329_v51, 4  ;;  %v1547_v26 = vrot.slane %v1546_v39, 4  ;;  %v1556_v15 = vrot.slane %v1554_v41, 5  ;;  %v706_v2 = vmax.f32 %v626_v20, 0.0  ;;  %819 = vst [vmem:[#allocation2 + $0x6c] sm:$0x1] %v818_v29 }
 0x21e   : > { %3636 = vrot.lane.b32.xlu0 %v4845_v48, %s5557_s30  ;;  %v1551_v14 = vor.u32 %v6706_v63, %v1548_v34  ;;  %9332 = vst [vmem:[#allocation35_spill] sm:$0xff] %v7033_v8  ;;  %v9333_v22 = vshll.u32 %v6701_v42, 16  ;;  %v7042_v63 = vld [vmem:[#allocation2 + $0x88] sm:$0xf]  ;;  %v1879_v29 = vshrl.u32 %v7029_v5, 16  ;;  %v7045_v20 = vrot.slane %v2507_v11, 7 }
 0x21f   : > { %v1118_v61 = vsel %vm6086_vm12, %v9330_v47, %v9328_v45  ;;  %v2786_v45 = vor.u32 %v6742_v44, %v6738_v35  ;;  %v1549_v48 = vsel %vm6126_vm13, %v1547_v26, %v1548_v34  ;;  %v4951_v25 = vpack.c.bf16 %v706_v2, %v706_v2  ;;  %v7059_v34 = vld [vmem:[#allocation2 + $0x84] sm:$0xf]  ;;  %v7061_v26 = vpop.permute.xlu1 %3162 }
 0x220   : > { %v4728_v51 = vcombine.low %v1109_v60, %v1118_v61  ;;  %v2788_v47 = vrot.slane %v9333_v22, 5  ;;  %v1552_v39 = vrot.slane %v1551_v14, 4  ;;  %v7047_v41 = vrot.slane %v2498_v50, 4 }
 0x221   : > { %v2787_v60 = vrot.slane %v2786_v45, 4  ;;  %v9335_v35 = vshll.u32 %v6982_v36, 16  ;;  %v7054_v44 = vrot.slane %v2507_v11, 4  ;;  %1001 = vst.msk [vmem:[#allocation2 + $0xa8] sm:$0xf] %vm979_vm8, %v4951_v25  ;;  %v7063_v14 = vrot.slane %v1879_v29, 7 }
 0x222   : > { %9334 = vst [vmem:[#allocation49_spill] sm:$0xff] %v7047_v41  ;;  %v2791_v61 = vor.u32 %v6744_v6, %v2788_v47  ;;  %v1557_v2 = vsel %vm6126_vm13, %v1552_v39, %v1556_v15  ;;  %v1888_v45 = vshrl.u32 %v7042_v63, 16  ;;  %v1532_v25 = vor.u32 %v6869_v10, %v6867_v7  ;;  %v7072_v15 = vld [vmem:[#allocation2 + $0x88] sm:$0xf]  ;;  %v7074_v39 = vpop.permute.xlu0 %3356 }
 0x223   : > { %v7052_v42 = vrot.slane %v9335_v35, 5  ;;  %9337 = vst [vmem:[#allocation51_spill] sm:$0xff] %v7054_v44  ;;  %v4766_v50 = vcombine.low %v1549_v48, %v1557_v2  ;;  %v7068_v35 = vrot.slane %v1879_v29, 4  ;;  %9339 = vst [vmem:[#allocation37_spill] sm:$0xff] %v7074_v39  ;;  %v7079_v48 = vsel %vm3736_vm14, %v4728_v51, %v6899_v27 }
 0x224   : > { %v2792_v22 = vrot.slane %v2791_v61, 4  ;;  %v2716_v2 = vld [vmem:[#allocation2 + $0x6c] sm:$0x1]  ;;  %v2789_v61 = vsel %vm6126_vm13, %v2787_v60, %v2788_v47  ;;  %v9340_v29 = vshll.u32 %v6757_v57, 16  ;;  %v1257_v7 = vshrl.u32 %v7059_v34, 16 }
 0x225   : > { %9336 = vst [vmem:[#allocation50_spill] sm:$0xff] %v7052_v42  ;;  %9338 = vst [vmem:[#allocation52_spill] sm:$0xff] %v7068_v35  ;;  %3174 = vrot.lane.b32.xlu1 %v4766_v50, %s5559_s8  ;;  %v1433_v11 = vld [vmem:[#allocation2 + $0x6c] sm:$0x1]  ;;  %v2794_v10 = vshll.u32 %v2716_v2, 16  ;;  %v4798_v6 = vcombine.low %v7029_v5, %v7042_v63  ;;  %v1533_v39 = vrot.slane %v1532_v25, 4  ;;  %v4751_v42 = vcombine.low %v7059_v34, %v7072_v15 }
 0x226   : > { %v1534_v46 = vrot.slane %v9340_v29, 5  ;;  %v1540_v50 = vshll.u32 %v1433_v11, 16  ;;  %v7089_v27 = vrot.slane %v1257_v7, 7  ;;  %v1260_v51 = vshll.u32 %v7059_v34, 16  ;;  %v742_v60 = vld [vmem:[#allocation2] sm:$0x8]  ;;  %v7099_v11 = vpop.permute.xlu1 %3354 }
 0x227   : > { %v9111_v47 = vshrl.u32 %v7072_v15, 16  ;;  %v2796_v44 = vrot.slane %v2794_v10, 5  ;;  %v9342_v57 = vshll.u32 %v7029_v5, 16  ;;  %v769_v25 = vld [vmem:[#allocation2 + $0x90] sm:$0x8]  ;;  %9344 = vst [vmem:[#allocation33_spill] sm:$0xff] %v7099_v11 }
 0x228   : > { %v1537_v35 = vor.u32 %v6876_v0, %v1534_v46  ;;  %9341 = vst [vmem:[#allocation22_spill] sm:$0xff] %v7089_v27  ;;  %v1542_v2 = vrot.slane %v1540_v50, 5  ;;  %v7103_v41 = vor.u32 %v1260_v51, %v7089_v27  ;;  %v9112_v12 = vshll.u32 %v7072_v15, 16  ;;  %v7115_v27 = vpop.permute.xlu0 %3432 }
 0x229   : > { %v7095_v29 = vrot.slane %v9342_v57, 5  ;;  %3366 = vrot.lane.b32.xlu1 %v4798_v6, %s5556_s28  ;;  %v1268_v10 = vrot.slane %v9111_v47, 7  ;;  %v2797_v50 = vsel %vm6126_vm13, %v2792_v22, %v2796_v44  ;;  %v1535_v34 = vsel %vm6126_vm13, %v1533_v39, %v1534_v46  ;;  %v766_v44 = vld [vmem:[#allocation2 + $0x80] sm:$0x8] }
 0x22a   : > { %v1538_v0 = vrot.slane %v1537_v35, 4  ;;  %9345 = vst [vmem:[#allocation18_spill] sm:$0xff] %v7103_v41  ;;  %v743_v11 = vsel %vm5869_vm4, 0, %v742_v60  ;;  %v2076_v35 = vld [vmem:[#allocation2 + $0x6c] sm:$0x1]  ;;  %v4859_v41 = vcombine.low %v2789_v61, %v2797_v50  ;;  %v770_v46 = vsel %vm5869_vm4, 0, %v769_v25 }
 0x22b   : > { %9343 = vst [vmem:[#allocation38_spill] sm:$0xff] %v7095_v29  ;;  %v9347_v29 = vld [vmem:[#allocation39_spill] sm:$0xff]  ;;  %v7121_v8 = vor.u32 %v9112_v12, %v1268_v10  ;;  %744 = vst [vmem:[#allocation2] sm:$0x8] %v743_v11  ;;  %v7125_v22 = vrot.slane %v1888_v45, 7  ;;  %v7127_v39 = vrot.slane %v1888_v45, 4  ;;  %v2159_v25 = vor.u32 %v6854_v49, %v6781_v31 }
 0x22c   : > { %v1088_v6 = vrot.slane %v9347_v29, 4  ;;  %v1543_v47 = vsel %vm6126_vm13, %v1538_v0, %v1542_v2  ;;  %v9349_v60 = vld [vmem:[#allocation40_spill] sm:$0xff]  ;;  %771 = vst [vmem:[#allocation2 + $0x90] sm:$0x8] %v770_v46  ;;  %v9350_v29 = vshll.u32 %v6841_v37, 16  ;;  %3712 = vrot.lane.b32.xlu0 %v4859_v41, %s5562_s16  ;;  %v9351_v45 = vshll.u32 %v6736_v33, 16  ;;  %v7152_v41 = vpop.permute.xlu0 %3624 }
 0x22d   : > { %9348 = vst [vmem:[#allocation17_spill] sm:$0xff] %v7121_v8  ;;  %3096 = vrot.lane.b32.xlu1 %v4751_v42, %s5555_s26  ;;  %v2167_v0 = vshll.u32 %v2076_v35, 16  ;;  %v1142_v10 = vshrl.u32 %v1034_v30, 16  ;;  %v4765_v50 = vcombine.low %v1535_v34, %v1543_v47  ;;  %v9352_v46 = vld [vmem:[#allocation42_spill] sm:$0xff]  ;;  %v767_v37 = vsel %vm5869_vm4, 0, %v766_v44  ;;  %v9354_v34 = vld [vmem:[#allocation45_spill] sm:$0xff] }
 0x22e   : > { %v7132_v61 = vsel %vm6086_vm12, %v1088_v6, %v9349_v60  ;;  %v7137_v2 = vor.u32 %v9350_v29, %v6879_v43  ;;  %v2161_v11 = vrot.slane %v9351_v45, 5  ;;  %v7145_v6 = vrot.slane %v1257_v7, 4  ;;  %v7150_v29 = vpop.permute.xlu1 %3084  ;;  %768 = vst [vmem:[#allocation2 + $0x80] sm:$0x8] %v767_v37  ;;  %v9355_v45 = vld [vmem:[#allocation43_spill] sm:$0xff] }
 0x22f   : > { %v1154_v60 = vrot.slane %v9352_v46, 4  ;;  %v2160_v42 = vrot.slane %v2159_v25, 4  ;;  %v2169_v49 = vrot.slane %v2167_v0, 5  ;;  %v4682_v33 = vrot.slane %v1142_v10, 11 }
 0x230   : > { %v2164_v31 = vor.u32 %v6858_v21, %v2161_v11  ;;  %v1908_v30 = vrot.slane %v6879_v43, 4  ;;  %v9353_v7 = vshll.u32 %v6865_v28, 16  ;;  %v2505_v44 = vrot.slane %v7016_v40, 4  ;;  %3172 = vrot.lane.b32.xlu0 %v4765_v50, %s5559_s8 }
 0x231   : > { %v1162_v35 = vsel %vm6086_vm12, %v1154_v60, %v9354_v34  ;;  %v2162_v21 = vsel %vm6126_vm13, %v2160_v42, %v2161_v11  ;;  %v1153_v43 = vsel %vm6086_vm12, %v4682_v33, %v9355_v45  ;;  %v9356_v0 = vshll.u32 %v6988_v1, 16  ;;  %v7178_v11 = vld [vmem:[#allocation2 + $0xb4] sm:$0xf]  ;;  %v7180_v42 = vpop.permute.xlu0 %3244 }
 0x232   : > { %v1915_v47 = vor.u32 %v9353_v7, %v6917_v58  ;;  %v2165_v25 = vrot.slane %v2164_v31, 4  ;;  %v7172_v10 = vrot.slane %v1260_v51, 5  ;;  %v1025_v46 = vld [vmem:[#allocation2] sm:$0x8]  ;;  %v4730_v60 = vcombine.low %v1153_v43, %v1162_v35  ;;  %9358 = vst [vmem:[#allocation39_spill] sm:$0xff] %v7180_v42  ;;  %v7191_v12 = vpop.permute.xlu1 %3160 }
 0x233   : > { %v2512_v58 = vor.u32 %v9356_v0, %v7045_v20  ;;  %v2527_v37 = vrot.slane %v6931_v17, 4  ;;  %v9357_v50 = vshll.u32 %v6904_v9, 16  ;;  %v9359_v31 = vshrl.u32 %v7072_v15, 16  ;;  %v1695_v20 = vld [vmem:[#allocation2 + $0x90] sm:$0x8] }
 0x234   : > { %v1076_v34 = vshrl.u32 %v1025_v46, 16  ;;  %v2170_v51 = vsel %vm6126_vm13, %v2165_v25, %v2169_v49  ;;  %v2333_v35 = vld [vmem:[#allocation2 + $0x90] sm:$0x8]  ;;  %v9360_v45 = vshll.u32 %v6882_v53, 16  ;;  %v1896_v0 = vshrl.u32 %v1695_v20, 16 }
 0x235   : > { %v2534_v7 = vor.u32 %v9357_v50, %v6940_v23  ;;  %v7184_v33 = vrot.slane %v9359_v31, 4  ;;  %v4812_v23 = vcombine.low %v2162_v21, %v2170_v51  ;;  %v2515_v50 = vshrl.u32 %v2333_v35, 16  ;;  %v2330_v53 = vld [vmem:[#allocation2 + $0x80] sm:$0x8]  ;;  %v7204_v20 = vpop.permute.xlu0 %3512 }
 0x236   : > { %v2525_v43 = vor.u32 %v9360_v45, %v6931_v17  ;;  %v4679_v8 = vrot.slane %v1076_v34, 11  ;;  %v1916_v31 = vsel %vm6086_vm12, %v1908_v30, %v1915_v47  ;;  %v9361_v46 = vshll.u32 %v6982_v36, 16  ;;  %v9362_v30 = vld [vmem:[#allocation41_spill] sm:$0xff]  ;;  %v7228_v35 = vpop.permute.xlu1 %3514 }
 0x237   : > { %v2513_v49 = vsel %vm6086_vm12, %v2505_v44, %v2512_v58  ;;  %v4703_v25 = vrot.slane %v1896_v0, 11  ;;  %3442 = vrot.lane.b32.xlu1 %v4812_v23, %s5560_s12  ;;  %v4718_v17 = vrot.slane %v2515_v50, 11  ;;  %v2535_v21 = vsel %vm6086_vm12, %v2527_v37, %v2534_v7  ;;  %v7218_v58 = vld [vmem:[#allocation2 + $0xb8] sm:$0xf]  ;;  %v1692_v37 = vld [vmem:[#allocation2 + $0x80] sm:$0x8] }
 0x238   : > { %v2503_v42 = vor.u32 %v9361_v46, %v7016_v40  ;;  %v1945_v34 = vshrl.u32 %v7178_v11, 16  ;;  %v1087_v36 = vsel %vm6086_vm12, %v4679_v8, %v9362_v30  ;;  %v7211_v40 = vsel %vm3736_vm14, %v4730_v60, %v7012_v4  ;;  %v826_v60 = vld [vmem:[#allocation2 + $0x9c] sm:$0x1]  ;;  %9363 = vst [vmem:[#allocation40_spill] sm:$0xff] %v7228_v35 }
 0x239   : > { %v2493_v47 = vshrl.u32 %v2330_v53, 16  ;;  %v7216_v44 = vsel %vm3785_vm15, %v7079_v48, %v7061_v26  ;;  %v4727_v7 = vcombine.low %v1087_v36, %v7132_v61  ;;  %v1907_v51 = vsel %vm6086_vm12, %v4703_v25, %v7137_v2 }
 0x23a   : > { %v2526_v8 = vsel %vm6086_vm12, %v4718_v17, %v2525_v43  ;;  %v7226_v4 = vrot.slane %v1945_v34, 7  ;;  %v4783_v45 = vcombine.low %v1907_v51, %v1916_v31  ;;  %v9113_v0 = vshll.u32 %v7178_v11, 16  ;;  %v7236_v43 = vpop.permute.xlu0 %3360 }
 0x23b   : > { %v4717_v26 = vrot.slane %v2493_v47, 11  ;;  %v4830_v48 = vcombine.low %v2526_v8, %v2535_v21  ;;  %v1954_v23 = vshrl.u32 %v7218_v58, 16  ;;  %v1874_v50 = vshrl.u32 %v1692_v37, 16  ;;  %9365 = vst [vmem:[#allocation42_spill] sm:$0xff] %v7236_v43 }
 0x23c   : > { %v9364_v2 = vshll.u32 %v7029_v5, 16  ;;  %3256 = vrot.lane.b32.xlu0 %v4783_v45, %s5558_s13  ;;  %v1886_v25 = vrot.slane %v7063_v14, 4  ;;  %v9366_v53 = vshll.u32 %v7042_v63, 16  ;;  %v827_v21 = vsel %vm5880_vm7, 0, %v826_v60  ;;  %v7248_v5 = vld [vmem:[#allocation2 + $0xb4] sm:$0xf] }
 0x23d   : > { %v2504_v31 = vsel %vm6086_vm12, %v4717_v26, %v2503_v42  ;;  %3526 = vrot.lane.b32.xlu1 %v4830_v48, %s5561_s11  ;;  %v7250_v30 = vrot.slane %v1945_v34, 4  ;;  %v4702_v36 = vrot.slane %v1874_v50, 11  ;;  %828 = vst [vmem:[#allocation2 + $0x9c] sm:$0x1] %v827_v21  ;;  %v2828_v42 = vor.u32 %v6973_v59, %v6958_v55  ;;  %v7268_v60 = vld [vmem:[#allocation2 + $0xb8] sm:$0xf] }
 0x23e   : > { %v1884_v46 = vor.u32 %v9364_v2, %v7063_v14  ;;  %v1893_v17 = vor.u32 %v9366_v53, %v7125_v22  ;;  %v9367_v47 = vshll.u32 %v6904_v9, 16  ;;  %v7258_v14 = vpop.permute.xlu1 %3242  ;;  %v4829_v51 = vcombine.low %v2504_v31, %v2513_v49  ;;  %v7270_v45 = vpop.f32.mrb[32].mxu0  ;;  %v1031_v26 = vld [vmem:[#allocation2 + $0x20] sm:$0x8]  ;;  %v1059_v53 = vld [vmem:[#allocation2 + $0xb4] sm:$0xf] }
 0x23f   : > { %v7260_v22 = vrot.slane %v1954_v23, 7  ;;  %v7264_v8 = vrot.slane %v9113_v0, 5  ;;  %9368 = vst [vmem:[#allocation45_spill] sm:$0xff] %v7270_v45  ;;  %v2829_v9 = vrot.slane %v2828_v42, 4  ;;  %v2564_v49 = vshrl.u32 %v7248_v5, 16  ;;  %v7277_v48 = vpop.permute.xlu0 %3706  ;;  %v7279_v50 = vpop.f32.mrb[33].mxu0 }
 0x240   : > { %v7256_v37 = vrot.slane %v9367_v47, 5  ;;  %v1894_v34 = vsel %vm6086_vm12, %v1886_v25, %v1893_v17  ;;  %v1885_v59 = vsel %vm6086_vm12, %v4702_v36, %v1884_v46  ;;  %9369 = vst [vmem:[#allocation43_spill] sm:$0xff] %v7277_v48  ;;  %9370 = vst [vmem:[#allocation41_spill] sm:$0xff] %v7279_v50  ;;  %v3739_v2 = vsel %vm3736_vm14, %v4727_v7, %v6990_v13  ;;  %v7290_v17 = vpop.f32.mrb[34].mxu0 }
 0x241   : > { %3524 = vrot.lane.b32.xlu0 %v4829_v51, %s5561_s11  ;;  %v7284_v31 = vrot.slane %v1954_v23, 4  ;;  %v4801_v46 = vcombine.low %v7178_v11, %v7218_v58  ;;  %v4782_v25 = vcombine.low %v1885_v59, %v1894_v34  ;;  %9372 = vst [vmem:[#allocation64_spill] sm:$0xff] %v7290_v17  ;;  %v7292_v21 = vrot.slane %v2564_v49, 7  ;;  %v7299_v23 = vpop.f32.mrb[35].mxu0  ;;  %v9375_v34 = vld [vmem:[#allocation54_spill] sm:$0xff] }
 0x242   : > { %v2833_v55 = vor.u32 %v6984_v54, %v7256_v37  ;;  %v7288_v54 = vld [vmem:[#allocation2 + $0xb8] sm:$0xf]  ;;  %v2573_v42 = vshrl.u32 %v7268_v60, 16  ;;  %v7297_v7 = vpop.permute.xlu1 %3630  ;;  %9374 = vst [vmem:[#allocation66_spill] sm:$0xff] %v7299_v23  ;;  %v2831_v47 = vsel %vm6126_vm13, %v2829_v9, %v7256_v37  ;;  %v1120_v51 = vshrl.u32 %v1031_v26, 16 }
 0x243   : > { %9371 = vst [vmem:[#allocation63_spill] sm:$0xff] %v7288_v54  ;;  %9373 = vst [vmem:[#allocation65_spill] sm:$0xff] %v7297_v7  ;;  %3254 = vrot.lane.b32.xlu1 %v4782_v25, %s5558_s13  ;;  %v1132_v59 = vrot.slane %v9375_v34, 4  ;;  %v2201_v0 = vor.u32 %v6921_v18, %v6902_v38  ;;  %v9376_v36 = vshll.u32 %v6865_v28, 16  ;;  %v1323_v43 = vshrl.u32 %v1059_v53, 16  ;;  %v7310_v17 = vpop.permute.xlu0 %3436  ;;  %v9378_v26 = vld [vmem:[#allocation55_spill] sm:$0xff] }
 0x244   : > { %v2834_v61 = vrot.slane %v2833_v55, 4  ;;  %v1326_v7 = vshll.u32 %v1059_v53, 16  ;;  %9377 = vst [vmem:[#allocation54_spill] sm:$0xff] %v7310_v17  ;;  %v2719_v25 = vld [vmem:[#allocation2 + $0x9c] sm:$0x1]  ;;  %v4848_v37 = vcombine.low %v7248_v5, %v7268_v60  ;;  %v4681_v9 = vrot.slane %v1120_v51, 11 }
 0x245   : > { %v2203_v13 = vrot.slane %v9376_v36, 5  ;;  %3372 = vrot.lane.b32.xlu0 %v4801_v46, %s5556_s28  ;;  %v1140_v34 = vsel %vm6086_vm12, %v1132_v59, %v9378_v26  ;;  %v2079_v38 = vld [vmem:[#allocation2 + $0x9c] sm:$0x1]  ;;  %v1332_v18 = vshrl.u32 %v7288_v54, 16  ;;  %v2836_v28 = vshll.u32 %v2719_v25, 16  ;;  %v9380_v46 = vld [vmem:[#allocation58_spill] sm:$0xff] }
 0x246   : > { %v2209_v36 = vshll.u32 %v2079_v38, 16  ;;  %v7320_v23 = vrot.slane %v1323_v43, 7  ;;  %v1131_v50 = vsel %vm6086_vm12, %v4681_v9, %v9380_v46  ;;  %v2202_v51 = vrot.slane %v2201_v0, 4  ;;  %v7327_v59 = vpop.permute.xlu1 %3090 }
 0x247   : > { %v2206_v55 = vor.u32 %v6923_v3, %v2203_v13  ;;  %3642 = vrot.lane.b32.xlu1 %v4848_v37, %s5557_s30  ;;  %v1334_v45 = vrot.slane %v1332_v18, 7  ;;  %v9114_v17 = vshll.u32 %v7288_v54, 16  ;;  %v2838_v26 = vrot.slane %v2836_v28, 5  ;;  %v7329_v3 = vpop.permute.xlu0 %3628 }
 0x248   : > { %9379 = vst [vmem:[#allocation55_spill] sm:$0xff] %v7320_v23  ;;  %v4729_v48 = vcombine.low %v1131_v50, %v1140_v34  ;;  %v2211_v35 = vrot.slane %v2209_v36, 5  ;;  %9381 = vst [vmem:[#allocation58_spill] sm:$0xff] %v7329_v3  ;;  %v7331_v38 = vrot.slane %v2573_v42, 7  ;;  %v7334_v37 = vor.u32 %v1326_v7, %v7320_v23  ;;  %v9399_v3 = vld [vmem:[#allocation50_spill] sm:$0xff] }
 0x249   : > { %v2207_v25 = vrot.slane %v2206_v55, 4  ;;  %v7338_v9 = vor.u32 %v9114_v17, %v1334_v45  ;;  %v4754_v0 = vcombine.low %v1059_v53, %v7288_v54  ;;  %v2839_v46 = vsel %vm6126_vm13, %v2834_v61, %v2838_v26  ;;  %v7375_v26 = vld [vmem:[#allocation2 + $0xa8] sm:$0xf] }
 0x24a   : > { %9382 = vst [vmem:[#allocation67_spill] sm:$0xff] %v7334_v37  ;;  %v7343_v28 = vrot.slane %v2564_v49, 4  ;;  %v9384_v50 = vshll.u32 %v7248_v5, 16  ;;  %v7349_v55 = vrot.slane %v2573_v42, 4  ;;  %v4862_v36 = vcombine.low %v2831_v47, %v2839_v46  ;;  %v7358_v49 = vld [vmem:[#allocation2 + $0xa4] sm:$0xf] }
 0x24b   : > { %9383 = vst [vmem:[#allocation68_spill] sm:$0xff] %v7338_v9  ;;  %v2204_v37 = vsel %vm6126_vm13, %v2202_v51, %v2203_v13  ;;  %v2212_v45 = vsel %vm6126_vm13, %v2207_v25, %v2211_v35  ;;  %3102 = vrot.lane.b32.xlu1 %v4754_v0, %s5555_s26  ;;  %v647_v61 = vadd.f32 %v6680_v56, %v6426_v24  ;;  %v7371_v47 = vrot.slane %v1323_v43, 4  ;;  %v7382_v0 = vpop.permute.xlu0 %3704  ;;  %v9388_v43 = vld [vmem:[#allocation35_spill] sm:$0xff]  ;;  %v9394_v46 = vld [vmem:[#allocation20_spill] sm:$0xff] }
 0x24c   : > { %v7347_v34 = vrot.slane %v9384_v50, 5  ;;  %v3787_v53 = vsel %vm3785_vm15, %v3739_v2, %v7191_v12  ;;  %v639_v42 = vadd.f32 %v6680_v56, %v6442_v19  ;;  %v650_v13 = vadd.f32 %v6680_v56, %v6452_v32  ;;  %3718 = vrot.lane.b32.xlu0 %v4862_v36, %s5562_s16  ;;  %v7377_v12 = vpop.permute.xlu1 %3166  ;;  %v1436_v56 = vld [vmem:[#allocation2 + $0x9c] sm:$0x1]  ;;  %v823_v50 = vld [vmem:[#allocation2 + $0x8c] sm:$0x1] }
 0x24d   : > { %v7369_v35 = vsel %vm3736_vm14, %v4729_v48, %v7150_v29  ;;  %9385 = vst [vmem:[#allocation69_spill] sm:$0xff] %v7371_v47  ;;  %v7373_v24 = vrot.slane %v1326_v7, 5  ;;  %v711_v51 = vmax.f32 %v647_v61, 0.0  ;;  %v7379_v2 = vrot.slane %v1332_v18, 4 }
 0x24e   : > { %v709_v19 = vmax.f32 %v639_v42, 0.0  ;;  %v712_v25 = vmax.f32 %v650_v13, 0.0  ;;  %v2542_v32 = vshrl.u32 %v7358_v49, 16  ;;  %v4815_v29 = vcombine.low %v2204_v37, %v2212_v45  ;;  %v9389_v42 = vld [vmem:[#allocation32_spill] sm:$0xff]  ;;  %v9390_v13 = vld [vmem:[#allocation34_spill] sm:$0xff] }
 0x24f   : > { %9386 = vst [vmem:[#allocation70_spill] sm:$0xff] %v7373_v24  ;;  %9387 = vst [vmem:[#allocation71_spill] sm:$0xff] %v7379_v2  ;;  %v4956_v48 = vpack.c.bf16 %v711_v51, %v711_v51  ;;  %v3820_v7 = vsel %vm3818_vm0, %v3787_v53, %v9388_v43  ;;  %v2551_v18 = vshrl.u32 %v7375_v26, 16  ;;  %v1574_v37 = vor.u32 %v9390_v13, %v9389_v42  ;;  %v9391_v45 = vld [vmem:[#allocation46_spill] sm:$0xff]  ;;  %v7396_v43 = vld [vmem:[#allocation8] ss:$0 sm:$0xff]  ;;  %v7411_v23 = vpop.permute.xlu0 %3164 }
 0x250   : > { %v4954_v36 = vpack.c.bf16 %v709_v19, %v709_v19  ;;  %v4957_v61 = vpack.c.bf16 %v712_v25, %v712_v25  ;;  %v7387_v17 = vrot.slane %v2542_v32, 7  ;;  %3448 = vrot.lane.b32.xlu0 %v4815_v29, %s5560_s12  ;;  %v9392_v51 = vshll.u32 %v9391_v45, 16  ;;  %9393 = vst [vmem:[#allocation35_spill] sm:$0xff] %v7396_v43  ;;  %v7400_v25 = vpop.permute.xlu1 %3358  ;;  %v9396_v42 = vld [vmem:[#allocation36_spill] sm:$0xff] }
 0x251   : > { %1006 = vst.msk [vmem:[#allocation2 + $0xd4] sm:$0xf] %vm979_vm8, %v4956_v48  ;;  %v1582_v53 = vshll.u32 %v1436_v56, 16  ;;  %v642_v19 = vadd.f32 %v7396_v43, %v9394_v46  ;;  %9395 = vst [vmem:[#allocation32_spill] sm:$0xff] %v7400_v25  ;;  %v4847_v29 = vcombine.low %v7358_v49, %v7375_v26  ;;  %v824_v48 = vsel %vm5880_vm7, 0, %v823_v50  ;;  %v9398_v25 = vld [vmem:[#allocation49_spill] sm:$0xff] }
 0x252   : > { %v1576_v9 = vrot.slane %v9392_v51, 5  ;;  %1004 = vst.msk [vmem:[#allocation2 + $0xc4] sm:$0xf] %vm979_vm8, %v4954_v36  ;;  %1007 = vst.msk [vmem:[#allocation2 + $0xd8] sm:$0xf] %vm979_vm8, %v4957_v61  ;;  %v1575_v56 = vrot.slane %v1574_v37, 4  ;;  %v2814_v2 = vor.u32 %v9399_v3, %v9398_v25 }
 0x253   : > { %v1584_v45 = vrot.slane %v1582_v53, 5  ;;  %v710_v51 = vmax.f32 %v642_v19, 0.0  ;;  %825 = vst [vmem:[#allocation2 + $0x8c] sm:$0x1] %v824_v48  ;;  %v7409_v46 = vld [vmem:[#allocation2 + $0xa4] sm:$0xf] }
 0x254   : > { %v1579_v13 = vor.u32 %v9396_v42, %v1576_v9  ;;  %v9397_v36 = vld [vmem:[#allocation47_spill] sm:$0xff]  ;;  %v9400_v54 = vshll.u32 %v6988_v1, 16  ;;  %3640 = vrot.lane.b32.xlu0 %v4847_v29, %s5557_s30  ;;  %v1577_v37 = vsel %vm6126_vm13, %v1575_v56, %v1576_v9  ;;  %v7426_v42 = vpop.permute.xlu1 %3088  ;;  %v1923_v25 = vshrl.u32 %v7409_v46, 16 }
 0x255   : > { %v3853_v61 = vsel %vm3851_vm1, %v3820_v7, %v9397_v36  ;;  %v4955_v19 = vpack.c.bf16 %v710_v51, %v710_v51  ;;  %9401 = vst [vmem:[#allocation34_spill] sm:$0xff] %v7426_v42  ;;  %v2815_v36 = vrot.slane %v2814_v2, 4  ;;  %v9402_v3 = vld [vmem:[#allocation51_spill] sm:$0xff]  ;;  %v7434_v29 = vrot.slane %v2551_v18, 7  ;;  %v7445_v2 = vld [vmem:[#allocation2 + $0xa4] sm:$0xf] }
 0x256   : > { %v7419_v50 = vrot.slane %v9400_v54, 5  ;;  %v1580_v53 = vrot.slane %v1579_v13, 4  ;;  %v3886_v48 = vsel %vm3884_vm2, %v3853_v61, %v7115_v27  ;;  %v7431_v54 = vld [vmem:[#allocation2 + $0xa8] sm:$0xf]  ;;  %v7436_v9 = vrot.slane %v2542_v32, 4 }
 0x257   : > { %v9404_v56 = vshll.u32 %v7358_v49, 16  ;;  %1005 = vst.msk [vmem:[#allocation2 + $0xc8] sm:$0xf] %vm979_vm8, %v4955_v19  ;;  %v7447_v51 = vrot.slane %v2551_v18, 4  ;;  %v7453_v32 = vrot.slane %v1923_v25, 7 }
 0x258   : > { %v2819_v1 = vor.u32 %v9402_v3, %v7419_v50  ;;  %9403 = vst [vmem:[#allocation46_spill] sm:$0xff] %v7436_v9  ;;  %v1585_v27 = vsel %vm6126_vm13, %v1580_v53, %v1584_v45  ;;  %v7451_v3 = vsel %vm3917_vm3, %v3886_v48, %v7204_v20  ;;  %v7455_v7 = vld [vmem:[#allocation2 + $0xa8] sm:$0xf]  ;;  %v1932_v53 = vshrl.u32 %v7431_v54, 16  ;;  %v775_v42 = vld [vmem:[#allocation2 + $0xb0] sm:$0x8] }
 0x259   : > { %v7440_v13 = vrot.slane %v9404_v56, 5  ;;  %9406 = vst [vmem:[#allocation36_spill] sm:$0xff] %v7447_v51  ;;  %v4768_v61 = vcombine.low %v1577_v37, %v1585_v27  ;;  %v7457_v56 = vpop.permute.xlu0 %3248  ;;  %v2817_v20 = vsel %vm6126_vm13, %v2815_v36, %v7419_v50  ;;  %v1560_v48 = vor.u32 %v7172_v10, %v7145_v6 }
 0x25a   : > { %9407 = vst [vmem:[#allocation47_spill] sm:$0xff] %v7457_v56  ;;  %v2718_v18 = vld [vmem:[#allocation2 + $0x8c] sm:$0x1]  ;;  %v9408_v27 = vshll.u32 %v7072_v15, 16  ;;  %v1301_v45 = vshrl.u32 %v7445_v2, 16  ;;  %v7471_v56 = vpop.permute.xlu1 %3434  ;;  %v1310_v9 = vshrl.u32 %v7455_v7, 16 }
 0x25b   : > { %9405 = vst [vmem:[#allocation20_spill] sm:$0xff] %v7440_v13  ;;  %v2820_v13 = vrot.slane %v2819_v1, 4  ;;  %3178 = vrot.lane.b32.xlu1 %v4768_v61, %s5559_s8  ;;  %v1435_v37 = vld [vmem:[#allocation2 + $0x8c] sm:$0x1]  ;;  %9409 = vst [vmem:[#allocation49_spill] sm:$0xff] %v7471_v56  ;;  %v2822_v51 = vshll.u32 %v2718_v18, 16  ;;  %v4800_v61 = vcombine.low %v7409_v46, %v7431_v54 }
 0x25c   : > { %v1562_v1 = vrot.slane %v9408_v27, 5  ;;  %v1568_v19 = vshll.u32 %v1435_v37, 16  ;;  %v1561_v24 = vrot.slane %v1560_v48, 4  ;;  %v7477_v36 = vrot.slane %v1301_v45, 7 }
 0x25d   : > { %v1304_v6 = vshll.u32 %v7445_v2, 16  ;;  %v2824_v15 = vrot.slane %v2822_v51, 5  ;;  %v1312_v27 = vrot.slane %v1310_v9, 7  ;;  %v7481_v18 = vrot.slane %v1923_v25, 4  ;;  %v7489_v56 = vpop.permute.xlu0 %3516 }
 0x25e   : > { %v1565_v50 = vor.u32 %v7184_v33, %v1562_v1  ;;  %9410 = vst [vmem:[#allocation50_spill] sm:$0xff] %v7477_v36  ;;  %v1570_v10 = vrot.slane %v1568_v19, 5  ;;  %v1563_v37 = vsel %vm6126_vm13, %v1561_v24, %v1562_v1  ;;  %v7491_v43 = vpop.permute.xlu1 %3518  ;;  %v7495_v19 = vrot.slane %v1932_v53, 7  ;;  %v2078_v1 = vld [vmem:[#allocation2 + $0x8c] sm:$0x1] }
 0x25f   : > { %9411 = vst [vmem:[#allocation51_spill] sm:$0xff] %v7481_v18  ;;  %3370 = vrot.lane.b32.xlu1 %v4800_v61, %s5556_s28  ;;  %v7487_v33 = vor.u32 %v1304_v6, %v7477_v36  ;;  %9413 = vst [vmem:[#allocation73_spill] sm:$0xff] %v7491_v43  ;;  %v2825_v51 = vsel %vm6126_vm13, %v2820_v13, %v2824_v15  ;;  %v9414_v25 = vshll.u32 %v7409_v46, 16  ;;  %v9415_v61 = vshll.u32 %v7455_v7, 16  ;;  %v772_v15 = vld [vmem:[#allocation2 + $0xa0] sm:$0x8] }
 0x260   : > { %v1566_v48 = vrot.slane %v1565_v50, 4  ;;  %v1040_v50 = vld [vmem:[#allocation2 + $0x50] sm:$0x8]  ;;  %v4753_v43 = vcombine.low %v7445_v2, %v7455_v7  ;;  %v776_v13 = vsel %vm5869_vm4, 0, %v775_v42  ;;  %v7511_v18 = vrot.slane %v1932_v53, 4 }
 0x261   : > { %9412 = vst [vmem:[#allocation72_spill] sm:$0xff] %v7487_v33  ;;  %v7499_v47 = vrot.slane %v9414_v25, 5  ;;  %v7503_v24 = vor.u32 %v9415_v61, %v1312_v27  ;;  %v4861_v33 = vcombine.low %v2817_v20, %v2825_v51  ;;  %v7516_v27 = vsel %vm3818_vm0, %v7216_v44, %v7258_v14  ;;  %777 = vst [vmem:[#allocation2 + $0xb0] sm:$0x8] %v776_v13  ;;  %v9418_v20 = vld [vmem:[#allocation52_spill] sm:$0xff]  ;;  %v9419_v51 = vld [vmem:[#allocation38_spill] sm:$0xff] }
 0x262   : > { %v1571_v36 = vsel %vm6126_vm13, %v1566_v48, %v1570_v10  ;;  %9417 = vst [vmem:[#allocation75_spill] sm:$0xff] %v7511_v18  ;;  %v2187_v61 = vor.u32 %v9419_v51, %v9418_v20  ;;  %v9420_v2 = vshll.u32 %v7042_v63, 16  ;;  %v2195_v10 = vshll.u32 %v2078_v1, 16  ;;  %v9421_v48 = vld [vmem:[#allocation59_spill] sm:$0xff]  ;;  %v7525_v18 = vpop.permute.xlu1 %3246  ;;  %v9423_v1 = vld [vmem:[#allocation61_spill] sm:$0xff]  ;;  %v7537_v20 = vpop.permute.xlu0 %3364 }
 0x263   : > { %9416 = vst [vmem:[#allocation74_spill] sm:$0xff] %v7503_v24  ;;  %v4767_v25 = vcombine.low %v1563_v37, %v1571_v36  ;;  %3716 = vrot.lane.b32.xlu0 %v4861_v33, %s5562_s16  ;;  %3100 = vrot.lane.b32.xlu1 %v4753_v43, %s5555_s26  ;;  %v1186_v53 = vshrl.u32 %v1040_v50, 16  ;;  %v1198_v24 = vrot.slane %v9421_v48, 4  ;;  %v1952_v44 = vrot.slane %v7226_v4, 4  ;;  %9424 = vst [vmem:[#allocation52_spill] sm:$0xff] %v7537_v20 }
 0x264   : > { %v2189_v42 = vrot.slane %v9420_v2, 5  ;;  %v9422_v14 = vshll.u32 %v7218_v58, 16  ;;  %v2188_v37 = vrot.slane %v2187_v61, 4  ;;  %v773_v33 = vsel %vm5869_vm4, 0, %v772_v15  ;;  %v7547_v61 = vld [vmem:[#allocation2 + $0xd4] sm:$0xf] }
 0x265   : > { %v2197_v63 = vrot.slane %v2195_v10, 5  ;;  %v4684_v13 = vrot.slane %v1186_v53, 11  ;;  %v1206_v50 = vsel %vm6086_vm12, %v1198_v24, %v9423_v1  ;;  %774 = vst [vmem:[#allocation2 + $0xa0] sm:$0x8] %v773_v33  ;;  %v7539_v51 = vrot.slane %v1301_v45, 4  ;;  %v9425_v10 = vld [vmem:[#allocation60_spill] sm:$0xff] }
 0x266   : > { %v1959_v36 = vor.u32 %v9422_v14, %v7260_v22  ;;  %v2192_v43 = vor.u32 %v7127_v39, %v2189_v42  ;;  %v7541_v2 = vrot.slane %v1304_v6, 5  ;;  %v7543_v22 = vrot.slane %v1310_v9, 4  ;;  %v7557_v9 = vpop.permute.xlu1 %3634 }
 0x267   : > { %v2190_v15 = vsel %vm6126_vm13, %v2188_v37, %v2189_v42  ;;  %3176 = vrot.lane.b32.xlu0 %v4767_v25, %s5559_s8  ;;  %v1197_v24 = vsel %vm6086_vm12, %v4684_v13, %v9425_v10  ;;  %v2549_v53 = vrot.slane %v7387_v17, 4  ;;  %v9426_v45 = vshll.u32 %v7375_v26, 16  ;;  %9427 = vst [vmem:[#allocation38_spill] sm:$0xff] %v7557_v9 }
 0x268   : > { %v2193_v39 = vrot.slane %v2192_v43, 4  ;;  %v9428_v42 = vshll.u32 %v7178_v11, 16  ;;  %v4732_v14 = vcombine.low %v1197_v24, %v1206_v50  ;;  %v2571_v25 = vrot.slane %v7292_v21, 4  ;;  %v7566_v43 = vld [vmem:[#allocation2 + $0xd8] sm:$0xf] }
 0x269   : > { %v2556_v6 = vor.u32 %v9426_v45, %v7434_v29  ;;  %v9429_v37 = vshll.u32 %v7268_v60, 16  ;;  %v1701_v13 = vld [vmem:[#allocation2 + $0xb0] sm:$0x8]  ;;  %v1960_v1 = vsel %vm6086_vm12, %v1952_v44, %v1959_v36  ;;  %v1989_v11 = vshrl.u32 %v7547_v61, 16 }
 0x26a   : > { %v1950_v48 = vor.u32 %v9428_v42, %v7226_v4  ;;  %v2198_v29 = vsel %vm6126_vm13, %v2193_v39, %v2197_v63  ;;  %v2339_v10 = vld [vmem:[#allocation2 + $0xb0] sm:$0x8]  ;;  %v9120_v4 = vshll.u32 %v7547_v61, 16  ;;  %v1940_v50 = vshrl.u32 %v1701_v13, 16 }
 0x26b   : > { %v2578_v33 = vor.u32 %v9429_v37, %v7331_v38  ;;  %v4814_v24 = vcombine.low %v2190_v15, %v2198_v29  ;;  %v2559_v45 = vshrl.u32 %v2339_v10, 16  ;;  %v9430_v38 = vshll.u32 %v7248_v5, 16  ;;  %v7588_v15 = vpop.permute.xlu0 %3710  ;;  %v7604_v10 = vpop.permute.xlu1 %3094 }
 0x26c   : > { %v9431_v37 = vshll.u32 %v7358_v49, 16  ;;  %v2557_v44 = vsel %vm6086_vm12, %v2549_v53, %v2556_v6  ;;  %v7585_v36 = vsel %vm3785_vm15, %v7211_v40, %v7377_v12  ;;  %v1998_v63 = vshrl.u32 %v7566_v43, 16  ;;  %9432 = vst [vmem:[#allocation59_spill] sm:$0xff] %v7588_v15  ;;  %v832_v53 = vld [vmem:[#allocation2 + $0xbc] sm:$0x1] }
 0x26d   : > { %v2569_v42 = vor.u32 %v9430_v38, %v7292_v21  ;;  %v4705_v39 = vrot.slane %v1940_v50, 11  ;;  %3446 = vrot.lane.b32.xlu1 %v4814_v24, %s5560_s12  ;;  %v7593_v5 = vsel %vm3736_vm14, %v4732_v14, %v7327_v59  ;;  %v4720_v21 = vrot.slane %v2559_v45, 11  ;;  %v1698_v29 = vld [vmem:[#allocation2 + $0xa0] sm:$0x8] }
 0x26e   : > { %v2547_v9 = vor.u32 %v9431_v37, %v7387_v17  ;;  %v2336_v17 = vld [vmem:[#allocation2 + $0xa0] sm:$0x8]  ;;  %v2579_v49 = vsel %vm6086_vm12, %v2571_v25, %v2578_v33  ;;  %v7598_v12 = vrot.slane %v1989_v11, 4  ;;  %v7602_v13 = vrot.slane %v9120_v4, 5 }
 0x26f   : > { %v2537_v6 = vshrl.u32 %v2336_v17, 16  ;;  %v1951_v59 = vsel %vm6086_vm12, %v4705_v39, %v1950_v48  ;;  %v2570_v14 = vsel %vm6086_vm12, %v4720_v21, %v2569_v42  ;;  %v1918_v25 = vshrl.u32 %v1698_v29, 16  ;;  %v7615_v17 = vld [vmem:[#allocation2 + $0xd4] sm:$0xf]  ;;  %v7643_v29 = vld [vmem:[#allocation2 + $0xd8] sm:$0xf] }
 0x270   : > { %9433 = vst [vmem:[#allocation61_spill] sm:$0xff] %v7598_v12  ;;  %9434 = vst [vmem:[#allocation60_spill] sm:$0xff] %v7602_v13  ;;  %v9435_v33 = vshll.u32 %v7409_v46, 16  ;;  %v4785_v24 = vcombine.low %v1951_v59, %v1960_v1  ;;  %v4832_v38 = vcombine.low %v2570_v14, %v2579_v49  ;;  %v7613_v37 = vrot.slane %v1998_v63, 4 }
 0x271   : > { %v4719_v45 = vrot.slane %v2537_v6, 11  ;;  %v4704_v4 = vrot.slane %v1918_v25, 11  ;;  %v1930_v40 = vrot.slane %v7453_v32, 4  ;;  %v9437_v48 = vshll.u32 %v7431_v54, 16 }
 0x272   : > { %v1928_v50 = vor.u32 %v9435_v33, %v7453_v32  ;;  %9436 = vst [vmem:[#allocation76_spill] sm:$0xff] %v7613_v37  ;;  %v833_v42 = vsel %vm5880_vm7, 0, %v832_v53  ;;  %3260 = vrot.lane.b32.xlu0 %v4785_v24, %s5558_s13  ;;  %3530 = vrot.lane.b32.xlu1 %v4832_v38, %s5561_s11  ;;  %v9438_v1 = vshll.u32 %v7566_v43, 16  ;;  %v2856_v32 = vor.u32 %v7347_v34, %v7343_v28  ;;  %v7637_v53 = vpop.permute.xlu0 %3440  ;;  %v7651_v33 = vpop.permute.xlu1 %3170  ;;  %v9446_v38 = vld [vmem:[#allocation21_spill] sm:$0xff] }
 0x273   : > { %v1937_v39 = vor.u32 %v9437_v48, %v7495_v19  ;;  %v2548_v46 = vsel %vm6086_vm12, %v4719_v45, %v2547_v9  ;;  %834 = vst [vmem:[#allocation2 + $0xbc] sm:$0x1] %v833_v42  ;;  %v9440_v19 = vshll.u32 %v7268_v60, 16  ;;  %9441 = vst [vmem:[#allocation78_spill] sm:$0xff] %v7637_v53  ;;  %v2608_v59 = vshrl.u32 %v7615_v17, 16  ;;  %v9467_v53 = vld [vmem:[#allocation34_spill] sm:$0xff] }
 0x274   : > { %v7629_v21 = vrot.slane %v9438_v1, 5  ;;  %v1929_v6 = vsel %vm6086_vm12, %v4704_v4, %v1928_v50  ;;  %v9121_v14 = vshll.u32 %v7615_v17, 16  ;;  %v4831_v25 = vcombine.low %v2548_v46, %v2557_v44  ;;  %v1065_v1 = vld [vmem:[#allocation2 + $0xd4] sm:$0xf] }
 0x275   : > { %v7635_v49 = vrot.slane %v9440_v19, 5  ;;  %v1938_v9 = vsel %vm6086_vm12, %v1930_v40, %v1937_v39  ;;  %v7647_v28 = vrot.slane %v1989_v11, 7  ;;  %v7653_v24 = vrot.slane %v1998_v63, 7  ;;  %v1037_v63 = vld [vmem:[#allocation2 + $0x40] sm:$0x8] }
 0x276   : > { %9439 = vst [vmem:[#allocation77_spill] sm:$0xff] %v7629_v21  ;;  %v4784_v60 = vcombine.low %v1929_v6, %v1938_v9  ;;  %v4803_v40 = vcombine.low %v7547_v61, %v7566_v43  ;;  %v2857_v50 = vrot.slane %v2856_v32, 4  ;;  %3528 = vrot.lane.b32.xlu0 %v4831_v25, %s5561_s11  ;;  %v7663_v44 = vrot.slane %v2608_v59, 7  ;;  %v7678_v32 = vpop.permute.xlu0 %3632  ;;  %v9485_v21 = vld [vmem:[#allocation20_spill] sm:$0xff] }
 0x277   : > { %v2861_v34 = vor.u32 %v7349_v55, %v7635_v49  ;;  %v2617_v55 = vshrl.u32 %v7643_v29, 16  ;;  %v7667_v48 = vrot.slane %v2608_v59, 4  ;;  %v7671_v39 = vrot.slane %v9121_v14, 5  ;;  %9442 = vst [vmem:[#allocation79_spill] sm:$0xff] %v7678_v32  ;;  %v7694_v14 = vpop.permute.xlu1 %3362 }
 0x278   : > { %3258 = vrot.lane.b32.xlu1 %v4784_v60, %s5558_s13  ;;  %v4850_v42 = vcombine.low %v7615_v17, %v7643_v29  ;;  %v3952_v46 = vsel %vm3950_vm5, %v7451_v3, %v7152_v41  ;;  %v2859_v6 = vsel %vm6126_vm13, %v2857_v50, %v7635_v49  ;;  %v1164_v25 = vshrl.u32 %v1037_v63, 16  ;;  %v9443_v3 = vld [vmem:[#allocation19_spill] sm:$0xff] }
 0x279   : > { %v2862_v45 = vrot.slane %v2861_v34, 4  ;;  %v7683_v9 = vrot.slane %v2617_v55, 7  ;;  %v3985_v59 = vsel %vm3983_vm6, %v3952_v46, %v7382_v0  ;;  %v1176_v34 = vrot.slane %v9443_v3, 4  ;;  %v1066_v50 = vld [vmem:[#allocation2 + $0xd8] sm:$0xf]  ;;  %9445 = vst [vmem:[#allocation19_spill] sm:$0xff] %v7694_v14 }
 0x27a   : > { %v2721_v19 = vld [vmem:[#allocation2 + $0xbc] sm:$0x1]  ;;  %3376 = vrot.lane.b32.xlu0 %v4803_v40, %s5556_s28  ;;  %v2229_v11 = vor.u32 %v7264_v8, %v7250_v30  ;;  %v9444_v4 = vshll.u32 %v7218_v58, 16  ;;  %5087 = vmatprep.mubr.msk.bf16.mxu1 %vm4059_vm9, %v3985_v59  ;;  %v4683_v0 = vrot.slane %v1164_v25, 11  ;;  %v1367_v46 = vshrl.u32 %v1065_v1, 16  ;;  %v9447_v8 = vld [vmem:[#allocation62_spill] sm:$0xff] }
 0x27b   : > { %v2081_v60 = vld [vmem:[#allocation2 + $0xbc] sm:$0x1]  ;;  %v2864_v41 = vshll.u32 %v2721_v19, 16  ;;  %v1370_v40 = vshll.u32 %v1065_v1, 16  ;;  %v1376_v59 = vshrl.u32 %v1066_v50, 16 }
 0x27c   : > { %3646 = vrot.lane.b32.xlu1 %v4850_v42, %s5557_s30  ;;  %v2231_v49 = vrot.slane %v9444_v4, 5  ;;  %v2237_v63 = vshll.u32 %v2081_v60, 16  ;;  %v1184_v42 = vsel %vm6086_vm12, %v1176_v34, %v9446_v38  ;;  %v2230_v3 = vrot.slane %v2229_v11, 4  ;;  %v7710_v38 = vpop.permute.xlu0 %3708 }
 0x27d   : > { %v2866_v19 = vrot.slane %v2864_v41, 5  ;;  %v1175_v58 = vsel %vm6086_vm12, %v4683_v0, %v9447_v8  ;;  %v7704_v20 = vrot.slane %v1367_v46, 7  ;;  %v1378_v34 = vrot.slane %v1376_v59, 7 }
 0x27e   : > { %v2234_v30 = vor.u32 %v7284_v31, %v2231_v49  ;;  %v2239_v4 = vrot.slane %v2237_v63, 5  ;;  %v4731_v60 = vcombine.low %v1175_v58, %v1184_v42  ;;  %v2232_v41 = vsel %vm6126_vm13, %v2230_v3, %v2231_v49  ;;  %v7725_v42 = vpop.permute.xlu1 %3092 }
 0x27f   : > { %9448 = vst [vmem:[#allocation21_spill] sm:$0xff] %v7704_v20  ;;  %v2867_v25 = vsel %vm6126_vm13, %v2862_v45, %v2866_v19  ;;  %v7713_v31 = vor.u32 %v1370_v40, %v7704_v20  ;;  %v1379_v0 = vshll.u32 %v1066_v50, 16  ;;  %v9450_v8 = vshll.u32 %v7643_v29, 16  ;;  %v5297_v19 = vld [vmem:[#allocation9 + $0x20] ss:$0 sps:$4 sm:$0xff]   ;;  %9453 = vst [vmem:[#allocation82_spill] sm:$0xff] %v7725_v42 }
 0x280   : > { %v2235_v14 = vrot.slane %v2234_v30, 4  ;;  %v4864_v11 = vcombine.low %v2859_v6, %v2867_v25  ;;  %v7721_v45 = vrot.slane %v2617_v55, 4  ;;  %v3791_v6 = vsel %vm3785_vm15, %v7369_v35, %v7411_v23  ;;  %v9461_v20 = vld [vmem:[#allocation33_spill] sm:$0xff]  ;;  %v9462_v35 = vld [vmem:[#allocation27_spill] sm:$0xff]  ;;  %5120 = vmatprep.subr.msk.bf16.mxu1 %vm4092_vm10, %v5297_v19  ;;  %v9484_v42 = vld [vmem:[#allocation46_spill] sm:$0xff] }
 0x281   : > { %9449 = vst [vmem:[#allocation62_spill] sm:$0xff] %v7713_v31  ;;  %v7719_v32 = vrot.slane %v9450_v8, 5  ;;  %v7731_v3 = vor.u32 %v1379_v0, %v1378_v34  ;;  %v7733_v30 = vrot.slane %v1367_v46, 4  ;;  %v7735_v58 = vrot.slane %v1370_v40, 5  ;;  %v7741_v31 = vld [vmem:[#allocation2 + $0xc4] sm:$0xf] }
 0x282   : > { %9452 = vst [vmem:[#allocation81_spill] sm:$0xff] %v7721_v45  ;;  %v2240_v49 = vsel %vm6126_vm13, %v2235_v14, %v2239_v4  ;;  %3722 = vrot.lane.b32.xlu0 %v4864_v11, %s5562_s16  ;;  %v7737_v25 = vrot.slane %v1379_v0, 5  ;;  %v4756_v8 = vcombine.low %v1065_v1, %v1066_v50  ;;  %v9458_v14 = vld [vmem:[#allocation23_spill] sm:$0xff]  ;;  %v7743_v11 = vrot.slane %v1376_v59, 4  ;;  %v7750_v40 = vld [vmem:[#allocation2 + $0xc8] sm:$0xf] }
 0x283   : > { %9451 = vst [vmem:[#allocation80_spill] sm:$0xff] %v7719_v32  ;;  %9454 = vst [vmem:[#allocation83_spill] sm:$0xff] %v7731_v3  ;;  %v4817_v55 = vcombine.low %v2232_v41, %v2240_v49  ;;  %v9459_v4 = vld [vmem:[#allocation35_spill] sm:$0xff]  ;;  %v3855_v23 = vsel %vm3851_vm1, %v7516_v27, %v9461_v20  ;;  %v9463_v50 = vld [vmem:[#allocation49_spill] sm:$0xff]  ;;  %v4094_v0 = vsel %vm4092_vm10, %v5297_v19, 0  ;;  %v7757_v49 = vpop.permute.xlu0 %3168  ;;  %v7767_v3 = vpop.permute.xlu1 %3438  ;;  %v7771_v27 = vsel %vm3736_vm14, %v4731_v60, %v9467_v53 }
 0x284   : > { %9455 = vst [vmem:[#allocation84_spill] sm:$0xff] %v7733_v30  ;;  %9456 = vst [vmem:[#allocation85_spill] sm:$0xff] %v7735_v58  ;;  %v663_v63 = vadd.f32 %v9459_v4, %v9458_v14  ;;  %v655_v46 = vadd.f32 %v9459_v4, %v9462_v35  ;;  %3106 = vrot.lane.b32.xlu1 %v4756_v8, %s5555_s26  ;;  %v3888_v41 = vsel %vm3884_vm2, %v3855_v23, %v9463_v50  ;;  %v9464_v34 = vld [vmem:[#allocation28_spill] sm:$0xff]  ;;  %v9465_v20 = vld [vmem:[#allocation39_spill] sm:$0xff] }
 0x285   : > { %9457 = vst [vmem:[#allocation86_spill] sm:$0xff] %v7737_v25  ;;  %9460 = vst [vmem:[#allocation23_spill] sm:$0xff] %v7743_v11  ;;  %v666_v59 = vadd.f32 %v9459_v4, %v9464_v34  ;;  %v3824_v14 = vsel %vm3818_vm0, %v3791_v6, %v9465_v20  ;;  %5086 = vmatpush3.bf16.msra.mxu1 %v4094_v0  ;;  %v1438_v34 = vld [vmem:[#allocation2 + $0xbc] sm:$0x1]  ;;  %v9468_v6 = vld [vmem:[#allocation40_spill] sm:$0xff]  ;;  %v4849_v0 = vcombine.low %v7741_v31, %v7750_v40 }
 0x286   : > { %v715_v1 = vmax.f32 %v663_v63, 0.0  ;;  %3452 = vrot.lane.b32.xlu0 %v4817_v55, %s5560_s12  ;;  %v713_v8 = vmax.f32 %v655_v46, 0.0  ;;  %v2586_v63 = vshrl.u32 %v7741_v31, 16  ;;  %9466 = vst [vmem:[#allocation35_spill] sm:$0xff] %v7767_v3  ;;  %v3921_v55 = vsel %vm3917_vm3, %v3888_v41, %v9468_v6  ;;  %v9469_v53 = vld [vmem:[#allocation69_spill] sm:$0xff]  ;;  %v9470_v60 = vld [vmem:[#allocation70_spill] sm:$0xff] }
 0x287   : > { %v716_v35 = vmax.f32 %v666_v59, 0.0  ;;  %v2595_v19 = vshrl.u32 %v7750_v40, 16  ;;  %v1602_v41 = vor.u32 %v9470_v60, %v9469_v53  ;;  %v1610_v15 = vshll.u32 %v1438_v34, 16  ;;  %v829_v59 = vld [vmem:[#allocation2 + $0xac] sm:$0x1]  ;;  %v9479_v53 = vld [vmem:[#allocation31_spill] sm:$0xff]  ;;  %v7804_v34 = vpop.permute.xlu0 %3252 }
 0x288   : > { %v4960_v23 = vpack.c.bf16 %v715_v1, %v715_v1  ;;  %v4958_v46 = vpack.c.bf16 %v713_v8, %v713_v8  ;;  %v9471_v8 = vld [vmem:[#allocation63_spill] sm:$0xff]  ;;  %v9473_v1 = vld [vmem:[#allocation44_spill] sm:$0xff]  ;;  %v3954_v60 = vsel %vm3950_vm5, %v3921_v55, %v9479_v53  ;;  %9480 = vst [vmem:[#allocation28_spill] sm:$0xff] %v7804_v34  ;;  %v2842_v55 = vor.u32 %v9485_v21, %v9484_v42  ;;  %v9487_v34 = vld [vmem:[#allocation37_spill] sm:$0xff] }
 0x289   : > { %v4961_v20 = vpack.c.bf16 %v716_v35, %v716_v35  ;;  %v9472_v6 = vshll.u32 %v9471_v8, 16  ;;  %v658_v30 = vadd.f32 %v9459_v4, %v9473_v1  ;;  %v9475_v35 = vshll.u32 %v7741_v31, 16  ;;  %v9481_v4 = vld [vmem:[#allocation71_spill] sm:$0xff]  ;;  %v7807_v11 = vld [vmem:[#allocation2 + $0xc4] sm:$0xf] }
 0x28a   : > { %1010 = vst.msk [vmem:[#allocation2 + $0xf4] sm:$0xf] %vm979_vm8, %v4960_v23  ;;  %1008 = vst.msk [vmem:[#allocation2 + $0xe4] sm:$0xf] %vm979_vm8, %v4958_v46  ;;  %3644 = vrot.lane.b32.xlu0 %v4849_v0, %s5557_s30  ;;  %v7792_v23 = vrot.slane %v2586_v63, 4  ;;  %v9477_v0 = vshll.u32 %v7750_v40, 16  ;;  %v3857_v37 = vsel %vm3851_vm1, %v3824_v14, %v9487_v34 }
 0x28b   : > { %v1604_v50 = vrot.slane %v9472_v6, 5  ;;  %1011 = vst.msk [vmem:[#allocation2 + $0xf8] sm:$0xf] %vm979_vm8, %v4961_v20  ;;  %v7796_v46 = vrot.slane %v9475_v35, 5  ;;  %v1603_v8 = vrot.slane %v1602_v41, 4  ;;  %v1612_v6 = vrot.slane %v1610_v15, 5  ;;  %v7819_v41 = vpop.permute.xlu1 %3522 }
 0x28c   : > { %9474 = vst [vmem:[#allocation33_spill] sm:$0xff] %v7792_v23  ;;  %v7800_v25 = vrot.slane %v9477_v0, 5  ;;  %v714_v20 = vmax.f32 %v658_v30, 0.0  ;;  %v7809_v58 = vrot.slane %v2595_v19, 4  ;;  %v9483_v35 = vld [vmem:[#allocation43_spill] sm:$0xff]  ;;  %v830_v0 = vsel %vm5880_vm7, 0, %v829_v59 }
 0x28d   : > { %9476 = vst [vmem:[#allocation27_spill] sm:$0xff] %v7796_v46  ;;  %v1607_v1 = vor.u32 %v9481_v4, %v1604_v50  ;;  %v3987_v3 = vsel %vm3983_vm6, %v3954_v60, %v9483_v35  ;;  %v7817_v53 = vld [vmem:[#allocation2 + $0xc8] sm:$0xf]  ;;  %9486 = vst [vmem:[#allocation34_spill] sm:$0xff] %v7819_v41  ;;  %v1605_v15 = vsel %vm6126_vm13, %v1603_v8, %v1604_v50  ;;  %v7826_v60 = vrot.slane %v2586_v63, 7  ;;  %v9489_v34 = vld [vmem:[#allocation54_spill] sm:$0xff] }
 0x28e   : > { %9478 = vst [vmem:[#allocation49_spill] sm:$0xff] %v7800_v25  ;;  %9482 = vst [vmem:[#allocation39_spill] sm:$0xff] %v7809_v58  ;;  %v4959_v4 = vpack.c.bf16 %v714_v20, %v714_v20  ;;  %5088 = vmatmul.mubr.msk.bf16.vlgmr.msra.gmra.mrb[0].mxu1 %vm4059_vm9, %v3987_v3  ;;  %v9488_v59 = vshll.u32 %v7375_v26, 16  ;;  %v1967_v42 = vshrl.u32 %v7807_v11, 16  ;;  %v9131_v35 = vshll.u32 %v7807_v11, 16 }
 0x28f   : > { %v1608_v30 = vrot.slane %v1607_v1, 4  ;;  %831 = vst [vmem:[#allocation2 + $0xac] sm:$0x1] %v830_v0  ;;  %v7834_v41 = vrot.slane %v2595_v19, 7  ;;  %v1976_v3 = vshrl.u32 %v7817_v53, 16  ;;  %v9132_v14 = vshll.u32 %v7817_v53, 16  ;;  %v7845_v19 = vpop.permute.xlu0 %3520 }
 0x290   : > { %v7830_v21 = vrot.slane %v9488_v59, 5  ;;  %1009 = vst.msk [vmem:[#allocation2 + $0xe8] sm:$0xf] %vm979_vm8, %v4959_v4  ;;  %v3890_v26 = vsel %vm3884_vm2, %v3857_v37, %v9489_v34  ;;  %v2843_v8 = vrot.slane %v2842_v55, 4  ;;  %v9490_v1 = vld [vmem:[#allocation36_spill] sm:$0xff]  ;;  %9491 = vst [vmem:[#allocation40_spill] sm:$0xff] %v7845_v19  ;;  %v1588_v34 = vor.u32 %v7541_v2, %v7539_v51 }
 0x291   : > { %v1613_v50 = vsel %vm6126_vm13, %v1608_v30, %v1612_v6  ;;  %v1062_v0 = vld [vmem:[#allocation2 + $0xc4] sm:$0xf]  ;;  %v7853_v4 = vsel %vm3917_vm3, %v3890_v26, %v7489_v56  ;;  %v1063_v37 = vld [vmem:[#allocation2 + $0xc8] sm:$0xf]  ;;  %v7860_v59 = vrot.slane %v9131_v35, 5  ;;  %v7870_v56 = vrot.slane %v1976_v3, 4 }
 0x292   : > { %v4770_v63 = vcombine.low %v1605_v15, %v1613_v50  ;;  %v2847_v20 = vor.u32 %v9490_v1, %v7830_v21  ;;  %v7855_v15 = vrot.slane %v1967_v42, 4  ;;  %v7864_v50 = vrot.slane %v9132_v14, 5  ;;  %v7868_v1 = vpop.permute.xlu1 %3250 }
 0x293   : > { %9492 = vst [vmem:[#allocation69_spill] sm:$0xff] %v7868_v1  ;;  %v9493_v26 = vshll.u32 %v7455_v7, 16  ;;  %v2845_v35 = vsel %vm6126_vm13, %v2843_v8, %v7830_v21  ;;  %v4802_v14 = vcombine.low %v7807_v11, %v7817_v53  ;;  %v1589_v25 = vrot.slane %v1588_v34, 4  ;;  %v781_v8 = vld [vmem:[#allocation2 + $0xd0] sm:$0x8]  ;;  %v7887_v12 = vpop.permute.xlu0 %3368 }
 0x294   : > { %3182 = vrot.lane.b32.xlu1 %v4770_v63, %s5559_s8  ;;  %v2848_v55 = vrot.slane %v2847_v20, 4  ;;  %v1345_v63 = vshrl.u32 %v1062_v0, 16  ;;  %v1348_v20 = vshll.u32 %v1062_v0, 16  ;;  %v1354_v51 = vshrl.u32 %v1063_v37, 16  ;;  %9495 = vst [vmem:[#allocation63_spill] sm:$0xff] %v7887_v12 }
 0x295   : > { %v1590_v30 = vrot.slane %v9493_v26, 5  ;;  %v7882_v7 = vrot.slane %v1967_v42, 7  ;;  %v7884_v26 = vrot.slane %v1976_v3, 7  ;;  %v1357_v21 = vshll.u32 %v1063_v37, 16 }
 0x296   : > { %v2720_v6 = vld [vmem:[#allocation2 + $0xac] sm:$0x1]  ;;  %v7880_v23 = vrot.slane %v1345_v63, 7  ;;  %v1356_v46 = vrot.slane %v1354_v51, 7  ;;  %v4755_v3 = vcombine.low %v1062_v0, %v1063_v37  ;;  %v7901_v32 = vpop.permute.xlu1 %3638  ;;  %v7913_v37 = vrot.slane %v1345_v63, 4 }
 0x297   : > { %v1437_v58 = vld [vmem:[#allocation2 + $0xac] sm:$0x1]  ;;  %v2850_v2 = vshll.u32 %v2720_v6, 16  ;;  %v1593_v1 = vor.u32 %v7543_v22, %v1590_v30  ;;  %9498 = vst [vmem:[#allocation71_spill] sm:$0xff] %v7901_v32  ;;  %v782_v22 = vsel %vm5869_vm4, 0, %v781_v8  ;;  %v9500_v8 = vshll.u32 %v7431_v54, 16 }
 0x298   : > { %v1596_v19 = vshll.u32 %v1437_v58, 16  ;;  %9494 = vst [vmem:[#allocation70_spill] sm:$0xff] %v7880_v23  ;;  %3374 = vrot.lane.b32.xlu1 %v4802_v14, %s5556_s28  ;;  %v7890_v6 = vor.u32 %v1348_v20, %v7880_v23  ;;  %v7897_v58 = vsel %vm3818_vm0, %v7585_v36, %v7525_v18  ;;  %v7899_v42 = vor.u32 %v1357_v21, %v1356_v46  ;;  %v1046_v14 = vld [vmem:[#allocation2 + $0x70] sm:$0x8]  ;;  %v2080_v18 = vld [vmem:[#allocation2 + $0xac] sm:$0x1] }
 0x299   : > { %v2852_v13 = vrot.slane %v2850_v2, 5  ;;  %v1594_v34 = vrot.slane %v1593_v1, 4  ;;  %v1591_v2 = vsel %vm6126_vm13, %v1589_v25, %v1590_v30  ;;  %v778_v36 = vld [vmem:[#allocation2 + $0xc0] sm:$0x8]  ;;  %783 = vst [vmem:[#allocation2 + $0xd0] sm:$0x8] %v782_v22  ;;  %v7930_v22 = vpop.permute.xlu0 %3714 }
 0x29a   : > { %v1598_v45 = vrot.slane %v1596_v19, 5  ;;  %9496 = vst [vmem:[#allocation44_spill] sm:$0xff] %v7890_v6  ;;  %9497 = vst [vmem:[#allocation31_spill] sm:$0xff] %v7899_v42  ;;  %v7915_v6 = vrot.slane %v1348_v20, 5  ;;  %v9499_v25 = vld [vmem:[#allocation51_spill] sm:$0xff]  ;;  %v1230_v63 = vshrl.u32 %v1046_v14, 16 }
 0x29b   : > { %v2853_v19 = vsel %vm6126_vm13, %v2848_v55, %v2852_v13  ;;  %v7918_v13 = vrot.slane %v1357_v21, 5  ;;  %v7920_v55 = vrot.slane %v1354_v51, 4  ;;  %v2215_v30 = vor.u32 %v7499_v47, %v9499_v25  ;;  %9502 = vst [vmem:[#allocation43_spill] sm:$0xff] %v7930_v22  ;;  %v9504_v25 = vld [vmem:[#allocation75_spill] sm:$0xff] }
 0x29c   : > { %v4863_v46 = vcombine.low %v2845_v35, %v2853_v19  ;;  %v1599_v0 = vsel %vm6126_vm13, %v1594_v34, %v1598_v45  ;;  %3104 = vrot.lane.b32.xlu1 %v4755_v3, %s5555_s26  ;;  %v2217_v35 = vrot.slane %v9500_v8, 5  ;;  %v2223_v45 = vshll.u32 %v2080_v18, 16  ;;  %v9501_v34 = vld [vmem:[#allocation56_spill] sm:$0xff]  ;;  %v9535_v18 = vld [vmem:[#allocation77_spill] sm:$0xff] }
 0x29d   : > { %v1242_v20 = vrot.slane %v9501_v34, 4  ;;  %v779_v3 = vsel %vm5869_vm4, 0, %v778_v36  ;;  %v4769_v21 = vcombine.low %v1591_v2, %v1599_v0  ;;  %v9503_v51 = vshll.u32 %v7547_v61, 16  ;;  %v9505_v8 = vld [vmem:[#allocation24_spill] sm:$0xff]  ;;  %v7941_v34 = vpop.permute.xlu1 %3098 }
 0x29e   : > { %3720 = vrot.lane.b32.xlu0 %v4863_v46, %s5562_s16  ;;  %v2216_v47 = vrot.slane %v2215_v30, 4  ;;  %v2220_v54 = vor.u32 %v9504_v25, %v2217_v35  ;;  %780 = vst [vmem:[#allocation2 + $0xc0] sm:$0x8] %v779_v3  ;;  %v2225_v14 = vrot.slane %v2223_v45, 5  ;;  %v4686_v46 = vrot.slane %v1230_v63, 11  ;;  %v9507_v63 = vld [vmem:[#allocation57_spill] sm:$0xff] }
 0x29f   : > { %v1994_v19 = vor.u32 %v9503_v51, %v7647_v28  ;;  %v1250_v36 = vsel %vm6086_vm12, %v1242_v20, %v9505_v8  ;;  %v1996_v2 = vrot.slane %v7647_v28, 4  ;;  %v9506_v61 = vshll.u32 %v7566_v43, 16  ;;  %v9533_v45 = vld [vmem:[#allocation25_spill] sm:$0xff] }
 0x2a0   : > { %v2218_v30 = vsel %vm6126_vm13, %v2216_v47, %v2217_v35  ;;  %v2221_v3 = vrot.slane %v2220_v54, 4  ;;  %v1241_v20 = vsel %vm6086_vm12, %v4686_v46, %v9507_v63  ;;  %v2615_v51 = vrot.slane %v7663_v44, 4  ;;  %v1707_v25 = vld [vmem:[#allocation2 + $0xd0] sm:$0x8] }
 0x2a1   : > { %v2003_v0 = vor.u32 %v9506_v61, %v7653_v24  ;;  %v9508_v28 = vshll.u32 %v7643_v29, 16  ;;  %v7959_v24 = vld [vmem:[#allocation2 + $0xf4] sm:$0xf]  ;;  %v2593_v47 = vrot.slane %v7826_v60, 4  ;;  %v9509_v54 = vshll.u32 %v7750_v40, 16 }
 0x2a2   : > { %3180 = vrot.lane.b32.xlu0 %v4769_v21, %s5559_s8  ;;  %v2226_v35 = vsel %vm6126_vm13, %v2221_v3, %v2225_v14  ;;  %v4734_v21 = vcombine.low %v1241_v20, %v1250_v36  ;;  %v2345_v46 = vld [vmem:[#allocation2 + $0xd0] sm:$0x8]  ;;  %v1984_v61 = vshrl.u32 %v1707_v25, 16  ;;  %v9510_v29 = vshll.u32 %v7615_v17, 16  ;;  %v7981_v3 = vld [vmem:[#allocation2 + $0xf8] sm:$0xf] }
 0x2a3   : > { %v2622_v43 = vor.u32 %v9508_v28, %v7683_v9  ;;  %v2600_v8 = vor.u32 %v9509_v54, %v7834_v41  ;;  %v4816_v63 = vcombine.low %v2218_v30, %v2226_v35  ;;  %v2603_v1 = vshrl.u32 %v2345_v46, 16  ;;  %v7970_v28 = vpop.permute.xlu0 %3444 }
 0x2a4   : > { %v2613_v9 = vor.u32 %v9510_v29, %v7663_v44  ;;  %9511 = vst [vmem:[#allocation46_spill] sm:$0xff] %v7970_v28  ;;  %v2004_v14 = vsel %vm6086_vm12, %v1996_v2, %v2003_v0  ;;  %v7976_v36 = vsel %vm3736_vm14, %v4734_v21, %v7604_v10  ;;  %v9513_v40 = vshll.u32 %v7741_v31, 16  ;;  %v7992_v0 = vpop.permute.xlu1 %3174  ;;  %v9554_v28 = vld [vmem:[#allocation64_spill] sm:$0xff] }
 0x2a5   : > { %9512 = vst [vmem:[#allocation20_spill] sm:$0xff] %v7976_v36  ;;  %v2033_v30 = vshrl.u32 %v7959_v24, 16  ;;  %v4707_v20 = vrot.slane %v1984_v61, 11  ;;  %3450 = vrot.lane.b32.xlu1 %v4816_v63, %s5560_s12  ;;  %v2342_v17 = vld [vmem:[#allocation2 + $0xc0] sm:$0x8]  ;;  %v4722_v44 = vrot.slane %v2603_v1, 11  ;;  %v2623_v2 = vsel %vm6086_vm12, %v2615_v51, %v2622_v43 }
 0x2a6   : > { %v2591_v41 = vor.u32 %v9513_v40, %v7826_v60  ;;  %v7990_v10 = vsel %vm3785_vm15, %v7593_v5, %v7651_v33  ;;  %9514 = vst [vmem:[#allocation37_spill] sm:$0xff] %v7992_v0  ;;  %v2581_v31 = vshrl.u32 %v2342_v17, 16  ;;  %v2601_v60 = vsel %vm6086_vm12, %v2593_v47, %v2600_v8  ;;  %v1704_v21 = vld [vmem:[#allocation2 + $0xc0] sm:$0x8]  ;;  %v838_v43 = vld [vmem:[#allocation2 + $0xdc] sm:$0x1] }
 0x2a7   : > { %v7996_v25 = vrot.slane %v2033_v30, 7  ;;  %v9143_v35 = vshll.u32 %v7959_v24, 16  ;;  %v1995_v1 = vsel %vm6086_vm12, %v4707_v20, %v1994_v19  ;;  %v2614_v51 = vsel %vm6086_vm12, %v4722_v44, %v2613_v9  ;;  %v9517_v20 = vld [vmem:[#allocation58_spill] sm:$0xff]  ;;  %v8014_v44 = vpop.permute.xlu0 %3636 }
 0x2a8   : > { %v2042_v5 = vshrl.u32 %v7981_v3, 16  ;;  %v1962_v33 = vshrl.u32 %v1704_v21, 16  ;;  %v4787_v54 = vcombine.low %v1995_v1, %v2004_v14  ;;  %v4721_v46 = vrot.slane %v2581_v31, 11  ;;  %v2352_v17 = vld [vmem:[#allocation2 + $0xf4] sm:$0xf]  ;;  %9518 = vst [vmem:[#allocation54_spill] sm:$0xff] %v8014_v44 }
 0x2a9   : > { %v4834_v61 = vcombine.low %v2614_v51, %v2623_v2  ;;  %v9515_v47 = vshll.u32 %v7807_v11, 16  ;;  %v1974_v29 = vrot.slane %v7882_v7, 4  ;;  %v9516_v19 = vshll.u32 %v7817_v53, 16  ;;  %v8025_v14 = vld [vmem:[#allocation2 + $0xf8] sm:$0xf]  ;;  %v9551_v44 = vld [vmem:[#allocation45_spill] sm:$0xff] }
 0x2aa   : > { %v4706_v63 = vrot.slane %v1962_v33, 11  ;;  %v3956_v9 = vsel %vm3950_vm5, %v7853_v4, %v9517_v20  ;;  %3264 = vrot.lane.b32.xlu0 %v4787_v54, %s5558_s13  ;;  %v2592_v11 = vsel %vm6086_vm12, %v4721_v46, %v2591_v41  ;;  %v8027_v4 = vrot.slane %v2033_v30, 4 }
 0x2ab   : > { %v1972_v8 = vor.u32 %v9515_v47, %v7882_v7  ;;  %v1981_v40 = vor.u32 %v9516_v19, %v7884_v26  ;;  %3534 = vrot.lane.b32.xlu1 %v4834_v61, %s5561_s11  ;;  %v3989_v53 = vsel %vm3983_vm6, %v3956_v9, %v7710_v38  ;;  %v839_v26 = vsel %vm5880_vm7, 0, %v838_v43  ;;  %v8039_v38 = vpop.permute.xlu1 %3366  ;;  %v1043_v43 = vld [vmem:[#allocation2 + $0x60] sm:$0x8]  ;;  %v8068_v20 = vpop.permute.xlu0 %3712 }
 0x2ac   : > { %840 = vst [vmem:[#allocation2 + $0xdc] sm:$0x1] %v839_v26  ;;  %v9519_v31 = vor.u32 %v7671_v39, %v7667_v48  ;;  %5091 = vmatprep.mubr.msk.bf16.mxu1 %vm4059_vm9, %v3989_v53  ;;  %9520 = vst [vmem:[#allocation36_spill] sm:$0xff] %v8039_v38  ;;  %v4833_v1 = vcombine.low %v2592_v11, %v2601_v60  ;;  %v2652_v30 = vshrl.u32 %v2352_v17, 16  ;;  %v2655_v33 = vshll.u32 %v2352_v17, 16  ;;  %v9524_v53 = vld [vmem:[#allocation47_spill] sm:$0xff] }
 0x2ad   : > { %v1973_v2 = vsel %vm6086_vm12, %v4706_v63, %v1972_v8  ;;  %v1982_v41 = vsel %vm6086_vm12, %v1974_v29, %v1981_v40  ;;  %v8041_v54 = vrot.slane %v2042_v5, 7  ;;  %v2661_v46 = vshrl.u32 %v8025_v14, 16  ;;  %v9521_v63 = vld [vmem:[#allocation80_spill] sm:$0xff] }
 0x2ae   : > { %v8036_v21 = vrot.slane %v9519_v31, 4  ;;  %v4786_v51 = vcombine.low %v1973_v2, %v1982_v41  ;;  %v2664_v61 = vshll.u32 %v8025_v14, 16  ;;  %v3795_v48 = vsel %vm3785_vm15, %v7771_v27, %v7757_v49  ;;  %3532 = vrot.lane.b32.xlu0 %v4833_v1, %s5561_s11  ;;  %v9522_v27 = vld [vmem:[#allocation81_spill] sm:$0xff]  ;;  %v8079_v31 = vld [vmem:[#allocation2 + $0xf4] sm:$0xf] }
 0x2af   : > { %v8051_v39 = vrot.slane %v9143_v35, 5  ;;  %v8053_v60 = vrot.slane %v2042_v5, 4  ;;  %v4805_v47 = vcombine.low %v7959_v24, %v7981_v3  ;;  %v8058_v8 = vrot.slane %v2652_v30, 7  ;;  %v9525_v2 = vld [vmem:[#allocation53_spill] sm:$0xff]  ;;  %9526 = vst [vmem:[#allocation51_spill] sm:$0xff] %v8079_v31 }
 0x2b0   : > { %3262 = vrot.lane.b32.xlu1 %v4786_v51, %s5558_s13  ;;  %v2887_v49 = vsel %vm6126_vm13, %v8036_v21, %v9521_v63  ;;  %v9523_v29 = vor.u32 %v9522_v27, %v9521_v63  ;;  %v4852_v40 = vcombine.low %v2352_v17, %v8025_v14  ;;  %v1208_v5 = vshrl.u32 %v1043_v43, 16  ;;  %v8085_v14 = vld [vmem:[#allocation2 + $0xf8] sm:$0xf] }
 0x2b1   : > { %v8070_v9 = vrot.slane %v2652_v30, 4  ;;  %v8072_v11 = vrot.slane %v2655_v33, 5  ;;  %v8076_v26 = vsel %vm3818_vm0, %v3795_v48, %v9524_v53  ;;  %v1220_v41 = vrot.slane %v9525_v2, 4  ;;  %9527 = vst [vmem:[#allocation56_spill] sm:$0xff] %v8085_v14  ;;  %v8087_v30 = vpop.permute.xlu1 %3096  ;;  %v9529_v27 = vld [vmem:[#allocation26_spill] sm:$0xff]  ;;  %v9531_v53 = vld [vmem:[#allocation61_spill] sm:$0xff] }
 0x2b2   : > { %v2890_v19 = vrot.slane %v9523_v29, 4  ;;  %v2663_v21 = vrot.slane %v2661_v46, 7  ;;  %v8081_v1 = vrot.slane %v2664_v61, 5  ;;  %v8083_v51 = vrot.slane %v2661_v46, 4  ;;  %9528 = vst [vmem:[#allocation75_spill] sm:$0xff] %v8087_v30  ;;  %3380 = vrot.lane.b32.xlu0 %v4805_v47, %s5556_s28 }
 0x2b3   : > { %v4685_v17 = vrot.slane %v1208_v5, 11  ;;  %v2723_v43 = vld [vmem:[#allocation2 + $0xdc] sm:$0x1]  ;;  %v8091_v48 = vor.u32 %v2655_v33, %v8058_v8  ;;  %v1228_v46 = vsel %vm6086_vm12, %v1220_v41, %v9529_v27  ;;  %v9530_v5 = vld [vmem:[#allocation60_spill] sm:$0xff]  ;;  %v9145_v23 = vshrl.u32 %v8079_v31, 16 }
 0x2b4   : > { %3650 = vrot.lane.b32.xlu1 %v4852_v40, %s5557_s30  ;;  %v2083_v29 = vld [vmem:[#allocation2 + $0xdc] sm:$0x1]  ;;  %v9532_v2 = vor.u32 %v9530_v5, %v9531_v53  ;;  %v2892_v7 = vshll.u32 %v2723_v43, 16  ;;  %v9534_v33 = vld [vmem:[#allocation76_spill] sm:$0xff]  ;;  %v9146_v41 = vshll.u32 %v8079_v31, 16  ;;  %v4758_v27 = vcombine.low %v8079_v31, %v8085_v14  ;;  %v9549_v31 = vld [vmem:[#allocation86_spill] sm:$0xff] }
 0x2b5   : > { %v1219_v47 = vsel %vm6086_vm12, %v4685_v17, %v9533_v45  ;;  %v9536_v42 = vor.u32 %v9534_v33, %v9535_v18  ;;  %v2265_v12 = vshll.u32 %v2083_v29, 16  ;;  %v8115_v17 = vld [vmem:[#allocation2 + $0xe4] sm:$0xf]  ;;  %v9538_v29 = vld [vmem:[#allocation82_spill] sm:$0xff]  ;;  %v8141_v43 = vpop.permute.xlu1 %3442  ;;  %v5312_v30 = vld [vmem:[#allocation8] ss:$0 sm:$0xff] }
 0x2b6   : > { %v2258_v35 = vrot.slane %v9532_v2, 4  ;;  %v4733_v40 = vcombine.low %v1219_v47, %v1228_v46  ;;  %v2894_v5 = vrot.slane %v2892_v7, 5  ;;  %v9537_v2 = vld [vmem:[#allocation32_spill] sm:$0xff]  ;;  %v9540_v7 = vld [vmem:[#allocation35_spill] sm:$0xff]  ;;  %9541 = vst [vmem:[#allocation57_spill] sm:$0xff] %v8141_v43 }
 0x2b7   : > { %v2263_v63 = vrot.slane %v9536_v42, 4  ;;  %v2267_v53 = vrot.slane %v2265_v12, 5  ;;  %v3859_v45 = vsel %vm3851_vm1, %v7897_v58, %v9537_v2  ;;  %v8117_v42 = vpop.permute.xlu0 %3172  ;;  %v8133_v2 = vor.u32 %v2664_v61, %v2663_v21  ;;  %v9548_v46 = vld [vmem:[#allocation23_spill] sm:$0xff] }
 0x2b8   : > { %v8123_v47 = vsel %vm3736_vm14, %v4733_v40, %v9538_v29  ;;  %v2260_v12 = vsel %vm6126_vm13, %v2258_v35, %v9535_v18  ;;  %3110 = vrot.lane.b32.xlu1 %v4758_v27, %s5555_s26  ;;  %v3892_v58 = vsel %vm3884_vm2, %v3859_v45, %v9540_v7  ;;  %v2895_v33 = vsel %vm6126_vm13, %v2890_v19, %v2894_v5  ;;  %v8139_v29 = vld [vmem:[#allocation2 + $0xe8] sm:$0xf]  ;;  %v1440_v19 = vld [vmem:[#allocation2 + $0xdc] sm:$0x1] }
 0x2b9   : > { %9539 = vst [vmem:[#allocation24_spill] sm:$0xff] %v8123_v47  ;;  %v2268_v40 = vsel %vm6126_vm13, %v2263_v63, %v2267_v53  ;;  %v4866_v18 = vcombine.low %v2887_v49, %v2895_v33  ;;  %v8146_v27 = vrot.slane %v9145_v23, 4  ;;  %v2630_v61 = vshrl.u32 %v8115_v17, 16  ;;  %v9544_v45 = vld [vmem:[#allocation73_spill] sm:$0xff]  ;;  %v8183_v22 = vpop.permute.xlu1 %3526  ;;  %v9557_v33 = vld [vmem:[#allocation42_spill] sm:$0xff]  ;;  %v9558_v43 = vld [vmem:[#allocation59_spill] sm:$0xff] }
 0x2ba   : > { %v4819_v21 = vcombine.low %v2260_v12, %v2268_v40  ;;  %v8151_v5 = vrot.slane %v9146_v41, 5  ;;  %v9542_v63 = vshrl.u32 %v8085_v14, 16  ;;  %v3925_v49 = vsel %vm3917_vm3, %v3892_v58, %v9544_v45  ;;  %v9545_v12 = vld [vmem:[#allocation85_spill] sm:$0xff]  ;;  %v9546_v40 = vld [vmem:[#allocation84_spill] sm:$0xff]  ;;  %9556 = vst [vmem:[#allocation81_spill] sm:$0xff] %v8183_v22 }
 0x2bb   : > { %3726 = vrot.lane.b32.xlu0 %v4866_v18, %s5562_s16  ;;  %v8160_v7 = vrot.slane %v2630_v61, 7  ;;  %v2639_v23 = vshrl.u32 %v8139_v29, 16  ;;  %v9547_v35 = vor.u32 %v9545_v12, %v9546_v40  ;;  %v9550_v32 = vor.u32 %v9548_v46, %v9549_v31  ;;  %v9552_v45 = vld [vmem:[#allocation41_spill] sm:$0xff]  ;;  %v8172_v36 = vpop.permute.xlu0 %3256  ;;  %v8192_v47 = vld [vmem:[#allocation2 + $0xe4] sm:$0xf] }
 0x2bc   : > { %v8155_v53 = vrot.slane %v9542_v63, 4  ;;  %v1638_v38 = vshll.u32 %v1440_v19, 16  ;;  %v679_v58 = vadd.f32 %v5312_v30, %v9551_v44  ;;  %v671_v18 = vadd.f32 %v5312_v30, %v9552_v45  ;;  %9553 = vst [vmem:[#allocation80_spill] sm:$0xff] %v8172_v36  ;;  %v835_v46 = vld [vmem:[#allocation2 + $0xcc] sm:$0x1] }
 0x2bd   : > { %v1631_v41 = vrot.slane %v9547_v35, 4  ;;  %v1636_v63 = vrot.slane %v9550_v32, 4  ;;  %v4851_v0 = vcombine.low %v8115_v17, %v8139_v29  ;;  %v682_v12 = vadd.f32 %v5312_v30, %v9554_v28  ;;  %v9555_v35 = vld [vmem:[#allocation65_spill] sm:$0xff] }
 0x2be   : > { %9543 = vst [vmem:[#allocation58_spill] sm:$0xff] %v8155_v53  ;;  %v3958_v40 = vsel %vm3950_vm5, %v3925_v49, %v9555_v35  ;;  %v1640_v44 = vrot.slane %v1638_v38, 5  ;;  %v719_v19 = vmax.f32 %v679_v58, 0.0  ;;  %v717_v45 = vmax.f32 %v671_v18, 0.0  ;;  %v9559_v35 = vld [vmem:[#allocation66_spill] sm:$0xff] }
 0x2bf   : > { %v1633_v32 = vsel %vm6126_vm13, %v1631_v41, %v9549_v31  ;;  %3456 = vrot.lane.b32.xlu0 %v4819_v21, %s5560_s12  ;;  %v3861_v36 = vsel %vm3851_vm1, %v8076_v26, %v9557_v33  ;;  %v720_v28 = vmax.f32 %v682_v12, 0.0  ;;  %v3991_v49 = vsel %vm3983_vm6, %v3958_v40, %v9558_v43  ;;  %v8194_v31 = vld [vmem:[#allocation2 + $0xe8] sm:$0xf]  ;;  %v9560_v43 = vld [vmem:[#allocation27_spill] sm:$0xff] }
 0x2c0   : > { %v674_v53 = vadd.f32 %v5312_v30, %v9559_v35  ;;  %v1641_v38 = vsel %vm6126_vm13, %v1636_v63, %v1640_v44  ;;  %v4964_v41 = vpack.c.bf16 %v719_v19, %v719_v19  ;;  %v4962_v58 = vpack.c.bf16 %v717_v45, %v717_v45  ;;  %5092 = vmatmul.mubr.msk.bf16.gmra.mrb[4].mxu1 %vm4059_vm9, %v3991_v49  ;;  %v9561_v30 = vld [vmem:[#allocation33_spill] sm:$0xff] }
 0x2c1   : > { %v836_v26 = vsel %vm5880_vm7, 0, %v835_v46  ;;  %v4772_v21 = vcombine.low %v1633_v32, %v1641_v38  ;;  %v4965_v33 = vpack.c.bf16 %v720_v28, %v720_v28  ;;  %v9562_v12 = vor.u32 %v9560_v43, %v9561_v30  ;;  %v8213_v32 = vpop.permute.xlu0 %3524  ;;  %v9566_v28 = vld [vmem:[#allocation78_spill] sm:$0xff]  ;;  %v9570_v43 = vld [vmem:[#allocation39_spill] sm:$0xff] }
 0x2c2   : > { %v718_v18 = vmax.f32 %v674_v53, 0.0  ;;  %837 = vst [vmem:[#allocation2 + $0xcc] sm:$0x1] %v836_v26  ;;  %v8206_v35 = vrot.slane %v2630_v61, 4  ;;  %1014 = vst.msk [vmem:[#allocation2 + $0x114] sm:$0xf] %vm979_vm8, %v4964_v41  ;;  %v3894_v49 = vsel %vm3884_vm2, %v3861_v36, %v9566_v28 }
 0x2c3   : > { %v8204_v40 = vrot.slane %v9562_v12, 4  ;;  %1012 = vst.msk [vmem:[#allocation2 + $0x104] sm:$0xf] %vm979_vm8, %v4962_v58  ;;  %v2011_v63 = vshrl.u32 %v8192_v47, 16  ;;  %v9149_v44 = vshll.u32 %v8192_v47, 16  ;;  %v2020_v46 = vshrl.u32 %v8194_v31, 16  ;;  %3648 = vrot.lane.b32.xlu0 %v4851_v0, %s5557_s30  ;;  %3186 = vrot.lane.b32.xlu1 %v4772_v21, %s5559_s8 }
 0x2c4   : > { %9563 = vst [vmem:[#allocation47_spill] sm:$0xff] %v8213_v32  ;;  %v8215_v53 = vrot.slane %v2639_v23, 7  ;;  %v9564_v19 = vshll.u32 %v8115_v17, 16  ;;  %v9565_v61 = vmov 0   ;;  %1015 = vst.msk [vmem:[#allocation2 + $0x118] sm:$0xf] %vm979_vm8, %v4965_v33  ;;  %v4963_v38 = vpack.c.bf16 %v718_v18, %v718_v18  ;;  %v8245_v18 = vpop.permute.xlu1 %3254 }
 0x2c5   : > { %1023 = vst.msk [vmem:[#allocation2 + $0x114] sm:$0xf] %vm979_vm8, %v9565_v61  ;;  %v8228_v41 = vrot.slane %v2639_v23, 4  ;;  %v9568_v58 = vld [vmem:[#allocation40_spill] sm:$0xff]  ;;  %1024 = vst.msk [vmem:[#allocation2 + $0x118] sm:$0xf] %vm979_vm8, %v9565_v61  ;;  %v4804_v61 = vcombine.low %v8192_v47, %v8194_v31 }
 0x2c6   : > { %v8219_v45 = vrot.slane %v9564_v19, 5  ;;  %v8232_v26 = vsel %vm3917_vm3, %v3894_v49, %v9568_v58  ;;  %v9569_v0 = vld [vmem:[#allocation49_spill] sm:$0xff]  ;;  %v8243_v33 = vld [vmem:[#allocation2 + $0xe4] sm:$0xf]  ;;  %v787_v23 = vld [vmem:[#allocation2 + $0xf0] sm:$0x8] }
 0x2c7   : > { %9567 = vst [vmem:[#allocation53_spill] sm:$0xff] %v8228_v41  ;;  %v2873_v21 = vsel %vm6126_vm13, %v8204_v40, %v9569_v0  ;;  %v9571_v36 = vor.u32 %v9570_v43, %v9569_v0  ;;  %9572 = vst [vmem:[#allocation26_spill] sm:$0xff] %v8243_v33  ;;  %v8248_v12 = vrot.slane %v2011_v63, 7  ;;  %v9574_v40 = vor.u32 %v7915_v6, %v7913_v37  ;;  %v8258_v49 = vld [vmem:[#allocation2 + $0xe8] sm:$0xf] }
 0x2c8   : > { %9573 = vst [vmem:[#allocation60_spill] sm:$0xff] %v8245_v18  ;;  %1013 = vst.msk [vmem:[#allocation2 + $0x108] sm:$0xf] %vm979_vm8, %v4963_v38  ;;  %v8260_v58 = vrot.slane %v2020_v46, 7  ;;  %v8262_v0 = vrot.slane %v2011_v63, 4  ;;  %v8266_v38 = vrot.slane %v9149_v44, 5  ;;  %3378 = vrot.lane.b32.xlu1 %v4804_v61, %s5556_s28 }
 0x2c9   : > { %v2876_v30 = vrot.slane %v9571_v36, 4  ;;  %v8256_v28 = vrot.slane %v9574_v40, 4  ;;  %9575 = vst [vmem:[#allocation61_spill] sm:$0xff] %v8258_v49  ;;  %v8268_v43 = vrot.slane %v2020_v46, 4  ;;  %v9579_v36 = vor.u32 %v7920_v55, %v7918_v13  ;;  %v1052_v19 = vld [vmem:[#allocation2 + $0x90] sm:$0x8]  ;;  %v8289_v40 = vpop.permute.xlu0 %3372 }
 0x2ca   : > { %9576 = vst [vmem:[#allocation25_spill] sm:$0xff] %v8262_v0  ;;  %9577 = vst [vmem:[#allocation76_spill] sm:$0xff] %v8266_v38  ;;  %v788_v63 = vsel %vm5869_vm4, 0, %v787_v23  ;;  %v2722_v22 = vld [vmem:[#allocation2 + $0xcc] sm:$0x1] }
 0x2cb   : > { %9578 = vst [vmem:[#allocation77_spill] sm:$0xff] %v8268_v43  ;;  %v1622_v6 = vrot.slane %v9579_v36, 4  ;;  %v9580_v18 = vld [vmem:[#allocation69_spill] sm:$0xff]  ;;  %v1619_v55 = vsel %vm6126_vm13, %v8256_v28, %v7918_v13  ;;  %789 = vst [vmem:[#allocation2 + $0xf0] sm:$0x8] %v788_v63  ;;  %v2878_v23 = vshll.u32 %v2722_v22, 16  ;;  %v4757_v43 = vcombine.low %v8243_v33, %v8258_v49 }
 0x2cc   : > { %v8281_v46 = vsel %vm3818_vm0, %v7990_v10, %v9580_v18  ;;  %v1439_v44 = vld [vmem:[#allocation2 + $0xcc] sm:$0x1]  ;;  %9581 = vst [vmem:[#allocation32_spill] sm:$0xff] %v8289_v40  ;;  %v9582_v10 = vshll.u32 %v7981_v3, 16  ;;  %v784_v38 = vld [vmem:[#allocation2 + $0xe0] sm:$0x8]  ;;  %v9583_v13 = vor.u32 %v7860_v59, %v7855_v15  ;;  %v9584_v63 = vor.u32 %v7870_v56, %v7864_v50 }
 0x2cd   : > { %v1624_v37 = vshll.u32 %v1439_v44, 16  ;;  %v2082_v32 = vld [vmem:[#allocation2 + $0xcc] sm:$0x1]  ;;  %v1274_v22 = vshrl.u32 %v1052_v19, 16  ;;  %v8302_v44 = vpop.permute.xlu1 %3642  ;;  %v2880_v40 = vrot.slane %v2878_v23, 5  ;;  %3108 = vrot.lane.b32.xlu1 %v4757_v43, %s5555_s26  ;;  %v785_v56 = vsel %vm5869_vm4, 0, %v784_v38 }
 0x2ce   : > { %v2047_v18 = vor.u32 %v9582_v10, %v8041_v54  ;;  %v2244_v28 = vrot.slane %v9583_v13, 4  ;;  %v2249_v36 = vrot.slane %v9584_v63, 4  ;;  %v2251_v61 = vshll.u32 %v2082_v32, 16  ;;  %9585 = vst [vmem:[#allocation82_spill] sm:$0xff] %v8302_v44  ;;  %v9586_v10 = vld [vmem:[#allocation29_spill] sm:$0xff]  ;;  %s5455_s26 = scalar_lea.vmem %s9014_s25, 2048 }
 0x2cf   : > { %v1626_v0 = vrot.slane %v1624_v37, 5  ;;  %v2040_v54 = vrot.slane %v7996_v25, 4  ;;  %v1286_v41 = vrot.slane %v9586_v10, 4  ;;  %v4688_v13 = vrot.slane %v1274_v22, 11  ;;  %v9588_v37 = vld [vmem:[#allocation30_spill] sm:$0xff]  ;;  %p5456_p12 = scmp.ne.s32.totalorder %s9014_s25, %s5455_s26 }
 0x2d0   : > { %v2246_v15 = vsel %vm6126_vm13, %v2244_v28, %v7864_v50  ;;  %v2253_v59 = vrot.slane %v2251_v61, 5  ;;  %v2881_v32 = vsel %vm6126_vm13, %v2876_v30, %v2880_v40  ;;  %v9587_v19 = vshll.u32 %v7959_v24, 16  ;;  %786 = vst [vmem:[#allocation2 + $0xe0] sm:$0x8] %v785_v56  ;;  %v844_v50 = vld [vmem:[#allocation2 + $0xfc] sm:$0x1] }
 0x2d1   : > { %v1294_v23 = vsel %vm6086_vm12, %v1286_v41, %v9588_v37  ;;  %v2637_v63 = vrot.slane %v8160_v7, 4  ;;  %v4865_v61 = vcombine.low %v2873_v21, %v2881_v32  ;;  %v1627_v28 = vsel %vm6126_vm13, %v1622_v6, %v1626_v0  ;;  %v9589_v30 = vld [vmem:[#allocation48_spill] sm:$0xff]  ;;  %v8341_v32 = vpop.permute.xlu1 %3102  ;;  %p5457_p1 = pnand %p5456_p12, %p5763_p6 }
 0x2d2   : > { %v2038_v43 = vor.u32 %v9587_v19, %v7996_v25  ;;  %v2254_v38 = vsel %vm6126_vm13, %v2249_v36, %v2253_v59  ;;  %v1285_v24 = vsel %vm6086_vm12, %v4688_v13, %v9589_v30  ;;  %v8328_v25 = vpop.permute.xlu0 %3718  ;;  %v1713_v40 = vld [vmem:[#allocation2 + $0xf0] sm:$0x8]  ;;  %v9590_v10 = vshll.u32 %v8115_v17, 16 }
 0x2d3   : > { %v4818_v22 = vcombine.low %v2246_v15, %v2254_v38  ;;  %v4736_v41 = vcombine.low %v1285_v24, %v1294_v23  ;;  %v9591_v21 = vshll.u32 %v8139_v29, 16  ;;  %v2351_v6 = vld [vmem:[#allocation2 + $0xf0] sm:$0x8]  ;;  %3724 = vrot.lane.b32.xlu0 %v4865_v61, %s5562_s16  ;;  %v2028_v36 = vshrl.u32 %v1713_v40, 16  ;;  %p5458_p2 = pneg %p5457_p1 }
 0x2d4   : > { %v2635_v56 = vor.u32 %v9590_v10, %v8160_v7  ;;  %v2048_v59 = vsel %vm6086_vm12, %v2040_v54, %v2047_v18  ;;  %v2647_v13 = vshrl.u32 %v2351_v6, 16  ;;  %v845_v15 = vsel %vm5880_vm7, 0, %v844_v50 }
 0x2d5   : > { %v2644_v0 = vor.u32 %v9591_v21, %v8215_v53  ;;  %v4771_v19 = vcombine.low %v1619_v55, %v1627_v28  ;;  %3454 = vrot.lane.b32.xlu1 %v4818_v22, %s5560_s12  ;;  %v8346_v17 = vsel %vm3736_vm14, %v4736_v41, %v7941_v34  ;;  %v9593_v53 = vrot.slane %v8058_v8, 4  ;;  %846 = vst [vmem:[#allocation2 + $0xfc] sm:$0x1] %v845_v15  ;;  %v8398_v21 = vpop.permute.xlu1 %3178 }
 0x2d6   : > { %9592 = vst [vmem:[#allocation35_spill] sm:$0xff] %v8346_v17  ;;  %v4709_v54 = vrot.slane %v2028_v36, 11  ;;  %v4724_v37 = vrot.slane %v2647_v13, 11  ;;  %v9594_v55 = vor.u32 %v8072_v11, %v8070_v9  ;;  %v2018_v34 = vrot.slane %v8248_v12, 4  ;;  %v8386_v40 = vpop.permute.xlu0 %3448  ;;  %v9601_v36 = vld [vmem:[#allocation24_spill] sm:$0xff] }
 0x2d7   : > { %v2645_v7 = vsel %vm6086_vm12, %v2637_v63, %v2644_v0  ;;  %v2667_v18 = vsel %vm6086_vm12, %v9593_v53, %v8133_v2  ;;  %v9595_v50 = vor.u32 %v8083_v51, %v8081_v1  ;;  %v9596_v8 = vshll.u32 %v8194_v31, 16  ;;  %v9597_v2 = vld [vmem:[#allocation79_spill] sm:$0xff]  ;;  %3184 = vrot.lane.b32.xlu0 %v4771_v19, %s5559_s8  ;;  %v2348_v38 = vld [vmem:[#allocation2 + $0xe0] sm:$0x8] }
 0x2d8   : > { %v8358_v23 = vrot.slane %v9594_v55, 4  ;;  %v3960_v28 = vsel %vm3950_vm5, %v8232_v26, %v9597_v2  ;;  %v2285_v9 = vor.u32 %v8051_v39, %v8027_v4  ;;  %v2039_v11 = vsel %vm6086_vm12, %v4709_v54, %v2038_v43  ;;  %v1710_v30 = vld [vmem:[#allocation2 + $0xe0] sm:$0x8]  ;;  %v8420_v2 = vld [vmem:[#allocation2 + $0x104] sm:$0xf] }
 0x2d9   : > { %v8364_v63 = vrot.slane %v9595_v50, 4  ;;  %v2025_v61 = vor.u32 %v9596_v8, %v8260_v58  ;;  %v2658_v51 = vsel %vm6086_vm12, %v4724_v37, %v8091_v48  ;;  %v3993_v58 = vsel %vm3983_vm6, %v3960_v28, %v8068_v20  ;;  %v1049_v13 = vld [vmem:[#allocation2 + $0x80] sm:$0x8] }
 0x2da   : > { %v9598_v24 = vshll.u32 %v7981_v3, 16  ;;  %v2625_v4 = vshrl.u32 %v2348_v38, 16  ;;  %v4836_v39 = vcombine.low %v2658_v51, %v2667_v18  ;;  %v2006_v22 = vshrl.u32 %v1710_v30, 16  ;;  %5095 = vmatprep.mubr.msk.bf16.mxu1 %vm4059_vm9, %v3993_v58  ;;  %v9602_v53 = vld [vmem:[#allocation28_spill] sm:$0xff]  ;;  %v8422_v28 = vpop.permute.xlu0 %3640  ;;  %v9604_v58 = vld [vmem:[#allocation22_spill] sm:$0xff] }
 0x2db   : > { %v9599_v43 = vshll.u32 %v8192_v47, 16  ;;  %v4789_v48 = vcombine.low %v2039_v11, %v2048_v59  ;;  %v2026_v10 = vsel %vm6086_vm12, %v2018_v34, %v2025_v61  ;;  %v1658_v20 = vor.u32 %v8151_v5, %v8146_v27 }
 0x2dc   : > { %v8384_v26 = vrot.slane %v9598_v24, 5  ;;  %v4723_v0 = vrot.slane %v2625_v4, 11  ;;  %3538 = vrot.lane.b32.xlu1 %v4836_v39, %s5561_s11  ;;  %v4708_v6 = vrot.slane %v2006_v22, 11  ;;  %v9600_v47 = vshll.u32 %v8085_v14, 16  ;;  %v2085_v5 = vld [vmem:[#allocation2 + $0xfc] sm:$0x1]  ;;  %v8434_v39 = vpop.permute.xlu1 %3370 }
 0x2dd   : > { %v2016_v41 = vor.u32 %v9599_v43, %v8248_v12  ;;  %v3799_v59 = vsel %vm3785_vm15, %v9601_v36, %v8117_v42  ;;  %3268 = vrot.lane.b32.xlu0 %v4789_v48, %s5558_s13  ;;  %v2915_v27 = vsel %vm6126_vm13, %v8358_v23, %v8081_v1  ;;  %v2286_v15 = vrot.slane %v2285_v9, 4  ;;  %v1442_v34 = vld [vmem:[#allocation2 + $0xfc] sm:$0x1]  ;;  %v9603_v1 = vld [vmem:[#allocation58_spill] sm:$0xff]  ;;  %v8432_v4 = vld [vmem:[#allocation2 + $0x108] sm:$0xf] }
 0x2de   : > { %v2290_v3 = vor.u32 %v8053_v60, %v8384_v26  ;;  %v1660_v12 = vrot.slane %v9600_v47, 5  ;;  %v2725_v60 = vld [vmem:[#allocation2 + $0xfc] sm:$0x1]  ;;  %v1659_v19 = vrot.slane %v1658_v20, 4  ;;  %v8413_v18 = vsel %vm3818_vm0, %v3799_v59, %v9602_v53  ;;  %9605 = vst [vmem:[#allocation73_spill] sm:$0xff] %v8434_v39  ;;  %v9608_v36 = vld [vmem:[#allocation18_spill] sm:$0xff] }
 0x2df   : > { %v2636_v54 = vsel %vm6086_vm12, %v4723_v0, %v2635_v56  ;;  %v2920_v42 = vshll.u32 %v2725_v60, 16  ;;  %v2017_v37 = vsel %vm6086_vm12, %v4708_v6, %v2016_v41  ;;  %v2293_v55 = vshll.u32 %v2085_v5, 16  ;;  %v8446_v6 = vld [vmem:[#allocation2 + $0x104] sm:$0xf] }
 0x2e0   : > { %v4835_v50 = vcombine.low %v2636_v54, %v2645_v7  ;;  %v4788_v8 = vcombine.low %v2017_v37, %v2026_v10  ;;  %v2291_v61 = vrot.slane %v2290_v3, 4  ;;  %v1663_v23 = vor.u32 %v9603_v1, %v1660_v12  ;;  %v9606_v3 = vld [vmem:[#allocation17_spill] sm:$0xff] }
 0x2e1   : > { %v2922_v9 = vrot.slane %v2920_v42, 5  ;;  %v2295_v11 = vrot.slane %v2293_v55, 5  ;;  %v1666_v38 = vshll.u32 %v1442_v34, 16  ;;  %v1252_v51 = vshrl.u32 %v1049_v13, 16  ;;  %v8469_v54 = vld [vmem:[#allocation2 + $0x108] sm:$0xf]  ;;  %v8471_v42 = vpop.permute.xlu0 %3716 }
 0x2e2   : > { %3536 = vrot.lane.b32.xlu0 %v4835_v50, %s5561_s11  ;;  %3266 = vrot.lane.b32.xlu1 %v4788_v8, %s5558_s13  ;;  %v2288_v56 = vsel %vm6126_vm13, %v2286_v15, %v8384_v26  ;;  %v1661_v7 = vsel %vm6126_vm13, %v1659_v19, %v1660_v12  ;;  %v1664_v30 = vrot.slane %v1663_v23, 4  ;;  %v1264_v24 = vrot.slane %v9604_v58, 4 }
 0x2e3   : > { %v2923_v22 = vsel %vm6126_vm13, %v8364_v63, %v2922_v9  ;;  %v1668_v43 = vrot.slane %v1666_v38, 5  ;;  %v4687_v41 = vrot.slane %v1252_v51, 11  ;;  %v2674_v48 = vshrl.u32 %v8420_v2, 16  ;;  %v841_v9 = vld [vmem:[#allocation2 + $0xec] sm:$0x1] }
 0x2e4   : > { %v4868_v10 = vcombine.low %v2915_v27, %v2923_v22  ;;  %v2296_v26 = vsel %vm6126_vm13, %v2291_v61, %v2295_v11  ;;  %v1272_v20 = vsel %vm6086_vm12, %v1264_v24, %v9606_v3  ;;  %v9152_v0 = vshll.u32 %v8420_v2, 16  ;;  %v8487_v11 = vpop.permute.xlu1 %3100  ;;  %v9621_v24 = vld [vmem:[#allocation76_spill] sm:$0xff] }
 0x2e5   : > { %v9607_v47 = vshrl.u32 %v8243_v33, 16  ;;  %v1669_v63 = vsel %vm6126_vm13, %v1664_v30, %v1668_v43  ;;  %v1263_v59 = vsel %vm6086_vm12, %v4687_v41, %v9608_v36  ;;  %v2683_v13 = vshrl.u32 %v8432_v4, 16  ;;  %v9612_v43 = vld [vmem:[#allocation57_spill] sm:$0xff] }
 0x2e6   : > { %v9609_v60 = vshll.u32 %v8243_v33, 16  ;;  %v9610_v5 = vshrl.u32 %v8258_v49, 16  ;;  %3730 = vrot.lane.b32.xlu0 %v4868_v10, %s5562_s16  ;;  %v4774_v19 = vcombine.low %v1661_v7, %v1669_v63  ;;  %v8467_v53 = vcombine.low %v1263_v59, %v1272_v20  ;;  %v9611_v7 = vld [vmem:[#allocation19_spill] sm:$0xff]  ;;  %v9623_v33 = vld [vmem:[#allocation46_spill] sm:$0xff] }
 0x2e7   : > { %v8450_v12 = vrot.slane %v9607_v47, 4  ;;  %v4821_v37 = vcombine.low %v2288_v56, %v2296_v26  ;;  %v8473_v55 = vrot.slane %v2674_v48, 7  ;;  %v2055_v50 = vshrl.u32 %v8446_v6, 16  ;;  %v8507_v10 = vld [vmem:[#allocation2 + $0x118] sm:$0xf] }
 0x2e8   : > { %v8460_v27 = vrot.slane %v9609_v60, 5  ;;  %v8464_v15 = vrot.slane %v9610_v5, 4  ;;  %3190 = vrot.lane.b32.xlu1 %v4774_v19, %s5559_s8  ;;  %v8478_v8 = vrot.slane %v2683_v13, 7  ;;  %v8480_v61 = vrot.slane %v2674_v48, 4  ;;  %v8505_v48 = vld [vmem:[#allocation2 + $0x114] sm:$0xf]  ;;  %v8526_v60 = vpop.permute.xlu0 %3176 }
 0x2e9   : > { %v8484_v1 = vrot.slane %v9152_v0, 5  ;;  %v9150_v23 = vshll.u32 %v8446_v6, 16  ;;  %v8489_v38 = vrot.slane %v2683_v13, 4  ;;  %v4853_v51 = vcombine.low %v8420_v2, %v8432_v4  ;;  %v9614_v5 = vld [vmem:[#allocation34_spill] sm:$0xff]  ;;  %v9620_v0 = vld [vmem:[#allocation25_spill] sm:$0xff] }
 0x2ea   : > { %v2064_v56 = vshrl.u32 %v8469_v54, 16  ;;  %v3863_v30 = vsel %vm3851_vm1, %v8281_v46, %v9611_v7  ;;  %3460 = vrot.lane.b32.xlu0 %v4821_v37, %s5560_s12  ;;  %v8498_v58 = vrot.slane %v2055_v50, 7  ;;  %v4806_v22 = vcombine.low %v8446_v6, %v8469_v54 }
 0x2eb   : > { %v3896_v41 = vsel %vm3884_vm2, %v3863_v30, %v9612_v43  ;;  %v8509_v26 = vrot.slane %v2055_v50, 4  ;;  %v842_v46 = vsel %vm5880_vm7, 0, %v841_v9  ;;  %v2898_v3 = vor.u32 %v8219_v45, %v8206_v35  ;;  %v9616_v30 = vld [vmem:[#allocation52_spill] sm:$0xff]  ;;  %v8542_v43 = vpop.permute.xlu1 %3446 }
 0x2ec   : > { %v9613_v20 = vshll.u32 %v8139_v29, 16  ;;  %v2066_v63 = vrot.slane %v2064_v56, 7  ;;  %v8521_v36 = vrot.slane %v9150_v23, 5  ;;  %3382 = vrot.lane.b32.xlu1 %v4806_v22, %s5556_s28  ;;  %843 = vst [vmem:[#allocation2 + $0xec] sm:$0x1] %v842_v46  ;;  %v2696_v59 = vshrl.u32 %v8505_v48, 16 }
 0x2ed   : > { %v2705_v13 = vshrl.u32 %v8507_v10, 16  ;;  %v3929_v35 = vsel %vm3917_vm3, %v3896_v41, %v9614_v5  ;;  %v9615_v29 = vld [vmem:[#allocation53_spill] sm:$0xff]  ;;  %v9151_v19 = vshll.u32 %v8505_v48, 16  ;;  %v4854_v37 = vcombine.low %v8505_v48, %v8507_v10  ;;  %v9617_v5 = vld [vmem:[#allocation38_spill] sm:$0xff]  ;;  %v9619_v23 = vld [vmem:[#allocation43_spill] sm:$0xff]  ;;  %s5563_s28 = smov [#allocation12]  }
 0x2ee   : > { %v8517_v47 = vrot.slane %v9613_v20, 5  ;;  %3652 = vrot.lane.b32.xlu0 %v4853_v51, %s5557_s30  ;;  %v8536_v50 = vrot.slane %v2064_v56, 4  ;;  %v2899_v9 = vrot.slane %v2898_v3, 4  ;;  %v3865_v22 = vsel %vm3851_vm1, %v8413_v18, %v9616_v30  ;;  %v790_v56 = vld [vmem:[#allocation2 + $0x100] sm:$0x8] }
 0x2ef   : > { %v8544_v41 = vrot.slane %v2696_v59, 7  ;;  %v8546_v46 = vrot.slane %v2705_v13, 7  ;;  %v8548_v20 = vrot.slane %v2696_v59, 4  ;;  %v8552_v51 = vrot.slane %v9151_v19, 5  ;;  %v8598_v39 = vpop.permute.xlu1 %3530 }
 0x2f0   : > { %v2903_v45 = vor.u32 %v9615_v29, %v8517_v47  ;;  %3654 = vrot.lane.b32.xlu1 %v4854_v37, %s5557_s30  ;;  %v3962_v29 = vsel %vm3950_vm5, %v3929_v35, %v9617_v5  ;;  %v1644_v18 = vor.u32 %v8460_v27, %v8450_v12  ;;  %v9618_v30 = vshll.u32 %v8258_v49, 16  ;;  %v847_v5 = vld [vmem:[#allocation2 + $0x10c] sm:$0x1]  ;;  %s5459_s30 = sshll.u32 %s5563_s28, 4  ;;  %s5460_s30 = int_to_ptr.vmem [resolvable:$false] %s5459_s30 }
 0x2f1   : > { %v8563_v59 = vrot.slane %v2705_v13, 4  ;;  %v3995_v19 = vsel %vm3983_vm6, %v3962_v29, %v9619_v23  ;;  %v9622_v37 = vshll.u32 %v8194_v31, 16  ;;  %v3898_v35 = vsel %vm3884_vm2, %v3865_v22, %v9623_v33  ;;  %v8578_v23 = vpop.permute.xlu0 %3260  ;;  %v9625_v29 = vld [vmem:[#allocation37_spill] sm:$0xff]  ;;  %p5462_p4 = scmp.lt.s32.totalorder %s9014_s25, %s5460_s30 }
 0x2f2   : > { %v2904_v3 = vrot.slane %v2903_v45, 4  ;;  %v8561_v7 = vrot.slane %v9618_v30, 5  ;;  %v2271_v45 = vor.u32 %v9621_v24, %v9620_v0  ;;  %5096 = vmatmul.mubr.msk.bf16.gmra.mrb[8].mxu1 %vm4059_vm9, %v3995_v19  ;;  %v1645_v12 = vrot.slane %v1644_v18, 4  ;;  %9624 = vst [vmem:[#allocation85_spill] sm:$0xff] %v8578_v23  ;;  %v9626_v0 = vld [vmem:[#allocation20_spill] sm:$0xff]  ;;  %v9627_v19 = vld [vmem:[#allocation47_spill] sm:$0xff] }
 0x2f3   : > { %v2273_v34 = vrot.slane %v9622_v37, 5  ;;  %v791_v13 = vsel %vm5869_vm4, 0, %v790_v56  ;;  %v8583_v31 = vsel %vm3785_vm15, %v9626_v0, %v9625_v29  ;;  %v2724_v24 = vld [vmem:[#allocation2 + $0xec] sm:$0x1]  ;;  %v2901_v33 = vsel %vm6126_vm13, %v2899_v9, %v8517_v47 }
 0x2f4   : > { %v1649_v27 = vor.u32 %v8464_v15, %v8561_v7  ;;  %v8590_v22 = vsel %vm3917_vm3, %v3898_v35, %v9627_v19  ;;  %v1441_v15 = vld [vmem:[#allocation2 + $0xec] sm:$0x1]  ;;  %792 = vst [vmem:[#allocation2 + $0x100] sm:$0x8] %v791_v13  ;;  %v2906_v37 = vshll.u32 %v2724_v24, 16  ;;  %v9629_v29 = vshll.u32 %v8432_v4, 16 }
 0x2f5   : > { %v2084_v18 = vld [vmem:[#allocation2 + $0xec] sm:$0x1]  ;;  %v1652_v49 = vshll.u32 %v1441_v15, 16  ;;  %v9630_v14 = vshll.u32 %v8469_v54, 16  ;;  %v2272_v9 = vrot.slane %v2271_v45, 4  ;;  %v848_v13 = vsel %vm5880_vm7, 0, %v847_v5 }
 0x2f6   : > { %v9628_v56 = vld [vmem:[#allocation77_spill] sm:$0xff]  ;;  %v2688_v0 = vor.u32 %v9629_v29, %v8478_v8  ;;  %v1650_v47 = vrot.slane %v1649_v27, 4  ;;  %v2279_v19 = vshll.u32 %v2084_v18, 16  ;;  %v2908_v23 = vrot.slane %v2906_v37, 5  ;;  %849 = vst [vmem:[#allocation2 + $0x10c] sm:$0x1] %v848_v13 }
 0x2f7   : > { %v2276_v30 = vor.u32 %v9628_v56, %v2273_v34  ;;  %v2069_v44 = vor.u32 %v9630_v14, %v2066_v63  ;;  %v1654_v17 = vrot.slane %v1652_v49, 5  ;;  %v2681_v56 = vrot.slane %v8473_v55, 4  ;;  %v793_v63 = vld [vmem:[#allocation2 + $0x110] sm:$0x8] }
 0x2f8   : > { %v2274_v24 = vsel %vm6126_vm13, %v2272_v9, %v2273_v34  ;;  %v2281_v8 = vrot.slane %v2279_v19, 5  ;;  %v2062_v15 = vrot.slane %v8498_v58, 4  ;;  %v2926_v14 = vor.u32 %v8484_v1, %v8480_v61 }
 0x2f9   : > { %v2277_v35 = vrot.slane %v2276_v30, 4  ;;  %v2909_v45 = vsel %vm6126_vm13, %v2904_v3, %v2908_v23  ;;  %v1647_v49 = vsel %vm6126_vm13, %v1645_v12, %v8561_v7  ;;  %v9631_v27 = vshll.u32 %v8420_v2, 16  ;;  %v8620_v30 = vpop.permute.xlu0 %3528  ;;  %v1058_v7 = vld [vmem:[#allocation2 + $0xb0] sm:$0x8] }
 0x2fa   : > { %v9632_v34 = vmov %v9629_v29  ;;  %v4867_v37 = vcombine.low %v2901_v33, %v2909_v45  ;;  %v1655_v61 = vsel %vm6126_vm13, %v1650_v47, %v1654_v17  ;;  %v8626_v3 = vrot.slane %v2926_v14, 4  ;;  %v8635_v17 = vpop.permute.xlu1 %3258 }
 0x2fb   : > { %v2679_v5 = vor.u32 %v9631_v27, %v8473_v55  ;;  %v8618_v18 = vrot.slane %v9632_v34, 5  ;;  %v2282_v1 = vsel %vm6126_vm13, %v2277_v35, %v2281_v8  ;;  %v2354_v23 = vld [vmem:[#allocation2 + $0x100] sm:$0x8]  ;;  %v2689_v2 = vsel %vm6086_vm12, %v2681_v56, %v2688_v0  ;;  %v9635_v56 = vld [vmem:[#allocation55_spill] sm:$0xff] }
 0x2fc   : > { %v4820_v12 = vcombine.low %v2274_v24, %v2282_v1  ;;  %v1716_v4 = vld [vmem:[#allocation2 + $0x100] sm:$0x8]  ;;  %v9633_v55 = vshll.u32 %v8446_v6, 16  ;;  %v794_v33 = vsel %vm5869_vm4, 0, %v793_v63  ;;  %3728 = vrot.lane.b32.xlu0 %v4867_v37, %s5562_s16  ;;  %v2669_v47 = vshrl.u32 %v2354_v23, 16  ;;  %v9639_v23 = vld [vmem:[#allocation67_spill] sm:$0xff] }
 0x2fd   : > { %v2050_v9 = vshrl.u32 %v1716_v4, 16  ;;  %v2070_v35 = vsel %vm6086_vm12, %v2062_v15, %v2069_v44  ;;  %v2931_v0 = vor.u32 %v8489_v38, %v8618_v18  ;;  %795 = vst [vmem:[#allocation2 + $0x110] sm:$0x8] %v794_v33  ;;  %v4773_v19 = vcombine.low %v1647_v49, %v1655_v61  ;;  %v2726_v14 = vld [vmem:[#allocation2 + $0x10c] sm:$0x1]  ;;  %v8661_v37 = vpop.permute.xlu0 %3376 }
 0x2fe   : > { %v2060_v29 = vor.u32 %v9633_v55, %v8498_v58  ;;  %3458 = vrot.lane.b32.xlu1 %v4820_v12, %s5560_s12  ;;  %v9634_v57 = vshll.u32 %v8505_v48, 16  ;;  %v1318_v58 = vshrl.u32 %v1058_v7, 16  ;;  %v1330_v13 = vrot.slane %v9635_v56, 4  ;;  %v9637_v48 = vld [vmem:[#allocation68_spill] sm:$0xff]  ;;  %v2086_v27 = vld [vmem:[#allocation2 + $0x10c] sm:$0x1]  ;;  %v8675_v4 = vpop.permute.xlu1 %3646 }
 0x2ff   : > { %v4725_v24 = vrot.slane %v2669_v47, 11  ;;  %v4710_v8 = vrot.slane %v2050_v9, 11  ;;  %v2929_v44 = vsel %vm6126_vm13, %v8626_v3, %v8618_v18  ;;  %v9636_v38 = vshll.u32 %v8469_v54, 16  ;;  %v850_v1 = vld [vmem:[#allocation2 + $0x11c] sm:$0x1]  ;;  %v9641_v56 = vld [vmem:[#allocation60_spill] sm:$0xff] }
 0x300   : > { %v8646_v6 = vor.u32 %v9634_v57, %v8544_v41  ;;  %v2703_v63 = vrot.slane %v8544_v41, 4  ;;  %v4690_v45 = vrot.slane %v1318_v58, 11  ;;  %v1338_v49 = vsel %vm6086_vm12, %v1330_v13, %v9637_v48  ;;  %3188 = vrot.lane.b32.xlu0 %v4773_v19, %s5559_s8  ;;  %v9642_v13 = vld [vmem:[#allocation54_spill] sm:$0xff] }
 0x301   : > { %v2301_v15 = vrot.slane %v9636_v38, 5  ;;  %v2299_v34 = vor.u32 %v8521_v36, %v8509_v26  ;;  %v2680_v54 = vsel %vm6086_vm12, %v4725_v24, %v2679_v5  ;;  %v2061_v18 = vsel %vm6086_vm12, %v4710_v8, %v2060_v29  ;;  %v1055_v8 = vld [vmem:[#allocation2 + $0xa0] sm:$0x8]  ;;  %v8699_v38 = vpop.permute.xlu0 %3722 }
 0x302   : > { %v2932_v41 = vrot.slane %v2931_v0, 4  ;;  %v2934_v61 = vshll.u32 %v2726_v14, 16  ;;  %v4790_v3 = vcombine.low %v2061_v18, %v2070_v35  ;;  %v9638_v7 = vshll.u32 %v8507_v10, 16 }
 0x303   : > { %v1329_v26 = vsel %vm6086_vm12, %v4690_v45, %v9639_v23  ;;  %v2304_v36 = vor.u32 %v8536_v50, %v2301_v15  ;;  %v4837_v5 = vcombine.low %v2680_v54, %v2689_v2  ;;  %v2307_v29 = vshll.u32 %v2086_v27, 16  ;;  %v1064_v54 = vld [vmem:[#allocation2 + $0xd0] sm:$0x8] }
 0x304   : > { %v2710_v12 = vor.u32 %v9638_v7, %v8546_v46  ;;  %v2936_v55 = vrot.slane %v2934_v61, 5  ;;  %v4738_v33 = vcombine.low %v1329_v26, %v1338_v49  ;;  %3270 = vrot.lane.b32.xlu1 %v4790_v3, %s5558_s13  ;;  %v2357_v47 = vld [vmem:[#allocation2 + $0x110] sm:$0x8]  ;;  %v2300_v9 = vrot.slane %v2299_v34, 4  ;;  %v9643_v49 = vld [vmem:[#allocation75_spill] sm:$0xff]  ;;  %v9645_v34 = vld [vmem:[#allocation36_spill] sm:$0xff] }
 0x305   : > { %v2305_v35 = vrot.slane %v2304_v36, 4  ;;  %v851_v46 = vsel %vm5880_vm7, 0, %v850_v1  ;;  %v9640_v0 = vmov %v9638_v7  ;;  %3540 = vrot.lane.b32.xlu0 %v4837_v5, %s5561_s11  ;;  %v2691_v2 = vshrl.u32 %v2357_v47, 16  ;;  %v9646_v7 = vld [vmem:[#allocation74_spill] sm:$0xff]  ;;  %v1061_v26 = vld [vmem:[#allocation2 + $0xc0] sm:$0x8] }
 0x306   : > { %v8682_v19 = vrot.slane %v9640_v0, 5  ;;  %v2937_v50 = vsel %vm6126_vm13, %v2932_v41, %v2936_v55  ;;  %v8689_v57 = vsel %vm3736_vm14, %v4738_v33, %v8341_v32  ;;  %v2309_v58 = vrot.slane %v2307_v29, 5  ;;  %852 = vst [vmem:[#allocation2 + $0x11c] sm:$0x1] %v851_v46  ;;  %v9648_v55 = vld [vmem:[#allocation71_spill] sm:$0xff]  ;;  %v8734_v33 = vpop.permute.xlu0 %3452  ;;  %v9649_v29 = vld [vmem:[#allocation21_spill] sm:$0xff] }
 0x307   : > { %v3834_v62 = vsel %vm3818_vm0, %v8583_v31, %v9641_v56  ;;  %v2940_v10 = vor.u32 %v8552_v51, %v8548_v20  ;;  %v3964_v24 = vsel %vm3950_vm5, %v8590_v22, %v9642_v13  ;;  %v4869_v14 = vcombine.low %v2929_v44, %v2937_v50  ;;  %v3107_v44 = vpop.permute.xlu1 %3106  ;;  %v9651_v0 = vld [vmem:[#allocation72_spill] sm:$0xff]  ;;  %s5461_s13 = scalar_lea.vmem %s5460_s30, 4096 }
 0x308   : > { %v4726_v45 = vrot.slane %v2691_v2, 11  ;;  %v2711_v32 = vsel %vm6086_vm12, %v2703_v63, %v2710_v12  ;;  %v3997_v48 = vsel %vm3983_vm6, %v3964_v24, %v8471_v42  ;;  %v3763_v31 = vsel %vm3736_vm14, %v8467_v53, %v9643_v49  ;;  %v9644_v53 = vld [vmem:[#allocation50_spill] sm:$0xff]  ;;  %v9647_v12 = vld [vmem:[#allocation81_spill] sm:$0xff]  ;;  %p5463_p8 = scmp.lt.s32.totalorder %s5461_s13, %s5455_s26 }
 0x309   : > { %v2302_v20 = vsel %vm6126_vm13, %v2300_v9, %v2301_v15  ;;  %v2310_v51 = vsel %vm6126_vm13, %v2305_v35, %v2309_v58  ;;  %v2945_v22 = vor.u32 %v8563_v59, %v8682_v19  ;;  %5099 = vmatprep.mubr.msk.bf16.mxu1 %vm4059_vm9, %v3997_v48  ;;  %3732 = vrot.lane.b32.xlu0 %v4869_v14, %s5562_s16  ;;  %v1296_v63 = vshrl.u32 %v1055_v8, 16  ;;  %v9650_v35 = vld [vmem:[#allocation80_spill] sm:$0xff]  ;;  %v9654_v48 = vld [vmem:[#allocation62_spill] sm:$0xff] }
 0x30a   : > { %v2702_v42 = vsel %vm6086_vm12, %v4726_v45, %v8646_v6  ;;  %v1308_v27 = vrot.slane %v9644_v53, 4  ;;  %v3867_v15 = vsel %vm3851_vm1, %v3834_v62, %v9645_v34  ;;  %v2941_v41 = vrot.slane %v2940_v10, 4  ;;  %v9652_v62 = vld [vmem:[#allocation83_spill] sm:$0xff]  ;;  %v9653_v45 = vld [vmem:[#allocation70_spill] sm:$0xff]  ;;  %p5464_p0 = por %p5463_p8, %p5462_p4 }
 0x30b   : > { %v4838_v18 = vcombine.low %v2702_v42, %v2711_v32  ;;  %v3803_v59 = vsel %vm3785_vm15, %v3763_v31, %v8526_v60  ;;  %v3900_v61 = vsel %vm3884_vm2, %v3867_v15, %v8542_v43  ;;  %v4822_v1 = vcombine.low %v2302_v20, %v2310_v51  ;;  %v8748_v13 = vpop.permute.xlu1 %3182  ;;  %v9655_v51 = vld [vmem:[#allocation63_spill] sm:$0xff] }
 0x30c   : > { %v4689_v3 = vrot.slane %v1296_v63, 11  ;;  %v1316_v6 = vsel %vm6086_vm12, %v1308_v27, %v9646_v7  ;;  %v3933_v23 = vsel %vm3917_vm3, %v3900_v61, %v9647_v12  ;;  %v2946_v5 = vrot.slane %v2945_v22, 4  ;;  %v9656_v42 = vld [vmem:[#allocation31_spill] sm:$0xff]  ;;  %v3645_v27 = vpop.permute.xlu0 %3644  ;;  %p5465_p5 = pnand %p5464_p0, %p5458_p2 }
 0x30d   : > { %3542 = vrot.lane.b32.xlu1 %v4838_v18, %s5561_s11  ;;  %v2727_v36 = vld [vmem:[#allocation2 + $0x11c] sm:$0x1]  ;;  %v3966_v60 = vsel %vm3950_vm5, %v3933_v23, %v9648_v55  ;;  %v1362_v43 = vshrl.u32 %v1064_v54, 16  ;;  %v1374_v47 = vrot.slane %v9649_v29, 4  ;;  %v3836_v46 = vsel %vm3818_vm0, %v3803_v59, %v9650_v35  ;;  %v9659_v23 = vld [vmem:[#allocation85_spill] sm:$0xff] }
 0x30e   : > { %v2948_v9 = vshll.u32 %v2727_v36, 16  ;;  %v1307_v50 = vsel %vm6086_vm12, %v4689_v3, %v9651_v0  ;;  %v3999_v2 = vsel %vm3983_vm6, %v3966_v60, %v8328_v25  ;;  %v1340_v24 = vshrl.u32 %v1061_v26, 16  ;;  %v9658_v7 = vld [vmem:[#allocation35_spill] sm:$0xff]  ;;  %v9660_v36 = vld [vmem:[#allocation73_spill] sm:$0xff] }
 0x30f   : > { %v4737_v58 = vcombine.low %v1307_v50, %v1316_v6  ;;  %5100 = vmatmul.mubr.msk.bf16.gmra.mrb[12].mxu1 %vm4059_vm9, %v3999_v2  ;;  %v4692_v56 = vrot.slane %v1362_v43, 11  ;;  %v1382_v10 = vsel %vm6086_vm12, %v1374_v47, %v9652_v62  ;;  %v2943_v8 = vsel %vm6126_vm13, %v2941_v41, %v8682_v19  ;;  %v3375_v34 = vpop.permute.xlu1 %3374  ;;  %v1070_v43 = vld [vmem:[#allocation2 + $0xf0] sm:$0x8]  ;;  %v9662_v35 = vld [vmem:[#allocation51_spill] sm:$0xff]  ;;  %v9664_v50 = vld [vmem:[#allocation56_spill] sm:$0xff] }
 0x310   : > { %v2950_v14 = vrot.slane %v2948_v9, 5  ;;  %v1352_v32 = vrot.slane %v9653_v45, 4  ;;  %v4691_v31 = vrot.slane %v1340_v24, 11  ;;  %v3869_v22 = vsel %vm3851_vm1, %v3836_v46, %v9655_v51 }
 0x311   : > { %3462 = vrot.lane.b32.xlu1 %v4822_v1, %s5560_s12  ;;  %v3769_v25 = vsel %vm3736_vm14, %v4737_v58, %v8487_v11  ;;  %v1373_v49 = vsel %vm6086_vm12, %v4692_v56, %v9654_v48  ;;  %v9657_v11 = vld [vmem:[#allocation44_spill] sm:$0xff]  ;;  %v3902_v18 = vsel %vm3884_vm2, %v3869_v22, %v8386_v40  ;;  %v3721_v1 = vpop.permute.xlu0 %3720  ;;  %v3805_v6 = vsel %vm3785_vm15, %v9658_v7, %v8398_v21  ;;  %v9661_v21 = vld [vmem:[#allocation82_spill] sm:$0xff] }
 0x312   : > { %v2951_v20 = vsel %vm6126_vm13, %v2946_v5, %v2950_v14  ;;  %v4740_v19 = vcombine.low %v1373_v49, %v1382_v10  ;;  %v1360_v63 = vsel %vm6086_vm12, %v1352_v32, %v9656_v42  ;;  %v1351_v15 = vsel %vm6086_vm12, %v4691_v31, %v9657_v11 }
 0x313   : > { %v4870_v53 = vcombine.low %v2943_v8, %v2951_v20  ;;  %v4739_v16 = vcombine.low %v1351_v15, %v1360_v63  ;;  %v3935_v41 = vsel %vm3917_vm3, %v3902_v18, %v8620_v30  ;;  %v3105_v59 = vpop.permute.xlu1 %3104  ;;  %v3838_v30 = vsel %vm3818_vm0, %v3805_v6, %v8635_v17 }
 0x314   : > { %v8771_v54 = vsel %vm3736_vm14, %v4740_v19, %v3107_v44  ;;  %v3968_v3 = vsel %vm3950_vm5, %v3935_v41, %v8422_v28  ;;  %v3871_v28 = vsel %vm3851_vm1, %v3838_v30, %v9660_v36  ;;  %v1406_v9 = vshrl.u32 %v1070_v43, 16 }
 0x315   : > { %3734 = vrot.lane.b32.xlu1 %v4870_v53, %s5562_s16  ;;  %v8779_v61 = vsel %vm3736_vm14, %v4739_v16, %v3105_v59  ;;  %v4001_v44 = vsel %vm3983_vm6, %v3968_v3, %v3721_v1  ;;  %v3181_v40 = vpop.permute.xlu0 %3180  ;;  %v9663_v46 = vshrl.u32 %v9662_v35, 16  ;;  %v9665_v2 = vshrl.u32 %v9664_v50, 16  ;;  %v9668_v53 = vld [vmem:[#allocation32_spill] sm:$0xff] }
 0x316   : > { %5103 = vmatprep.mubr.msk.bf16.mxu1 %vm4059_vm9, %v4001_v44  ;;  %v3807_v12 = vsel %vm3785_vm15, %v3769_v25, %v3181_v40  ;;  %v9666_v10 = vshll.u32 %v9662_v35, 16  ;;  %v9667_v14 = vshll.u32 %v9664_v50, 16  ;;  %v3809_v41 = vsel %vm3785_vm15, %v8689_v57, %v8748_v13  ;;  %v8860_v50 = vld [vmem:[#allocation11] ss:$0 sm:$0xff] }
 0x317   : > { %v3840_v26 = vsel %vm3818_vm0, %v3807_v12, %v9659_v23  ;;  %v3451_v5 = vpop.permute.xlu1 %3450  ;;  %v1413_v0 = vrot.slane %v9663_v46, 7  ;;  %v1422_v58 = vrot.slane %v9665_v2, 7  ;;  %vm4417_vm4 = vcmask 257024  }
 0x318   : > { %v3904_v55 = vsel %vm3884_vm2, %v3871_v28, %v3451_v5  ;;  %v3873_v11 = vsel %vm3851_vm1, %v3840_v26, %v9668_v53 }
 0x319   : > { %v3937_v60 = vsel %vm3917_vm3, %v3904_v55, %v8598_v39  ;;  %v4694_v39 = vrot.slane %v1406_v9, 11  ;;  %v1416_v24 = vor.u32 %v9666_v10, %v1413_v0  ;;  %v1418_v8 = vrot.slane %v1413_v0, 4  ;;  %v1067_v55 = vld [vmem:[#allocation2 + $0xe0] sm:$0x8]  ;;  %v9671_v9 = vld [vmem:[#allocation61_spill] sm:$0xff] }
 0x31a   : > { %v3970_v29 = vsel %vm3950_vm5, %v3937_v60, %v9661_v21  ;;  %v3906_v18 = vsel %vm3884_vm2, %v3873_v11, %v8734_v33  ;;  %v1384_v21 = vshrl.u32 %v1067_v55, 16  ;;  %v9672_v35 = vshrl.u32 %v9671_v9, 16 }
 0x31b   : > { %v4003_v17 = vsel %vm3983_vm6, %v3970_v29, %v8699_v38  ;;  %v1425_v38 = vor.u32 %v9667_v14, %v1422_v58  ;;  %v1417_v25 = vsel %vm6086_vm12, %v4694_v39, %v1416_v24  ;;  %v9669_v29 = vld [vmem:[#allocation26_spill] sm:$0xff] }
 0x31c   : > { %5104 = vmatmul.mubr.msk.bf16.gmra.mrb[16].mxu1 %vm4059_vm9, %v4003_v17  ;;  %v3265_v56 = vpop.permute.xlu0 %3264  ;;  %v9670_v17 = vshrl.u32 %v9669_v29, 16  ;;  %v1400_v46 = vrot.slane %v9672_v35, 7  ;;  %v4693_v2 = vrot.slane %v1384_v21, 11  ;;  %v9673_v58 = vshll.u32 %v9669_v29, 16 }
 0x31d   : > { %v3535_v47 = vpop.permute.xlu1 %3534  ;;  %v1426_v48 = vsel %vm6086_vm12, %v1418_v8, %v1425_v38 }
 0x31e   : > { %v4742_v49 = vcombine.low %v1417_v25, %v1426_v48 }
 0x320   : > { %v3533_v45 = vpop.permute.xlu0 %3532 }
 0x321   : > { %v3939_v59 = vsel %vm3917_vm3, %v3906_v18, %v3533_v45 }
 0x322   : > { %v3263_v62 = vpop.permute.xlu1 %3262  ;;  %v3972_v44 = vsel %vm3950_vm5, %v3939_v59, %v3645_v27 }
 0x323   : > { %v3842_v1 = vsel %vm3818_vm0, %v3809_v41, %v3263_v62 }
 0x324   : > { %v8817_v20 = vpop.permute.xlu0 %3380  ;;  %v3875_v6 = vsel %vm3851_vm1, %v3842_v1, %v3375_v34 }
 0x326   : > { %v8811_v32 = vpop.permute.xlu1 %3650 }
 0x32a   : > { %v3111_v31 = vpop.permute.xlu1 %3110 }
 0x32b   : > { %v8820_v51 = vsel %vm3736_vm14, %v4742_v49, %v3111_v31 }
 0x32d   : > { %v3727_v22 = vpop.permute.xlu0 %3726 }
 0x331   : > { %v3457_v42 = vpop.permute.xlu0 %3456 }
 0x335   : > { %v3187_v19 = vpop.permute.xlu1 %3186  ;;  %v3649_v15 = vpop.permute.xlu0 %3648 }
 0x336   : > { %v3813_v45 = vsel %vm3785_vm15, %v8771_v54, %v3187_v19 }
 0x33a   : > { %v8822_v63 = vpop.permute.xlu1 %3378 }
 0x33f   : > { %v8826_v16 = vpop.permute.xlu1 %3108 }
 0x345   : > { %v3725_v3 = vpop.permute.xlu0 %3724 }
 0x346   : > { %v4005_v7 = vsel %vm3983_vm6, %v3972_v44, %v3725_v3 }
 0x347   : > { %v3455_v40 = vpop.permute.xlu1 %3454  ;;  %5107 = vmatprep.mubr.msk.bf16.mxu1 %vm4059_vm9, %v4005_v7 }
 0x348   : > { %v3908_v33 = vsel %vm3884_vm2, %v3875_v6, %v3455_v40 }
 0x349   : > { %v3941_v30 = vsel %vm3917_vm3, %v3908_v33, %v3535_v47  ;;  %v3185_v12 = vpop.permute.xlu0 %3184  ;;  %v1391_v47 = vrot.slane %v9670_v17, 7 }
 0x34a   : > { %v3974_v57 = vsel %vm3950_vm5, %v3941_v30, %v8675_v4  ;;  %v3811_v5 = vsel %vm3785_vm15, %v8779_v61, %v3185_v12 }
 0x34b   : > { %v4007_v13 = vsel %vm3983_vm6, %v3974_v57, %v3727_v22  ;;  %v3844_v4 = vsel %vm3818_vm0, %v3811_v5, %v3265_v56  ;;  %v1394_v62 = vor.u32 %v9673_v58, %v1391_v47  ;;  %v1396_v39 = vrot.slane %v1391_v47, 4 }
 0x34c   : > { %5108 = vmatmul.mubr.msk.bf16.gmra.mrb[20].mxu1 %vm4059_vm9, %v4007_v13  ;;  %v3877_v0 = vsel %vm3851_vm1, %v3844_v4, %v8661_v37  ;;  %v9674_v56 = vshll.u32 %v9671_v9, 16 }
 0x34d   : > { %v3910_v14 = vsel %vm3884_vm2, %v3877_v0, %v3457_v42  ;;  %v1395_v42 = vsel %vm6086_vm12, %v4693_v2, %v1394_v62 }
 0x34e   : > { %v3539_v23 = vpop.permute.xlu1 %3538  ;;  %v1403_v10 = vor.u32 %v9674_v56, %v1400_v46 }
 0x34f   : > { %v8845_v27 = vpop.permute.xlu0 %3268 }
 0x350   : > { %v1404_v18 = vsel %vm6086_vm12, %v1396_v39, %v1403_v10 }
 0x351   : > { %v4741_v30 = vcombine.low %v1395_v42, %v1404_v18 }
 0x353   : > { %v3781_v57 = vsel %vm3736_vm14, %v4741_v30, %v8826_v16 }
 0x354   : > { %v3537_v26 = vpop.permute.xlu0 %3536  ;;  %v3267_v34 = vpop.permute.xlu1 %3266 }
 0x355   : > { %v3943_v25 = vsel %vm3917_vm3, %v3910_v14, %v3537_v26  ;;  %v3846_v31 = vsel %vm3818_vm0, %v3813_v45, %v3267_v34 }
 0x356   : > { %v3976_v59 = vsel %vm3950_vm5, %v3943_v25, %v3649_v15  ;;  %v3879_v7 = vsel %vm3851_vm1, %v3846_v31, %v8822_v63 }
 0x358   : > { %v3731_v36 = vpop.permute.xlu0 %3730 }
 0x35a   : > { %v8847_v28 = vpop.permute.xlu1 %3190 }
 0x35c   : > { %v3461_v60 = vpop.permute.xlu0 %3460 }
 0x35e   : > { %v8851_v43 = vpop.permute.xlu1 %3382 }
 0x360   : > { %v3653_v61 = vpop.permute.xlu0 %3652 }
 0x361   : > { %v5089_v8 = vpop.f32.mrb[0].mxu1 }
 0x362   : > { %v8866_v24 = vpop.permute.xlu1 %3654  ;;  %v4139_v38 = vadd.f32 %v5089_v8, %v8860_v50  ;;  %v4130_v37 = vpop.f32.mrb[1].mxu1 }
 0x363   : > { %v4131_v48 = vadd.f32 %v8860_v50, %v4130_v37  ;;  %v5090_v49 = vpop.f32.mrb[2].mxu1 }
 0x364   : > { %v4259_v22 = vmax.f32 %v4139_v38, 0.0  ;;  %v4142_v53 = vadd.f32 %v5090_v49, %v8860_v50  ;;  %v4133_v11 = vpop.f32.mrb[3].mxu1 }
 0x365   : > { %v4257_v41 = vmax.f32 %v4131_v48, 0.0  ;;  %v4134_v54 = vadd.f32 %v8860_v50, %v4133_v11 }
 0x366   : > { %v4968_v1 = vpack.c.bf16 %v4259_v22, %v4259_v22  ;;  %v4260_v3 = vmax.f32 %v4142_v53, 0.0 }
 0x367   : > { %v4966_v40 = vpack.c.bf16 %v4257_v41, %v4257_v41  ;;  %v4258_v33 = vmax.f32 %v4134_v54, 0.0 }
 0x368   : > { %4420 = vst.msk [vmem:[%s8888_s1 + $0x8] sm:$0xf] %vm4417_vm4, %v4968_v1  ;;  %v4969_v15 = vpack.c.bf16 %v4260_v3, %v4260_v3 }
 0x369   : > { %4418 = vst.msk [vmem:[%s8888_s1] sm:$0xf] %vm4417_vm4, %v4966_v40  ;;  %v4967_v63 = vpack.c.bf16 %v4258_v33, %v4258_v33 }
 0x36a   : > { %4421 = vst.msk [vmem:[%s8888_s1 + $0xc] sm:$0xf] %vm4417_vm4, %v4969_v15 }
 0x36b   : > { %4419 = vst.msk [vmem:[%s8888_s1 + $0x4] sm:$0xf] %vm4417_vm4, %v4967_v63 }
 0x36e   : > { %v3729_v19 = vpop.permute.xlu0 %3728 }
 0x36f   : > { %v4009_v44 = vsel %vm3983_vm6, %v3976_v59, %v3729_v19 }
 0x370   : > { %v3459_v6 = vpop.permute.xlu1 %3458  ;;  %5111 = vmatprep.mubr.msk.bf16.mxu1 %vm4059_vm9, %v4009_v44 }
 0x371   : > { %v3912_v52 = vsel %vm3884_vm2, %v3879_v7, %v3459_v6 }
 0x372   : > { %v3945_v12 = vsel %vm3917_vm3, %v3912_v52, %v3539_v23  ;;  %v3189_v13 = vpop.permute.xlu0 %3188 }
 0x373   : > { %v3978_v26 = vsel %vm3950_vm5, %v3945_v12, %v8811_v32  ;;  %v3815_v34 = vsel %vm3785_vm15, %v3781_v57, %v3189_v13 }
 0x374   : > { %v4011_v5 = vsel %vm3983_vm6, %v3978_v26, %v3731_v36  ;;  %v3848_v23 = vsel %vm3818_vm0, %v3815_v34, %v8845_v27  ;;  %v3817_v27 = vsel %vm3785_vm15, %v8820_v51, %v8847_v28 }
 0x375   : > { %5112 = vmatmul.mubr.msk.bf16.gmra.mrb[24].mxu1 %vm4059_vm9, %v4011_v5  ;;  %v3881_v16 = vsel %vm3851_vm1, %v3848_v23, %v8817_v20 }
 0x376   : > { %v3914_v4 = vsel %vm3884_vm2, %v3881_v16, %v3461_v60  ;;  %v3271_v21 = vpop.permute.xlu1 %3270 }
 0x377   : > { %v3541_v55 = vpop.permute.xlu0 %3540  ;;  %v3850_v20 = vsel %vm3818_vm0, %v3817_v27, %v3271_v21 }
 0x378   : > { %v3947_v32 = vsel %vm3917_vm3, %v3914_v4, %v3541_v55  ;;  %v3883_v60 = vsel %vm3851_vm1, %v3850_v20, %v8851_v43 }
 0x379   : > { %v3980_v17 = vsel %vm3950_vm5, %v3947_v32, %v3653_v61 }
 0x37b   : > { %v3733_v29 = vpop.permute.xlu0 %3732 }
 0x37c   : > { %v4013_v36 = vsel %vm3983_vm6, %v3980_v17, %v3733_v29 }
 0x37d   : > { %5115 = vmatprep.mubr.msk.bf16.mxu1 %vm4059_vm9, %v4013_v36 }
 0x37f   : > { %v3543_v47 = vpop.permute.xlu1 %3542 }
 0x383   : > { %v3463_v9 = vpop.permute.xlu1 %3462 }
 0x384   : > { %v3916_v35 = vsel %vm3884_vm2, %v3883_v60, %v3463_v9 }
 0x385   : > { %v3949_v46 = vsel %vm3917_vm3, %v3916_v35, %v3543_v47 }
 0x386   : > { %v3982_v0 = vsel %vm3950_vm5, %v3949_v46, %v8866_v24 }
 0x387   : > { %v3735_v61 = vpop.permute.xlu1 %3734 }
 0x388   : > { %v4015_v2 = vsel %vm3983_vm6, %v3982_v0, %v3735_v61 }
 0x389   : > { %5116 = vmatmul.mubr.msk.bf16.gmra.mrb[28].mxu1 %vm4059_vm9, %v4015_v2 }
 0x393   : > { %v5093_v51 = vpop.f32.mrb[4].mxu1 }
 0x394   : > { %v4155_v28 = vadd.f32 %v5093_v51, %v8860_v50  ;;  %v4146_v58 = vpop.f32.mrb[5].mxu1 }
 0x395   : > { %v4147_v43 = vadd.f32 %v8860_v50, %v4146_v58  ;;  %v5094_v62 = vpop.f32.mrb[6].mxu1 }
 0x396   : > { %v4263_v39 = vmax.f32 %v4155_v28, 0.0  ;;  %v4158_v56 = vadd.f32 %v5094_v62, %v8860_v50  ;;  %v4149_v10 = vpop.f32.mrb[7].mxu1 }
 0x397   : > { %v4261_v24 = vmax.f32 %v4147_v43, 0.0  ;;  %v4150_v8 = vadd.f32 %v8860_v50, %v4149_v10 }
 0x398   : > { %v4972_v14 = vpack.c.bf16 %v4263_v39, %v4263_v39  ;;  %v4264_v38 = vmax.f32 %v4158_v56, 0.0 }
 0x399   : > { %v4970_v37 = vpack.c.bf16 %v4261_v24, %v4261_v24  ;;  %v4262_v45 = vmax.f32 %v4150_v8, 0.0 }
 0x39a   : > { %4424 = vst.msk [vmem:[%s8888_s1 + $0x18] sm:$0xf] %vm4417_vm4, %v4972_v14  ;;  %v4973_v25 = vpack.c.bf16 %v4264_v38, %v4264_v38 }
 0x39b   : > { %4422 = vst.msk [vmem:[%s8888_s1 + $0x10] sm:$0xf] %vm4417_vm4, %v4970_v37  ;;  %v4971_v48 = vpack.c.bf16 %v4262_v45, %v4262_v45 }
 0x39c   : > { %4425 = vst.msk [vmem:[%s8888_s1 + $0x1c] sm:$0xf] %vm4417_vm4, %v4973_v25 }
 0x39d   : > { %4423 = vst.msk [vmem:[%s8888_s1 + $0x14] sm:$0xf] %vm4417_vm4, %v4971_v48 }
 0x3c5   : > { %v5097_v49 = vpop.f32.mrb[8].mxu1 }
 0x3c6   : > { %v4171_v31 = vadd.f32 %v5097_v49, %v8860_v50  ;;  %v4162_v22 = vpop.f32.mrb[9].mxu1 }
 0x3c7   : > { %v4163_v53 = vadd.f32 %v8860_v50, %v4162_v22  ;;  %v5098_v11 = vpop.f32.mrb[10].mxu1 }
 0x3c8   : > { %v4267_v42 = vmax.f32 %v4171_v31, 0.0  ;;  %v4174_v18 = vadd.f32 %v5098_v11, %v8860_v50  ;;  %v4165_v41 = vpop.f32.mrb[11].mxu1 }
 0x3c9   : > { %v4265_v54 = vmax.f32 %v4163_v53, 0.0  ;;  %v4166_v19 = vadd.f32 %v8860_v50, %v4165_v41 }
 0x3ca   : > { %v4976_v59 = vpack.c.bf16 %v4267_v42, %v4267_v42  ;;  %v4268_v1 = vmax.f32 %v4174_v18, 0.0 }
 0x3cb   : > { %v4974_v3 = vpack.c.bf16 %v4265_v54, %v4265_v54  ;;  %v4266_v44 = vmax.f32 %v4166_v19, 0.0 }
 0x3cc   : > { %4428 = vst.msk [vmem:[%s8888_s1 + $0x28] sm:$0xf] %vm4417_vm4, %v4976_v59  ;;  %v4977_v7 = vpack.c.bf16 %v4268_v1, %v4268_v1 }
 0x3cd   : > { %4426 = vst.msk [vmem:[%s8888_s1 + $0x20] sm:$0xf] %vm4417_vm4, %v4974_v3  ;;  %v4975_v6 = vpack.c.bf16 %v4266_v44, %v4266_v44 }
 0x3ce   : > { %4429 = vst.msk [vmem:[%s8888_s1 + $0x2c] sm:$0xf] %vm4417_vm4, %v4977_v7 }
 0x3cf   : > { %4427 = vst.msk [vmem:[%s8888_s1 + $0x24] sm:$0xf] %vm4417_vm4, %v4975_v6 }
 0x3e2   : > { %v5101_v40 = vpop.f32.mrb[12].mxu1 }
 0x3e3   : > { %v4187_v33 = vadd.f32 %v5101_v40, %v8860_v50  ;;  %v4178_v30 = vpop.f32.mrb[13].mxu1 }
 0x3e4   : > { %v4179_v52 = vadd.f32 %v8860_v50, %v4178_v30  ;;  %v5102_v15 = vpop.f32.mrb[14].mxu1 }
 0x3e5   : > { %v4271_v12 = vmax.f32 %v4187_v33, 0.0  ;;  %v4190_v63 = vadd.f32 %v5102_v15, %v8860_v50  ;;  %v4181_v57 = vpop.f32.mrb[15].mxu1 }
 0x3e6   : > { %v4269_v13 = vmax.f32 %v4179_v52, 0.0  ;;  %v4182_v26 = vadd.f32 %v8860_v50, %v4181_v57 }
 0x3e7   : > { %v4980_v34 = vpack.c.bf16 %v4271_v12, %v4271_v12  ;;  %v4272_v5 = vmax.f32 %v4190_v63, 0.0 }
 0x3e8   : > { %v4978_v23 = vpack.c.bf16 %v4269_v13, %v4269_v13  ;;  %v4270_v16 = vmax.f32 %v4182_v26, 0.0 }
 0x3e9   : > { %4432 = vst.msk [vmem:[%s8888_s1 + $0x38] sm:$0xf] %vm4417_vm4, %v4980_v34  ;;  %v4981_v55 = vpack.c.bf16 %v4272_v5, %v4272_v5 }
 0x3ea   : > { %4430 = vst.msk [vmem:[%s8888_s1 + $0x30] sm:$0xf] %vm4417_vm4, %v4978_v23  ;;  %v4979_v4 = vpack.c.bf16 %v4270_v16, %v4270_v16 }
 0x3eb   : > { %4433 = vst.msk [vmem:[%s8888_s1 + $0x3c] sm:$0xf] %vm4417_vm4, %v4981_v55 }
 0x3ec   : > { %4431 = vst.msk [vmem:[%s8888_s1 + $0x34] sm:$0xf] %vm4417_vm4, %v4979_v4 }
 0x3ef   : > { %v5105_v32 = vpop.f32.mrb[16].mxu1 }
 0x3f0   : > { %v4203_v21 = vadd.f32 %v5105_v32, %v8860_v50  ;;  %v4194_v29 = vpop.f32.mrb[17].mxu1 }
 0x3f1   : > { %v4195_v17 = vadd.f32 %v8860_v50, %v4194_v29  ;;  %v5106_v36 = vpop.f32.mrb[18].mxu1 }
 0x3f2   : > { %v4275_v27 = vmax.f32 %v4203_v21, 0.0  ;;  %v4206_v47 = vadd.f32 %v5106_v36, %v8860_v50  ;;  %v4197_v20 = vpop.f32.mrb[19].mxu1 }
 0x3f3   : > { %v4273_v60 = vmax.f32 %v4195_v17, 0.0  ;;  %v4198_v9 = vadd.f32 %v8860_v50, %v4197_v20 }
 0x3f4   : > { %v4984_v35 = vpack.c.bf16 %v4275_v27, %v4275_v27  ;;  %v4276_v46 = vmax.f32 %v4206_v47, 0.0 }
 0x3f5   : > { %v4982_v0 = vpack.c.bf16 %v4273_v60, %v4273_v60  ;;  %v4274_v61 = vmax.f32 %v4198_v9, 0.0 }
 0x3f6   : > { %4436 = vst.msk [vmem:[%s8888_s1 + $0x48] sm:$0xf] %vm4417_vm4, %v4984_v35  ;;  %v4985_v2 = vpack.c.bf16 %v4276_v46, %v4276_v46 }
 0x3f7   : > { %4434 = vst.msk [vmem:[%s8888_s1 + $0x40] sm:$0xf] %vm4417_vm4, %v4982_v0  ;;  %v4983_v51 = vpack.c.bf16 %v4274_v61, %v4274_v61 }
 0x3f8   : > { %4437 = vst.msk [vmem:[%s8888_s1 + $0x4c] sm:$0xf] %vm4417_vm4, %v4985_v2 }
 0x3f9   : > { %4435 = vst.msk [vmem:[%s8888_s1 + $0x44] sm:$0xf] %vm4417_vm4, %v4983_v51 }
 0x41f   : > { %v5109_v28 = vpop.f32.mrb[20].mxu1 }
 0x420   : > { %v4219_v58 = vadd.f32 %v5109_v28, %v8860_v50  ;;  %v4210_v43 = vpop.f32.mrb[21].mxu1 }
 0x421   : > { %v4211_v62 = vadd.f32 %v8860_v50, %v4210_v43  ;;  %v5110_v39 = vpop.f32.mrb[22].mxu1 }
 0x422   : > { %v4279_v56 = vmax.f32 %v4219_v58, 0.0  ;;  %v4222_v10 = vadd.f32 %v5110_v39, %v8860_v50  ;;  %v4213_v24 = vpop.f32.mrb[23].mxu1 }
 0x423   : > { %v4277_v8 = vmax.f32 %v4211_v62, 0.0  ;;  %v4214_v14 = vadd.f32 %v8860_v50, %v4213_v24 }
 0x424   : > { %v4988_v38 = vpack.c.bf16 %v4279_v56, %v4279_v56  ;;  %v4280_v37 = vmax.f32 %v4222_v10, 0.0 }
 0x425   : > { %v4986_v45 = vpack.c.bf16 %v4277_v8, %v4277_v8  ;;  %v4278_v25 = vmax.f32 %v4214_v14, 0.0 }
 0x426   : > { %4440 = vst.msk [vmem:[%s8888_s1 + $0x58] sm:$0xf] %vm4417_vm4, %v4988_v38  ;;  %v4989_v48 = vpack.c.bf16 %v4280_v37, %v4280_v37 }
 0x427   : > { %4438 = vst.msk [vmem:[%s8888_s1 + $0x50] sm:$0xf] %vm4417_vm4, %v4986_v45  ;;  %v4987_v49 = vpack.c.bf16 %v4278_v25, %v4278_v25 }
 0x428   : > { %4441 = vst.msk [vmem:[%s8888_s1 + $0x5c] sm:$0xf] %vm4417_vm4, %v4989_v48 }
 0x429   : > { %4439 = vst.msk [vmem:[%s8888_s1 + $0x54] sm:$0xf] %vm4417_vm4, %v4987_v49 }
 0x448   : > { %v5113_v31 = vpop.f32.mrb[24].mxu1 }
 0x449   : > { %v4235_v22 = vadd.f32 %v5113_v31, %v8860_v50  ;;  %v4226_v53 = vpop.f32.mrb[25].mxu1 }
 0x44a   : > { %v4227_v11 = vadd.f32 %v8860_v50, %v4226_v53  ;;  %v5114_v42 = vpop.f32.mrb[26].mxu1 }
 0x44b   : > { %v4283_v18 = vmax.f32 %v4235_v22, 0.0  ;;  %v4238_v41 = vadd.f32 %v5114_v42, %v8860_v50  ;;  %v4229_v54 = vpop.f32.mrb[27].mxu1 }
 0x44c   : > { %v4281_v19 = vmax.f32 %v4227_v11, 0.0  ;;  %v4230_v59 = vadd.f32 %v8860_v50, %v4229_v54 }
 0x44d   : > { %v4992_v1 = vpack.c.bf16 %v4283_v18, %v4283_v18  ;;  %v4284_v3 = vmax.f32 %v4238_v41, 0.0 }
 0x44e   : > { %v4990_v44 = vpack.c.bf16 %v4281_v19, %v4281_v19  ;;  %v4282_v7 = vmax.f32 %v4230_v59, 0.0 }
 0x44f   : > { %4444 = vst.msk [vmem:[%s8888_s1 + $0x68] sm:$0xf] %vm4417_vm4, %v4992_v1  ;;  %v4993_v6 = vpack.c.bf16 %v4284_v3, %v4284_v3 }
 0x450   : > { %4442 = vst.msk [vmem:[%s8888_s1 + $0x60] sm:$0xf] %vm4417_vm4, %v4990_v44  ;;  %v4991_v40 = vpack.c.bf16 %v4282_v7, %v4282_v7 }
 0x451   : > { %4445 = vst.msk [vmem:[%s8888_s1 + $0x6c] sm:$0xf] %vm4417_vm4, %v4993_v6 }
 0x452   : > { %4443 = vst.msk [vmem:[%s8888_s1 + $0x64] sm:$0xf] %vm4417_vm4, %v4991_v40 }
 0x45c   : > { %v5117_v33 = vpop.f32.mrb[28].mxu1 }
 0x45d   : > { %v4251_v30 = vadd.f32 %v5117_v33, %v8860_v50  ;;  %v4242_v52 = vpop.f32.mrb[29].mxu1 }
 0x45e   : > { %v4243_v15 = vadd.f32 %v8860_v50, %v4242_v52  ;;  %v5118_v12 = vpop.f32.mrb[30].mxu1 }
 0x45f   : > { %v4287_v63 = vmax.f32 %v4251_v30, 0.0  ;;  %v4254_v57 = vadd.f32 %v5118_v12, %v8860_v50  ;;  %v4245_v13 = vpop.f32.mrb[31].mxu1 }
 0x460   : > { %v4285_v26 = vmax.f32 %v4243_v15, 0.0  ;;  %v4246_v34 = vadd.f32 %v8860_v50, %v4245_v13 }
 0x461   : > { %v4996_v5 = vpack.c.bf16 %v4287_v63, %v4287_v63  ;;  %v4288_v23 = vmax.f32 %v4254_v57, 0.0 }
 0x462   : > { %v4994_v16 = vpack.c.bf16 %v4285_v26, %v4285_v26  ;;  %v4286_v55 = vmax.f32 %v4246_v34, 0.0 }
 0x463   : > { %4448 = vst.msk [vmem:[%s8888_s1 + $0x78] sm:$0xf] %vm4417_vm4, %v4996_v5  ;;  %v4997_v4 = vpack.c.bf16 %v4288_v23, %v4288_v23 }
 0x464   : > { %4446 = vst.msk [vmem:[%s8888_s1 + $0x70] sm:$0xf] %vm4417_vm4, %v4994_v16  ;;  %v4995_v32 = vpack.c.bf16 %v4286_v55, %v4286_v55 }
 0x465   : > { %4449 = vst.msk [vmem:[%s8888_s1 + $0x7c] sm:$0xf] %vm4417_vm4, %v4997_v4 }
 0x466   : > { %4447 = vst.msk [vmem:[%s8888_s1 + $0x74] sm:$0xf] %vm4417_vm4, %v4995_v32 }
 0x467   : > { %5468 = shalt.err (!%p5465_p5)
}
 0x468   : > { %s5469_s8 = scalar_lea.hbm %s9010_s6, 2048  ;;  %s5473_s15 = scalar_lea.hbm %s9074_s5, 4096 }
 0x469   : > { %p5470_p10 = scmp.ne.s32.totalorder %s9010_s6, %s5469_s8  ;;  %p5474_p3 = scmp.lt.u32.totalorder %s9010_s6, %s9074_s5 }
 0x46a   : > { %p5475_p7 = scmp.lt.u32.totalorder %s5473_s15, %s5469_s8  ;;  %p5477_p12 = scmp.lt.u32.totalorder %s5469_s8, %s9010_s6 }
 0x46b   : > { %p5471_p13 = pnand %p5470_p10, %p5763_p6 }
 0x46c   : > { %p5476_p11 = por %p5475_p7, %p5474_p3 }
 0x46d   : > { %p5472_p9 = pneg %p5471_p13 }
 0x46e   : > { %p5478_p1 = por %p5477_p12, %p5476_p11 }
 0x470   : > { %p5479_p2 = pnand %p5478_p1, %p5472_p9 }
 0x472   : > { %5482 = shalt.err (!%p5479_p2)
}
 0x473   : > { %s5564_s9 = smov 4  }
 0x474   : > { %5142 = dma.vmem_to_hbm [thread:$0]  (%p5763_p6), %s9014_s25, 2048, %s9010_s6, %s4451_s21, %s5562_s16, %s5562_s16, %s5564_s9  }
 0x475 PF: > { %s4482_s27 = sand.u32 1, %s5525_s18   ;;  %p9675_p4 = scmp.ne.s32.totalorder %s9163_s29, 0 }
 0x476   : > { %p9676_p8 = scmp.ge.s32.totalorder %s5545_s23, 2  ;;  %s4483_s26 = scalar_lea.sflag [#allocation5], %s4482_s27 }
 0x478   : > { %p5162_p0 = pnand %p9676_p8, %p9675_p4 }
 0x47a   : > { %5520 = dma.done.wait (!%p5162_p0), %s4483_s26, 2048  }
 0x47b   : > { %5522 = vsyncadd (!%p5162_p0), %s4483_s26, 4294965248  ;;  %s23_s23 = sadd.s32 1, %s5545_s23   ;;  %s9677_s18 = smov %s5529_s19 }
 0x47c   : > { %p20_p5 = scmp.ge.s32.totalorder %s23_s23, 4   ;;  %s9678_s19 = smov %s5533_s20 }
 0x47d   : > { %s9679_s20 = smov %s5775_s7  ;;  %s9680_s21 = smov %s5541_s22 }
 0x47e   : > { %s9681_s22 = smov %s9683_s24  ;;  %22 = sbr.rel (!%p20_p5) target bundleno = 10 (0xa), region = 109 }
 0x485   :  { %4488 = vsyncpa [#allocation4], 1 }
 0x486   :  { %4490 = vsyncpa [#allocation4 + $0x1], 1 }
 0x487   :  { %4491 = vsyncpa [#allocation7], 1 }
 0x488   :  { %4492 = vsyncpa [#allocation10], 1 }
 0x489   :  { %4493 = vsyncpa [#allocation5], 1 }
 0x48a   :  { %4495 = vsyncpa [#allocation5 + $0x1], 1 }

</bundles_post_ra>
